<compile_context>
chip_gen: v5e
topology: v5e:2x2
jax: 0.10.0
libtpu: 0.0.40
codegen_flags: <defaults>
</compile_context>

<pallas_src>
import math

import jax
import jax.numpy as jnp
from jax.experimental import pallas as pl
from jax.experimental.pallas import tpu as pltpu

# ---------------------------- model config ----------------------------------
CROSS_DIM = 32      # cross-attention dim of the surrogate UNet
HIDDEN = 32         # UNet hidden width (== query dim)
NUM_TOKENS = 4      # tokens produced by each projection model
NUM_HEADS = 4       # head_dim = 8
IP_SCALE = 1.0
LN_EPS = 1e-5

CLIP_DIM = 48       # image_embeds dim
VIDEO_DIM = 40      # video_embeds dim
LATENT_C = 4
LATENT_HW = 16
TEXT_TOKENS = 8


def _round8(n):
    return (n + 7) // 8 * 8


# ---------------------------- parameter init ---------------------------------

def _init_linear(key, d_in, d_out, scale=0.02):
    kw, kb = jax.random.split(key)
    return {"w": scale * jax.random.normal(kw, (d_in, d_out), jnp.float32),
            "b": scale * jax.random.normal(kb, (d_out,), jnp.float32)}


def _init_proj_model(key, d_in):
    # ImageProjModel: Linear(d_in -> tokens*cross_dim) -> reshape -> LayerNorm
    return {"proj": _init_linear(key, d_in, NUM_TOKENS * CROSS_DIM),
            "ln_g": jnp.ones((CROSS_DIM,), jnp.float32),
            "ln_b": jnp.zeros((CROSS_DIM,), jnp.float32)}


def _init_attn(key, query_dim, context_dim, ip=False):
    ks = jax.random.split(key, 6)
    p = {"ln_g": jnp.ones((query_dim,), jnp.float32),
         "ln_b": jnp.zeros((query_dim,), jnp.float32),
         "q": _init_linear(ks[0], query_dim, query_dim),
         "k": _init_linear(ks[1], context_dim, query_dim),
         "v": _init_linear(ks[2], context_dim, query_dim),
         "out": _init_linear(ks[3], query_dim, query_dim)}
    if ip:
        p["k_ip"] = _init_linear(ks[4], context_dim, query_dim)
        p["v_ip"] = _init_linear(ks[5], context_dim, query_dim)
    return p


def init_params(key):
    ks = jax.random.split(key, 8)
    return {
        "image_proj": _init_proj_model(ks[0], CLIP_DIM),
        "video_proj": _init_proj_model(ks[1], VIDEO_DIM),
        "unet": {
            "proj_in": _init_linear(ks[2], LATENT_C, HIDDEN),
            "time1": _init_linear(ks[3], HIDDEN, HIDDEN),
            "time2": _init_linear(ks[4], HIDDEN, HIDDEN),
            "attn_ip": _init_attn(ks[5], HIDDEN, CROSS_DIM, ip=True),
            "attn3": _init_attn(ks[6], HIDDEN, CROSS_DIM),
            "proj_out": _init_linear(ks[7], HIDDEN, LATENT_C),
        },
    }


# ---------------------------- slab packing ------------------------------------

def _pack_slab(named):
    """Pack named 2-D arrays (rows <= anything, cols <= 128) into one (R, 128)
    f32 slab with each entry starting at an 8-row-aligned offset."""
    offsets = {}
    row = 0
    for name, a in named:
        r, c = a.shape
        assert c <= 128, (name, a.shape)
        offsets[name] = (row, r, c)
        row += _round8(r)
    total = _round8(max(row, 8))
    slab = jnp.zeros((total, 128), jnp.float32)
    for name, a in named:
        o, r, c = offsets[name]
        slab = slab.at[o:o + r, :c].set(a.astype(jnp.float32))
    return slab, offsets


def _proj_entries(prefix, pp):
    w = pp["proj"]["w"]                          # (Cd, T*D)
    b = pp["proj"]["b"]                          # (T*D,)
    g, bb = pp["ln_g"], pp["ln_b"]
    return [
        (prefix + "_Wp", w),                                     # normal-path weight
        (prefix + "_bp", b.reshape(1, -1)),
        (prefix + "_WpT", w.T),                                  # transposed-path weight
        (prefix + "_bpT", b.reshape(NUM_TOKENS, CROSS_DIM).T),   # (D, T)
        (prefix + "_g_row", g.reshape(1, -1)),
        (prefix + "_b_row", bb.reshape(1, -1)),
        (prefix + "_g_col", g.reshape(-1, 1)),
        (prefix + "_b_col", bb.reshape(-1, 1)),
    ]


def _attn_entries(prefix, pa, ip):
    e = [
        (prefix + "_g", pa["ln_g"].reshape(-1, 1)),
        (prefix + "_b", pa["ln_b"].reshape(-1, 1)),
        (prefix + "_WqT", pa["q"]["w"].T),
        (prefix + "_bq", pa["q"]["b"].reshape(-1, 1)),
        (prefix + "_Wk", pa["k"]["w"]),               # K stays in (ctx, feat) form
        (prefix + "_bk", pa["k"]["b"].reshape(1, -1)),
        (prefix + "_WvT", pa["v"]["w"].T),            # V used in transposed form
        (prefix + "_bv", pa["v"]["b"].reshape(-1, 1)),
        (prefix + "_WoT", pa["out"]["w"].T),
        (prefix + "_bo", pa["out"]["b"].reshape(-1, 1)),
    ]
    if ip:
        e += [
            (prefix + "_Wk_ip", pa["k_ip"]["w"]),
            (prefix + "_bk_ip", pa["k_ip"]["b"].reshape(1, -1)),
            (prefix + "_Wv_ipT", pa["v_ip"]["w"].T),
            (prefix + "_bv_ip", pa["v_ip"]["b"].reshape(-1, 1)),
        ]
    return e


def _weight_entries(params):
    u = params["unet"]
    ent = []
    ent += _proj_entries("ip", params["image_proj"])
    ent += _proj_entries("vd", params["video_proj"])
    ent += [
        ("WinT", u["proj_in"]["w"].T),                 # (HIDDEN, C)
        ("bin", u["proj_in"]["b"].reshape(-1, 1)),
        ("W1T", u["time1"]["w"].T),
        ("b1", u["time1"]["b"].reshape(-1, 1)),
        ("W2T", u["time2"]["w"].T),
        ("b2", u["time2"]["b"].reshape(-1, 1)),
    ]
    ent += _attn_entries("a1", u["attn_ip"], ip=True)
    ent += _attn_entries("a3", u["attn3"], ip=False)
    ent += [
        ("WoutT", u["proj_out"]["w"].T),               # (C, HIDDEN) -> lane-dense store
        ("bout", u["proj_out"]["b"].reshape(-1, 1)),
    ]
    return ent


def _data_layout():
    items = [("text_n", (TEXT_TOKENS, CROSS_DIM)),
             ("textT", (CROSS_DIM, TEXT_TOKENS)),
             ("temb0", (HIDDEN, 1)),
             ("img_row", (1, CLIP_DIM)),
             ("img_col", (CLIP_DIM, 1)),
             ("vid_row", (1, VIDEO_DIM)),
             ("vid_col", (VIDEO_DIM, 1))]
    off = {}
    row = 0
    for name, (r, c) in items:
        off[name] = (row, r, c)
        row += _round8(r)
    return off, _round8(row)


# ---------------------------- fused kernel ------------------------------------

def _make_kernel(w_off, d_off):
    def w_(ref, name):
        o, r, c = w_off[name]
        return ref[o:o + r, 0:c]

    def d_(ref, name):
        o, r, c = d_off[name]
        return ref[o:o + r, 0:c]

    def _dot(a, b):
        return jnp.dot(a, b, preferred_element_type=jnp.float32)

    def _ln_cols(x, g_col, b_col):
        # LayerNorm over the feature axis = axis 0 (sublanes); x is (F, N).
        m = jnp.mean(x, axis=0, keepdims=True)
        v = jnp.mean(jnp.square(x - m), axis=0, keepdims=True)
        return (x - m) * jax.lax.rsqrt(v + LN_EPS) * g_col + b_col

    def _ln_rows(x, g_row, b_row):
        m = jnp.mean(x, axis=-1, keepdims=True)
        v = jnp.mean(jnp.square(x - m), axis=-1, keepdims=True)
        return (x - m) * jax.lax.rsqrt(v + LN_EPS) * g_row + b_row

    def _proj_tokens(w_ref, d_ref, prefix, row_name, col_name):
        """ImageProjModel: Linear -> NUM_TOKENS tokens -> LayerNorm, produced in
        BOTH orientations (normal (T, D) for K, transposed (D, T) for V) so the
        kernel needs no in-kernel transposes."""
        # normal path
        flat = _dot(d_(d_ref, row_name), w_(w_ref, prefix + "_Wp")) \
            + w_(w_ref, prefix + "_bp")                                  # (1, T*D)
        tok_n = jnp.concatenate(
            [flat[:, t * CROSS_DIM:(t + 1) * CROSS_DIM] for t in range(NUM_TOKENS)],
            axis=0)                                                      # (T, D)
        tok_n = _ln_rows(tok_n, w_(w_ref, prefix + "_g_row"),
                         w_(w_ref, prefix + "_b_row"))
        # transposed path
        fcol = _dot(w_(w_ref, prefix + "_WpT"), d_(d_ref, col_name))     # (T*D, 1)
        tok_t = jnp.concatenate(
            [fcol[t * CROSS_DIM:(t + 1) * CROSS_DIM, :] for t in range(NUM_TOKENS)],
            axis=1) + w_(w_ref, prefix + "_bpT")                         # (D, T)
        tok_t = _ln_cols(tok_t, w_(w_ref, prefix + "_g_col"),
                         w_(w_ref, prefix + "_b_col"))
        return tok_n, tok_t

    def _mha_t(q_t, k_n, v_t):
        """Multi-head attention in transposed dataflow.
        q_t (D, HW) lane-dense; k_n (Lk, D); v_t (D, Lk)."""
        dh = CROSS_DIM // NUM_HEADS
        scale = 1.0 / math.sqrt(dh)
        outs = []
        for h in range(NUM_HEADS):
            r0 = h * dh
            q_h = q_t[r0:r0 + dh, :]                 # (dh, HW)  sublane-aligned
            k_h = k_n[:, r0:r0 + dh]                 # (Lk, dh)  tiny lane slice
            v_h = v_t[r0:r0 + dh, :]                 # (dh, Lk)  sublane-aligned
            s = _dot(k_h, q_h) * scale               # (Lk, HW)  lane-dense scores
            s = s - jnp.max(s, axis=0, keepdims=True)
            e = jnp.exp(s)
            p = e * pl.reciprocal(jnp.sum(e, axis=0, keepdims=True), approx=True)
            outs.append(_dot(v_h, p))                # (dh, HW)
        return jnp.concatenate(outs, axis=0)         # (D, HW) sublane concat

    def _cross_attn_t(w_ref, prefix, h_t, ctx_n, ctx_t, ip=None):
        hn = _ln_cols(h_t, w_(w_ref, prefix + "_g"), w_(w_ref, prefix + "_b"))
        q_t = _dot(w_(w_ref, prefix + "_WqT"), hn) + w_(w_ref, prefix + "_bq")
        k_n = _dot(ctx_n, w_(w_ref, prefix + "_Wk")) + w_(w_ref, prefix + "_bk")
        v_t = _dot(w_(w_ref, prefix + "_WvT"), ctx_t) + w_(w_ref, prefix + "_bv")
        a_t = _mha_t(q_t, k_n, v_t)
        if ip is not None:                           # decoupled IP branch
            ip_n, ip_t = ip
            k_ip = _dot(ip_n, w_(w_ref, prefix + "_Wk_ip")) + w_(w_ref, prefix + "_bk_ip")
            v_ip = _dot(w_(w_ref, prefix + "_Wv_ipT"), ip_t) + w_(w_ref, prefix + "_bv_ip")
            a_t = a_t + IP_SCALE * _mha_t(q_t, k_ip, v_ip)
        return h_t + _dot(w_(w_ref, prefix + "_WoT"), a_t) + w_(w_ref, prefix + "_bo")

    def kernel(x_ref, d_ref, w_ref, o_ref):
        # timestep-embedding MLP on a (HIDDEN, 1) column
        # TODO(synk): diffusers' get_timestep_embedding default ordering is
        # sin-then-cos (flip_sin_to_cos dependent); adjust for parity with a
        # real UNet.
        t = _dot(w_(w_ref, "W1T"), d_(d_ref, "temb0")) + w_(w_ref, "b1")
        t = t * (1.0 / (1.0 + jnp.exp(-t)))          # SiLU
        temb = _dot(w_(w_ref, "W2T"), t) + w_(w_ref, "b2")   # (HIDDEN, 1)

        ip_n, ip_t = _proj_tokens(w_ref, d_ref, "ip", "img_row", "img_col")
        vd_n, vd_t = _proj_tokens(w_ref, d_ref, "vd", "vid_row", "vid_col")

        # latent tokens in transposed dataflow: h (HIDDEN, HW), HW on lanes
        h_t = _dot(w_(w_ref, "WinT"), x_ref[...]) + w_(w_ref, "bin") + temb

        text_n = d_(d_ref, "text_n")                 # (Tt, D)
        text_t = d_(d_ref, "textT")                  # (D, Tt)

        # cat([text, ip_tokens]) + IPAttnProcessor's split-at-end_pos is
        # equivalent to consuming the two contexts separately.
        h_t = _cross_attn_t(w_ref, "a1", h_t, text_n, text_t, ip=(ip_n, ip_t))
        h_t = _cross_attn_t(w_ref, "a3", h_t, vd_n, vd_t)    # video branch

        # proj_out^T -> lane-dense (C, HW) store, already NCHW-ordered.
        o_ref[...] = _dot(w_(w_ref, "WoutT"), h_t) + w_(w_ref, "bout")

    return kernel


# ---------------------------- wrapper -----------------------------------------

def build_ip_adapter_forward(params):
    w_slab, w_off = _pack_slab(_weight_entries(params))
    d_off, d_rows = _data_layout()
    kernel = _make_kernel(w_off, d_off)
    wr = w_slab.shape[0]

    def _forward(w_slab, noisy_latents, timesteps, encoder_hidden_states,
                 video_embeds, image_embeds):
        B, C, H, W = noisy_latents.shape
        HW = H * W
        x = noisy_latents.reshape(B, C, HW).astype(jnp.float32)   # no transpose

        half = HIDDEN // 2
        freqs = jnp.exp(-math.log(10000.0) *
                        jnp.arange(half, dtype=jnp.float32) / half)
        args = timesteps.astype(jnp.float32)[:, None] * freqs[None, :]
        temb0 = jnp.concatenate([jnp.cos(args), jnp.sin(args)], axis=-1)  # (B, 32)

        text = encoder_hidden_states.astype(jnp.float32)
        img = image_embeds.astype(jnp.float32)
        vid = video_embeds.astype(jnp.float32)

        d_slab = jnp.zeros((B, d_rows, 128), jnp.float32)

        def put(slab, name, val):
            o, r, c = d_off[name]
            return slab.at[:, o:o + r, :c].set(val)

        d_slab = put(d_slab, "text_n", text)
        d_slab = put(d_slab, "textT", jnp.swapaxes(text, 1, 2))
        d_slab = put(d_slab, "temb0", temb0[:, :, None])
        d_slab = put(d_slab, "img_row", img[:, None, :])
        d_slab = put(d_slab, "img_col", img[:, :, None])
        d_slab = put(d_slab, "vid_row", vid[:, None, :])
        d_slab = put(d_slab, "vid_col", vid[:, :, None])

        out = pl.pallas_call(
            kernel,
            out_shape=jax.ShapeDtypeStruct((B, C, HW), jnp.float32),
            grid_spec=pltpu.PrefetchScalarGridSpec(
                num_scalar_prefetch=0,
                grid=(B,),
                in_specs=[
                    pl.BlockSpec((None, C, HW), lambda b: (b, 0, 0)),
                    pl.BlockSpec((None, d_rows, 128), lambda b: (b, 0, 0)),
                    # constant index -> fetched once, VMEM-resident weights
                    pl.BlockSpec((wr, 128), lambda b: (0, 0)),
                ],
                out_specs=pl.BlockSpec((None, C, HW), lambda b: (b, 0, 0)),
            ),
            compiler_params=pltpu.CompilerParams(
                dimension_semantics=("parallel",)),   # batch over 2 TCs on v7x
        )(x, d_slab, w_slab)
        return out.reshape(B, C, H, W)                # (B, C, HW) is already NCHW

    fwd = jax.jit(_forward)
    return lambda *args: fwd(w_slab, *args)


# ---------------------------- pure-JAX reference --------------------------------

def reference_forward(params, noisy_latents, timesteps, encoder_hidden_states,
                      video_embeds, image_embeds):
    B, C, H, W = noisy_latents.shape
    HW = H * W
    dh = CROSS_DIM // NUM_HEADS

    def mm(x, lin):
        return jnp.matmul(x, lin["w"]) + lin["b"]

    def ln(x, g, b):
        m = jnp.mean(x, axis=-1, keepdims=True)
        v = jnp.mean(jnp.square(x - m), axis=-1, keepdims=True)
        return (x - m) * jax.lax.rsqrt(v + LN_EPS) * g + b

    def proj_model(pp, e):
        t = mm(e, pp["proj"]).reshape(-1, NUM_TOKENS, CROSS_DIM)
        return ln(t, pp["ln_g"], pp["ln_b"])

    def mha(q, k, v):
        Bq, Lq, D = q.shape
        Lk = k.shape[1]
        qh = q.reshape(Bq, Lq, NUM_HEADS, dh).transpose(0, 2, 1, 3)
        kh = k.reshape(Bq, Lk, NUM_HEADS, dh).transpose(0, 2, 1, 3)
        vh = v.reshape(Bq, Lk, NUM_HEADS, dh).transpose(0, 2, 1, 3)
        s = jnp.einsum("bhqd,bhkd->bhqk", qh, kh) / math.sqrt(dh)
        p = jax.nn.softmax(s, axis=-1)
        o = jnp.einsum("bhqk,bhkd->bhqd", p, vh)
        return o.transpose(0, 2, 1, 3).reshape(Bq, Lq, D)

    def attn(pa, h, ctx, ip_ctx=None):
        hn = ln(h, pa["ln_g"], pa["ln_b"])
        q = mm(hn, pa["q"])
        a = mha(q, mm(ctx, pa["k"]), mm(ctx, pa["v"]))
        if ip_ctx is not None:
            a = a + IP_SCALE * mha(q, mm(ip_ctx, pa["k_ip"]), mm(ip_ctx, pa["v_ip"]))
        return h + mm(a, pa["out"])

    u = params["unet"]
    half = HIDDEN // 2
    freqs = jnp.exp(-math.log(10000.0) * jnp.arange(half, dtype=jnp.float32) / half)
    args = timesteps.astype(jnp.float32)[:, None] * freqs[None, :]
    temb = jnp.concatenate([jnp.cos(args), jnp.sin(args)], axis=-1)
    temb = mm(temb, u["time1"])
    temb = temb * (1.0 / (1.0 + jnp.exp(-temb)))
    temb = mm(temb, u["time2"])

    ip_tokens = proj_model(params["image_proj"], image_embeds)
    ctx_video = proj_model(params["video_proj"], video_embeds)

    x = noisy_latents.reshape(B, C, HW).transpose(0, 2, 1)
    h = mm(x, u["proj_in"]) + temb[:, None, :]
    h = attn(u["attn_ip"], h, encoder_hidden_states, ip_ctx=ip_tokens)
    h = attn(u["attn3"], h, ctx_video)
    out = mm(h, u["proj_out"])                       # (B, HW, C)
    return out.transpose(0, 2, 1).reshape(B, C, H, W)


# ------------------------------- main -----------------------------------------

if __name__ == "__main__":
    key = jax.random.PRNGKey(0)
    pkey, dkey = jax.random.split(key)
    params = init_params(pkey)

    k1, k2, k3, k4 = jax.random.split(dkey, 4)
    B = 2
    noisy_latents = jax.random.normal(
        k1, (B, LATENT_C, LATENT_HW, LATENT_HW), jnp.float32)       # NCHW
    timesteps = jnp.array([10, 500], dtype=jnp.int32)
    encoder_hidden_states = jax.random.normal(
        k2, (B, TEXT_TOKENS, CROSS_DIM), jnp.float32)
    video_embeds = jax.random.normal(k3, (B, VIDEO_DIM), jnp.float32)
    image_embeds = jax.random.normal(k4, (B, CLIP_DIM), jnp.float32)

    forward = build_ip_adapter_forward(params)
    noise_pred = forward(noisy_latents, timesteps, encoder_hidden_states,
                         video_embeds, image_embeds)
    jax.block_until_ready(noise_pred)

    assert noise_pred.shape == noisy_latents.shape, noise_pred.shape
    assert bool(jnp.all(jnp.isfinite(noise_pred)))

    ref = reference_forward(params, noisy_latents, timesteps,
                            encoder_hidden_states, video_embeds, image_embeds)
    max_err = float(jnp.max(jnp.abs(noise_pred - ref)))
    assert bool(jnp.allclose(noise_pred, ref, rtol=2e-2, atol=1e-3)), max_err

    print("KERNEL_OK")
</pallas_src>

<mosaic_0001>
module attributes {stable_mosaic.version = 11 : i64} {
  func.func @kernel(%arg0: i32, %arg1: memref<1x4x256xf32, #tpu.memory_space<vmem>>, %arg2: memref<1x176x128xf32, #tpu.memory_space<vmem>>, %arg3: memref<1488x128xf32, #tpu.memory_space<vmem>>, %arg4: memref<1x4x256xf32, #tpu.memory_space<vmem>>) attributes {dimension_semantics = [#tpu.dimension_semantics<parallel>], iteration_bounds = array<i64: 2>, scalar_prefetch = 0 : i64, scratch_operands = 0 : i64, tpu.core_type = #tpu.core_type<tc>, window_params = [{transform_indices = @transform_0, window_bounds = array<i64: 1, 4, 256>}, {transform_indices = @transform_1, window_bounds = array<i64: 1, 176, 128>}, {pipeline_mode = #tpu.pipeline_mode<synchronous>, transform_indices = @transform_2, window_bounds = array<i64: 1488, 128>}, {transform_indices = @transform_3, window_bounds = array<i64: 1, 4, 256>}]} {
    %c648 = arith.constant 648 : index
    %c0 = arith.constant 0 : index
    %0 = vector.load %arg3[%c648, %c0] : memref<1488x128xf32, #tpu.memory_space<vmem>>, vector<32x32xf32>
    %c0_0 = arith.constant 0 : index
    %c40 = arith.constant 40 : index
    %c0_1 = arith.constant 0 : index
    %1 = vector.load %arg2[%c0_0, %c40, %c0_1] : memref<1x176x128xf32, #tpu.memory_space<vmem>>, vector<1x32x1xf32>
    %2 = vector.shape_cast %1 : vector<1x32x1xf32> to vector<32x1xf32>
    %cst = arith.constant dense<0.000000e+00> : vector<32x1xf32>
    %3 = tpu.matmul %0, %2, %cst {dimension_numbers = #tpu.dot_dimension_numbers<[1], [0], [0], [1], [0, 0, 1, 1], [], []>} : vector<32x32xf32>, vector<32x1xf32>, vector<32x1xf32> -> vector<32x1xf32>
    %c680 = arith.constant 680 : index
    %c0_2 = arith.constant 0 : index
    %4 = vector.load %arg3[%c680, %c0_2] : memref<1488x128xf32, #tpu.memory_space<vmem>>, vector<32x1xf32>
    %5 = arith.addf %3, %4 : vector<32x1xf32>
    %cst_3 = arith.constant 0.000000e+00 : f32
    %6 = vector.broadcast %cst_3 : f32 to vector<32x1xf32>
    %7 = arith.subf %6, %5 : vector<32x1xf32>
    %8 = math.exp %7 : vector<32x1xf32>
    %cst_4 = arith.constant 1.000000e+00 : f32
    %9 = vector.broadcast %cst_4 : f32 to vector<32x1xf32>
    %10 = arith.addf %9, %8 : vector<32x1xf32>
    %cst_5 = arith.constant 1.000000e+00 : f32
    %11 = vector.broadcast %cst_5 : f32 to vector<32x1xf32>
    %12 = arith.divf %11, %10 : vector<32x1xf32>
    %13 = arith.mulf %5, %12 : vector<32x1xf32>
    %c712 = arith.constant 712 : index
    %c0_6 = arith.constant 0 : index
    %14 = vector.load %arg3[%c712, %c0_6] : memref<1488x128xf32, #tpu.memory_space<vmem>>, vector<32x32xf32>
    %cst_7 = arith.constant dense<0.000000e+00> : vector<32x1xf32>
    %15 = tpu.matmul %14, %13, %cst_7 {dimension_numbers = #tpu.dot_dimension_numbers<[1], [0], [0], [1], [0, 0, 1, 1], [], []>} : vector<32x32xf32>, vector<32x1xf32>, vector<32x1xf32> -> vector<32x1xf32>
    %c744 = arith.constant 744 : index
    %c0_8 = arith.constant 0 : index
    %16 = vector.load %arg3[%c744, %c0_8] : memref<1488x128xf32, #tpu.memory_space<vmem>>, vector<32x1xf32>
    %17 = arith.addf %15, %16 : vector<32x1xf32>
    %c0_9 = arith.constant 0 : index
    %c72 = arith.constant 72 : index
    %c0_10 = arith.constant 0 : index
    %18 = vector.load %arg2[%c0_9, %c72, %c0_10] : memref<1x176x128xf32, #tpu.memory_space<vmem>>, vector<1x1x48xf32>
    %19 = vector.shape_cast %18 : vector<1x1x48xf32> to vector<1x48xf32>
    %c0_11 = arith.constant 0 : index
    %c0_12 = arith.constant 0 : index
    %20 = vector.load %arg3[%c0_11, %c0_12] : memref<1488x128xf32, #tpu.memory_space<vmem>>, vector<48x128xf32>
    %cst_13 = arith.constant dense<0.000000e+00> : vector<1x128xf32>
    %21 = tpu.matmul %19, %20, %cst_13 {dimension_numbers = #tpu.dot_dimension_numbers<[1], [0], [0], [1], [0, 0, 1, 1], [], []>} : vector<1x48xf32>, vector<48x128xf32>, vector<1x128xf32> -> vector<1x128xf32>
    %c48 = arith.constant 48 : index
    %c0_14 = arith.constant 0 : index
    %22 = vector.load %arg3[%c48, %c0_14] : memref<1488x128xf32, #tpu.memory_space<vmem>>, vector<1x128xf32>
    %23 = arith.addf %21, %22 : vector<1x128xf32>
    %24 = vector.extract_strided_slice %23 {offsets = [0, 0], sizes = [1, 32], strides = [1, 1]} : vector<1x128xf32> to vector<1x32xf32>
    %25 = vector.extract_strided_slice %23 {offsets = [0, 32], sizes = [1, 32], strides = [1, 1]} : vector<1x128xf32> to vector<1x32xf32>
    %26 = vector.extract_strided_slice %23 {offsets = [0, 64], sizes = [1, 32], strides = [1, 1]} : vector<1x128xf32> to vector<1x32xf32>
    %27 = vector.extract_strided_slice %23 {offsets = [0, 96], sizes = [1, 32], strides = [1, 1]} : vector<1x128xf32> to vector<1x32xf32>
    %28 = tpu.concatenate %24, %25, %26, %27 in 0 : vector<1x32xf32>, vector<1x32xf32>, vector<1x32xf32>, vector<1x32xf32> -> vector<4x32xf32>
    %c216 = arith.constant 216 : index
    %c0_15 = arith.constant 0 : index
    %29 = vector.load %arg3[%c216, %c0_15] : memref<1488x128xf32, #tpu.memory_space<vmem>>, vector<1x32xf32>
    %c224 = arith.constant 224 : index
    %c0_16 = arith.constant 0 : index
    %30 = vector.load %arg3[%c224, %c0_16] : memref<1488x128xf32, #tpu.memory_space<vmem>>, vector<1x32xf32>
    %cst_17 = arith.constant dense<0.000000e+00> : vector<4xf32>
    %31 = vector.multi_reduction <add>, %28, %cst_17 [1] : vector<4x32xf32> to vector<4xf32>
    %32 = vector.shape_cast %31 : vector<4xf32> to vector<4x1xf32>
    %cst_18 = arith.constant 3.200000e+01 : f32
    %33 = vector.broadcast %cst_18 : f32 to vector<4x1xf32>
    %34 = arith.divf %32, %33 : vector<4x1xf32>
    %35 = vector.broadcast %34 : vector<4x1xf32> to vector<4x32xf32>
    %36 = arith.subf %28, %35 : vector<4x32xf32>
    %37 = arith.mulf %36, %36 : vector<4x32xf32>
    %cst_19 = arith.constant dense<0.000000e+00> : vector<4xf32>
    %38 = vector.multi_reduction <add>, %37, %cst_19 [1] : vector<4x32xf32> to vector<4xf32>
    %39 = vector.shape_cast %38 : vector<4xf32> to vector<4x1xf32>
    %cst_20 = arith.constant 3.200000e+01 : f32
    %40 = vector.broadcast %cst_20 : f32 to vector<4x1xf32>
    %41 = arith.divf %39, %40 : vector<4x1xf32>
    %42 = vector.broadcast %34 : vector<4x1xf32> to vector<4x32xf32>
    %43 = arith.subf %28, %42 : vector<4x32xf32>
    %cst_21 = arith.constant 9.99999974E-6 : f32
    %44 = vector.broadcast %cst_21 : f32 to vector<4x1xf32>
    %45 = arith.addf %41, %44 : vector<4x1xf32>
    %46 = math.rsqrt %45 : vector<4x1xf32>
    %47 = vector.broadcast %46 : vector<4x1xf32> to vector<4x32xf32>
    %48 = arith.mulf %43, %47 : vector<4x32xf32>
    %49 = vector.broadcast %29 : vector<1x32xf32> to vector<4x32xf32>
    %50 = arith.mulf %48, %49 : vector<4x32xf32>
    %51 = vector.broadcast %30 : vector<1x32xf32> to vector<4x32xf32>
    %52 = arith.addf %50, %51 : vector<4x32xf32>
    %c56 = arith.constant 56 : index
    %c0_22 = arith.constant 0 : index
    %53 = vector.load %arg3[%c56, %c0_22] : memref<1488x128xf32, #tpu.memory_space<vmem>>, vector<128x48xf32>
    %c0_23 = arith.constant 0 : index
    %c80 = arith.constant 80 : index
    %c0_24 = arith.constant 0 : index
    %54 = vector.load %arg2[%c0_23, %c80, %c0_24] : memref<1x176x128xf32, #tpu.memory_space<vmem>>, vector<1x48x1xf32>
    %55 = vector.shape_cast %54 : vector<1x48x1xf32> to vector<48x1xf32>
    %cst_25 = arith.constant dense<0.000000e+00> : vector<128x1xf32>
    %56 = tpu.matmul %53, %55, %cst_25 {dimension_numbers = #tpu.dot_dimension_numbers<[1], [0], [0], [1], [0, 0, 1, 1], [], []>} : vector<128x48xf32>, vector<48x1xf32>, vector<128x1xf32> -> vector<128x1xf32>
    %57 = vector.extract_strided_slice %56 {offsets = [0, 0], sizes = [32, 1], strides = [1, 1]} : vector<128x1xf32> to vector<32x1xf32>
    %58 = vector.extract_strided_slice %56 {offsets = [32, 0], sizes = [32, 1], strides = [1, 1]} : vector<128x1xf32> to vector<32x1xf32>
    %59 = vector.extract_strided_slice %56 {offsets = [64, 0], sizes = [32, 1], strides = [1, 1]} : vector<128x1xf32> to vector<32x1xf32>
    %60 = vector.extract_strided_slice %56 {offsets = [96, 0], sizes = [32, 1], strides = [1, 1]} : vector<128x1xf32> to vector<32x1xf32>
    %61 = tpu.concatenate %57, %58, %59, %60 in 1 : vector<32x1xf32>, vector<32x1xf32>, vector<32x1xf32>, vector<32x1xf32> -> vector<32x4xf32>
    %c184 = arith.constant 184 : index
    %c0_26 = arith.constant 0 : index
    %62 = vector.load %arg3[%c184, %c0_26] : memref<1488x128xf32, #tpu.memory_space<vmem>>, vector<32x4xf32>
    %63 = arith.addf %61, %62 : vector<32x4xf32>
    %c232 = arith.constant 232 : index
    %c0_27 = arith.constant 0 : index
    %64 = vector.load %arg3[%c232, %c0_27] : memref<1488x128xf32, #tpu.memory_space<vmem>>, vector<32x1xf32>
    %c264 = arith.constant 264 : index
    %c0_28 = arith.constant 0 : index
    %65 = vector.load %arg3[%c264, %c0_28] : memref<1488x128xf32, #tpu.memory_space<vmem>>, vector<32x1xf32>
    %cst_29 = arith.constant dense<0.000000e+00> : vector<4xf32>
    %66 = vector.multi_reduction <add>, %63, %cst_29 [0] : vector<32x4xf32> to vector<4xf32>
    %67 = vector.shape_cast %66 : vector<4xf32> to vector<1x4xf32>
    %cst_30 = arith.constant 3.200000e+01 : f32
    %68 = vector.broadcast %cst_30 : f32 to vector<1x4xf32>
    %69 = arith.divf %67, %68 : vector<1x4xf32>
    %70 = vector.broadcast %69 : vector<1x4xf32> to vector<32x4xf32>
    %71 = arith.subf %63, %70 : vector<32x4xf32>
    %72 = arith.mulf %71, %71 : vector<32x4xf32>
    %cst_31 = arith.constant dense<0.000000e+00> : vector<4xf32>
    %73 = vector.multi_reduction <add>, %72, %cst_31 [0] : vector<32x4xf32> to vector<4xf32>
    %74 = vector.shape_cast %73 : vector<4xf32> to vector<1x4xf32>
    %cst_32 = arith.constant 3.200000e+01 : f32
    %75 = vector.broadcast %cst_32 : f32 to vector<1x4xf32>
    %76 = arith.divf %74, %75 : vector<1x4xf32>
    %77 = vector.broadcast %69 : vector<1x4xf32> to vector<32x4xf32>
    %78 = arith.subf %63, %77 : vector<32x4xf32>
    %cst_33 = arith.constant 9.99999974E-6 : f32
    %79 = vector.broadcast %cst_33 : f32 to vector<1x4xf32>
    %80 = arith.addf %76, %79 : vector<1x4xf32>
    %81 = math.rsqrt %80 : vector<1x4xf32>
    %82 = vector.broadcast %81 : vector<1x4xf32> to vector<32x4xf32>
    %83 = arith.mulf %78, %82 : vector<32x4xf32>
    %84 = vector.broadcast %64 : vector<32x1xf32> to vector<32x4xf32>
    %85 = arith.mulf %83, %84 : vector<32x4xf32>
    %86 = vector.broadcast %65 : vector<32x1xf32> to vector<32x4xf32>
    %87 = arith.addf %85, %86 : vector<32x4xf32>
    %c0_34 = arith.constant 0 : index
    %c128 = arith.constant 128 : index
    %c0_35 = arith.constant 0 : index
    %88 = vector.load %arg2[%c0_34, %c128, %c0_35] : memref<1x176x128xf32, #tpu.memory_space<vmem>>, vector<1x1x40xf32>
    %89 = vector.shape_cast %88 : vector<1x1x40xf32> to vector<1x40xf32>
    %c296 = arith.constant 296 : index
    %c0_36 = arith.constant 0 : index
    %90 = vector.load %arg3[%c296, %c0_36] : memref<1488x128xf32, #tpu.memory_space<vmem>>, vector<40x128xf32>
    %cst_37 = arith.constant dense<0.000000e+00> : vector<1x128xf32>
    %91 = tpu.matmul %89, %90, %cst_37 {dimension_numbers = #tpu.dot_dimension_numbers<[1], [0], [0], [1], [0, 0, 1, 1], [], []>} : vector<1x40xf32>, vector<40x128xf32>, vector<1x128xf32> -> vector<1x128xf32>
    %c336 = arith.constant 336 : index
    %c0_38 = arith.constant 0 : index
    %92 = vector.load %arg3[%c336, %c0_38] : memref<1488x128xf32, #tpu.memory_space<vmem>>, vector<1x128xf32>
    %93 = arith.addf %91, %92 : vector<1x128xf32>
    %94 = vector.extract_strided_slice %93 {offsets = [0, 0], sizes = [1, 32], strides = [1, 1]} : vector<1x128xf32> to vector<1x32xf32>
    %95 = vector.extract_strided_slice %93 {offsets = [0, 32], sizes = [1, 32], strides = [1, 1]} : vector<1x128xf32> to vector<1x32xf32>
    %96 = vector.extract_strided_slice %93 {offsets = [0, 64], sizes = [1, 32], strides = [1, 1]} : vector<1x128xf32> to vector<1x32xf32>
    %97 = vector.extract_strided_slice %93 {offsets = [0, 96], sizes = [1, 32], strides = [1, 1]} : vector<1x128xf32> to vector<1x32xf32>
    %98 = tpu.concatenate %94, %95, %96, %97 in 0 : vector<1x32xf32>, vector<1x32xf32>, vector<1x32xf32>, vector<1x32xf32> -> vector<4x32xf32>
    %c504 = arith.constant 504 : index
    %c0_39 = arith.constant 0 : index
    %99 = vector.load %arg3[%c504, %c0_39] : memref<1488x128xf32, #tpu.memory_space<vmem>>, vector<1x32xf32>
    %c512 = arith.constant 512 : index
    %c0_40 = arith.constant 0 : index
    %100 = vector.load %arg3[%c512, %c0_40] : memref<1488x128xf32, #tpu.memory_space<vmem>>, vector<1x32xf32>
    %cst_41 = arith.constant dense<0.000000e+00> : vector<4xf32>
    %101 = vector.multi_reduction <add>, %98, %cst_41 [1] : vector<4x32xf32> to vector<4xf32>
    %102 = vector.shape_cast %101 : vector<4xf32> to vector<4x1xf32>
    %cst_42 = arith.constant 3.200000e+01 : f32
    %103 = vector.broadcast %cst_42 : f32 to vector<4x1xf32>
    %104 = arith.divf %102, %103 : vector<4x1xf32>
    %105 = vector.broadcast %104 : vector<4x1xf32> to vector<4x32xf32>
    %106 = arith.subf %98, %105 : vector<4x32xf32>
    %107 = arith.mulf %106, %106 : vector<4x32xf32>
    %cst_43 = arith.constant dense<0.000000e+00> : vector<4xf32>
    %108 = vector.multi_reduction <add>, %107, %cst_43 [1] : vector<4x32xf32> to vector<4xf32>
    %109 = vector.shape_cast %108 : vector<4xf32> to vector<4x1xf32>
    %cst_44 = arith.constant 3.200000e+01 : f32
    %110 = vector.broadcast %cst_44 : f32 to vector<4x1xf32>
    %111 = arith.divf %109, %110 : vector<4x1xf32>
    %112 = vector.broadcast %104 : vector<4x1xf32> to vector<4x32xf32>
    %113 = arith.subf %98, %112 : vector<4x32xf32>
    %cst_45 = arith.constant 9.99999974E-6 : f32
    %114 = vector.broadcast %cst_45 : f32 to vector<4x1xf32>
    %115 = arith.addf %111, %114 : vector<4x1xf32>
    %116 = math.rsqrt %115 : vector<4x1xf32>
    %117 = vector.broadcast %116 : vector<4x1xf32> to vector<4x32xf32>
    %118 = arith.mulf %113, %117 : vector<4x32xf32>
    %119 = vector.broadcast %99 : vector<1x32xf32> to vector<4x32xf32>
    %120 = arith.mulf %118, %119 : vector<4x32xf32>
    %121 = vector.broadcast %100 : vector<1x32xf32> to vector<4x32xf32>
    %122 = arith.addf %120, %121 : vector<4x32xf32>
    %c344 = arith.constant 344 : index
    %c0_46 = arith.constant 0 : index
    %123 = vector.load %arg3[%c344, %c0_46] : memref<1488x128xf32, #tpu.memory_space<vmem>>, vector<128x40xf32>
    %c0_47 = arith.constant 0 : index
    %c136 = arith.constant 136 : index
    %c0_48 = arith.constant 0 : index
    %124 = vector.load %arg2[%c0_47, %c136, %c0_48] : memref<1x176x128xf32, #tpu.memory_space<vmem>>, vector<1x40x1xf32>
    %125 = vector.shape_cast %124 : vector<1x40x1xf32> to vector<40x1xf32>
    %cst_49 = arith.constant dense<0.000000e+00> : vector<128x1xf32>
    %126 = tpu.matmul %123, %125, %cst_49 {dimension_numbers = #tpu.dot_dimension_numbers<[1], [0], [0], [1], [0, 0, 1, 1], [], []>} : vector<128x40xf32>, vector<40x1xf32>, vector<128x1xf32> -> vector<128x1xf32>
    %127 = vector.extract_strided_slice %126 {offsets = [0, 0], sizes = [32, 1], strides = [1, 1]} : vector<128x1xf32> to vector<32x1xf32>
    %128 = vector.extract_strided_slice %126 {offsets = [32, 0], sizes = [32, 1], strides = [1, 1]} : vector<128x1xf32> to vector<32x1xf32>
    %129 = vector.extract_strided_slice %126 {offsets = [64, 0], sizes = [32, 1], strides = [1, 1]} : vector<128x1xf32> to vector<32x1xf32>
    %130 = vector.extract_strided_slice %126 {offsets = [96, 0], sizes = [32, 1], strides = [1, 1]} : vector<128x1xf32> to vector<32x1xf32>
    %131 = tpu.concatenate %127, %128, %129, %130 in 1 : vector<32x1xf32>, vector<32x1xf32>, vector<32x1xf32>, vector<32x1xf32> -> vector<32x4xf32>
    %c472 = arith.constant 472 : index
    %c0_50 = arith.constant 0 : index
    %132 = vector.load %arg3[%c472, %c0_50] : memref<1488x128xf32, #tpu.memory_space<vmem>>, vector<32x4xf32>
    %133 = arith.addf %131, %132 : vector<32x4xf32>
    %c520 = arith.constant 520 : index
    %c0_51 = arith.constant 0 : index
    %134 = vector.load %arg3[%c520, %c0_51] : memref<1488x128xf32, #tpu.memory_space<vmem>>, vector<32x1xf32>
    %c552 = arith.constant 552 : index
    %c0_52 = arith.constant 0 : index
    %135 = vector.load %arg3[%c552, %c0_52] : memref<1488x128xf32, #tpu.memory_space<vmem>>, vector<32x1xf32>
    %cst_53 = arith.constant dense<0.000000e+00> : vector<4xf32>
    %136 = vector.multi_reduction <add>, %133, %cst_53 [0] : vector<32x4xf32> to vector<4xf32>
    %137 = vector.shape_cast %136 : vector<4xf32> to vector<1x4xf32>
    %cst_54 = arith.constant 3.200000e+01 : f32
    %138 = vector.broadcast %cst_54 : f32 to vector<1x4xf32>
    %139 = arith.divf %137, %138 : vector<1x4xf32>
    %140 = vector.broadcast %139 : vector<1x4xf32> to vector<32x4xf32>
    %141 = arith.subf %133, %140 : vector<32x4xf32>
    %142 = arith.mulf %141, %141 : vector<32x4xf32>
    %cst_55 = arith.constant dense<0.000000e+00> : vector<4xf32>
    %143 = vector.multi_reduction <add>, %142, %cst_55 [0] : vector<32x4xf32> to vector<4xf32>
    %144 = vector.shape_cast %143 : vector<4xf32> to vector<1x4xf32>
    %cst_56 = arith.constant 3.200000e+01 : f32
    %145 = vector.broadcast %cst_56 : f32 to vector<1x4xf32>
    %146 = arith.divf %144, %145 : vector<1x4xf32>
    %147 = vector.broadcast %139 : vector<1x4xf32> to vector<32x4xf32>
    %148 = arith.subf %133, %147 : vector<32x4xf32>
    %cst_57 = arith.constant 9.99999974E-6 : f32
    %149 = vector.broadcast %cst_57 : f32 to vector<1x4xf32>
    %150 = arith.addf %146, %149 : vector<1x4xf32>
    %151 = math.rsqrt %150 : vector<1x4xf32>
    %152 = vector.broadcast %151 : vector<1x4xf32> to vector<32x4xf32>
    %153 = arith.mulf %148, %152 : vector<32x4xf32>
    %154 = vector.broadcast %134 : vector<32x1xf32> to vector<32x4xf32>
    %155 = arith.mulf %153, %154 : vector<32x4xf32>
    %156 = vector.broadcast %135 : vector<32x1xf32> to vector<32x4xf32>
    %157 = arith.addf %155, %156 : vector<32x4xf32>
    %c584 = arith.constant 584 : index
    %c0_58 = arith.constant 0 : index
    %158 = vector.load %arg3[%c584, %c0_58] : memref<1488x128xf32, #tpu.memory_space<vmem>>, vector<32x4xf32>
    %c0_59 = arith.constant 0 : index
    %c0_60 = arith.constant 0 : index
    %c0_61 = arith.constant 0 : index
    %159 = vector.load %arg1[%c0_59, %c0_60, %c0_61] : memref<1x4x256xf32, #tpu.memory_space<vmem>>, vector<1x4x256xf32>
    %160 = vector.shape_cast %159 : vector<1x4x256xf32> to vector<4x256xf32>
    %cst_62 = arith.constant dense<0.000000e+00> : vector<32x256xf32>
    %161 = tpu.matmul %158, %160, %cst_62 {dimension_numbers = #tpu.dot_dimension_numbers<[1], [0], [0], [1], [0, 0, 1, 1], [], []>} : vector<32x4xf32>, vector<4x256xf32>, vector<32x256xf32> -> vector<32x256xf32>
    %c616 = arith.constant 616 : index
    %c0_63 = arith.constant 0 : index
    %162 = vector.load %arg3[%c616, %c0_63] : memref<1488x128xf32, #tpu.memory_space<vmem>>, vector<32x1xf32>
    %163 = vector.broadcast %162 : vector<32x1xf32> to vector<32x256xf32>
    %164 = arith.addf %161, %163 : vector<32x256xf32>
    %165 = vector.broadcast %17 : vector<32x1xf32> to vector<32x256xf32>
    %166 = arith.addf %164, %165 : vector<32x256xf32>
    %c0_64 = arith.constant 0 : index
    %c0_65 = arith.constant 0 : index
    %c0_66 = arith.constant 0 : index
    %167 = vector.load %arg2[%c0_64, %c0_65, %c0_66] : memref<1x176x128xf32, #tpu.memory_space<vmem>>, vector<1x8x32xf32>
    %168 = vector.shape_cast %167 : vector<1x8x32xf32> to vector<8x32xf32>
    %c0_67 = arith.constant 0 : index
    %c8 = arith.constant 8 : index
    %c0_68 = arith.constant 0 : index
    %169 = vector.load %arg2[%c0_67, %c8, %c0_68] : memref<1x176x128xf32, #tpu.memory_space<vmem>>, vector<1x32x8xf32>
    %170 = vector.shape_cast %169 : vector<1x32x8xf32> to vector<32x8xf32>
    %c776 = arith.constant 776 : index
    %c0_69 = arith.constant 0 : index
    %171 = vector.load %arg3[%c776, %c0_69] : memref<1488x128xf32, #tpu.memory_space<vmem>>, vector<32x1xf32>
    %c808 = arith.constant 808 : index
    %c0_70 = arith.constant 0 : index
    %172 = vector.load %arg3[%c808, %c0_70] : memref<1488x128xf32, #tpu.memory_space<vmem>>, vector<32x1xf32>
    %cst_71 = arith.constant dense<0.000000e+00> : vector<256xf32>
    %173 = vector.multi_reduction <add>, %166, %cst_71 [0] : vector<32x256xf32> to vector<256xf32>
    %174 = vector.shape_cast %173 : vector<256xf32> to vector<1x256xf32>
    %cst_72 = arith.constant 3.200000e+01 : f32
    %175 = vector.broadcast %cst_72 : f32 to vector<1x256xf32>
    %176 = arith.divf %174, %175 : vector<1x256xf32>
    %177 = vector.broadcast %176 : vector<1x256xf32> to vector<32x256xf32>
    %178 = arith.subf %166, %177 : vector<32x256xf32>
    %179 = arith.mulf %178, %178 : vector<32x256xf32>
    %cst_73 = arith.constant dense<0.000000e+00> : vector<256xf32>
    %180 = vector.multi_reduction <add>, %179, %cst_73 [0] : vector<32x256xf32> to vector<256xf32>
    %181 = vector.shape_cast %180 : vector<256xf32> to vector<1x256xf32>
    %cst_74 = arith.constant 3.200000e+01 : f32
    %182 = vector.broadcast %cst_74 : f32 to vector<1x256xf32>
    %183 = arith.divf %181, %182 : vector<1x256xf32>
    %184 = vector.broadcast %176 : vector<1x256xf32> to vector<32x256xf32>
    %185 = arith.subf %166, %184 : vector<32x256xf32>
    %cst_75 = arith.constant 9.99999974E-6 : f32
    %186 = vector.broadcast %cst_75 : f32 to vector<1x256xf32>
    %187 = arith.addf %183, %186 : vector<1x256xf32>
    %188 = math.rsqrt %187 : vector<1x256xf32>
    %189 = vector.broadcast %188 : vector<1x256xf32> to vector<32x256xf32>
    %190 = arith.mulf %185, %189 : vector<32x256xf32>
    %191 = vector.broadcast %171 : vector<32x1xf32> to vector<32x256xf32>
    %192 = arith.mulf %190, %191 : vector<32x256xf32>
    %193 = vector.broadcast %172 : vector<32x1xf32> to vector<32x256xf32>
    %194 = arith.addf %192, %193 : vector<32x256xf32>
    %c840 = arith.constant 840 : index
    %c0_76 = arith.constant 0 : index
    %195 = vector.load %arg3[%c840, %c0_76] : memref<1488x128xf32, #tpu.memory_space<vmem>>, vector<32x32xf32>
    %cst_77 = arith.constant dense<0.000000e+00> : vector<32x256xf32>
    %196 = tpu.matmul %195, %194, %cst_77 {dimension_numbers = #tpu.dot_dimension_numbers<[1], [0], [0], [1], [0, 0, 1, 1], [], []>} : vector<32x32xf32>, vector<32x256xf32>, vector<32x256xf32> -> vector<32x256xf32>
    %c872 = arith.constant 872 : index
    %c0_78 = arith.constant 0 : index
    %197 = vector.load %arg3[%c872, %c0_78] : memref<1488x128xf32, #tpu.memory_space<vmem>>, vector<32x1xf32>
    %198 = vector.broadcast %197 : vector<32x1xf32> to vector<32x256xf32>
    %199 = arith.addf %196, %198 : vector<32x256xf32>
    %c904 = arith.constant 904 : index
    %c0_79 = arith.constant 0 : index
    %200 = vector.load %arg3[%c904, %c0_79] : memref<1488x128xf32, #tpu.memory_space<vmem>>, vector<32x32xf32>
    %cst_80 = arith.constant dense<0.000000e+00> : vector<8x32xf32>
    %201 = tpu.matmul %168, %200, %cst_80 {dimension_numbers = #tpu.dot_dimension_numbers<[1], [0], [0], [1], [0, 0, 1, 1], [], []>} : vector<8x32xf32>, vector<32x32xf32>, vector<8x32xf32> -> vector<8x32xf32>
    %c936 = arith.constant 936 : index
    %c0_81 = arith.constant 0 : index
    %202 = vector.load %arg3[%c936, %c0_81] : memref<1488x128xf32, #tpu.memory_space<vmem>>, vector<1x32xf32>
    %203 = vector.broadcast %202 : vector<1x32xf32> to vector<8x32xf32>
    %204 = arith.addf %201, %203 : vector<8x32xf32>
    %c944 = arith.constant 944 : index
    %c0_82 = arith.constant 0 : index
    %205 = vector.load %arg3[%c944, %c0_82] : memref<1488x128xf32, #tpu.memory_space<vmem>>, vector<32x32xf32>
    %cst_83 = arith.constant dense<0.000000e+00> : vector<32x8xf32>
    %206 = tpu.matmul %205, %170, %cst_83 {dimension_numbers = #tpu.dot_dimension_numbers<[1], [0], [0], [1], [0, 0, 1, 1], [], []>} : vector<32x32xf32>, vector<32x8xf32>, vector<32x8xf32> -> vector<32x8xf32>
    %c976 = arith.constant 976 : index
    %c0_84 = arith.constant 0 : index
    %207 = vector.load %arg3[%c976, %c0_84] : memref<1488x128xf32, #tpu.memory_space<vmem>>, vector<32x1xf32>
    %208 = vector.broadcast %207 : vector<32x1xf32> to vector<32x8xf32>
    %209 = arith.addf %206, %208 : vector<32x8xf32>
    %210 = vector.extract_strided_slice %199 {offsets = [0, 0], sizes = [8, 256], strides = [1, 1]} : vector<32x256xf32> to vector<8x256xf32>
    %211 = vector.extract_strided_slice %204 {offsets = [0, 0], sizes = [8, 8], strides = [1, 1]} : vector<8x32xf32> to vector<8x8xf32>
    %212 = vector.extract_strided_slice %209 {offsets = [0, 0], sizes = [8, 8], strides = [1, 1]} : vector<32x8xf32> to vector<8x8xf32>
    %cst_85 = arith.constant dense<0.000000e+00> : vector<8x256xf32>
    %213 = tpu.matmul %211, %210, %cst_85 {dimension_numbers = #tpu.dot_dimension_numbers<[1], [0], [0], [1], [0, 0, 1, 1], [], []>} : vector<8x8xf32>, vector<8x256xf32>, vector<8x256xf32> -> vector<8x256xf32>
    %cst_86 = arith.constant 0.353553385 : f32
    %214 = vector.broadcast %cst_86 : f32 to vector<8x256xf32>
    %215 = arith.mulf %213, %214 : vector<8x256xf32>
    %cst_87 = arith.constant dense<0xFF800000> : vector<256xf32>
    %216 = vector.multi_reduction <maximumf>, %215, %cst_87 [0] : vector<8x256xf32> to vector<256xf32>
    %217 = vector.shape_cast %216 : vector<256xf32> to vector<1x256xf32>
    %218 = vector.broadcast %217 : vector<1x256xf32> to vector<8x256xf32>
    %219 = arith.subf %215, %218 : vector<8x256xf32>
    %220 = math.exp %219 : vector<8x256xf32>
    %cst_88 = arith.constant dense<0.000000e+00> : vector<256xf32>
    %221 = vector.multi_reduction <add>, %220, %cst_88 [0] : vector<8x256xf32> to vector<256xf32>
    %222 = vector.shape_cast %221 : vector<256xf32> to vector<1x256xf32>
    %223 = tpu.reciprocal %222 {approx = true} : vector<1x256xf32> -> vector<1x256xf32>
    %224 = vector.broadcast %223 : vector<1x256xf32> to vector<8x256xf32>
    %225 = arith.mulf %220, %224 : vector<8x256xf32>
    %cst_89 = arith.constant dense<0.000000e+00> : vector<8x256xf32>
    %226 = tpu.matmul %212, %225, %cst_89 {dimension_numbers = #tpu.dot_dimension_numbers<[1], [0], [0], [1], [0, 0, 1, 1], [], []>} : vector<8x8xf32>, vector<8x256xf32>, vector<8x256xf32> -> vector<8x256xf32>
    %227 = vector.extract_strided_slice %199 {offsets = [8, 0], sizes = [8, 256], strides = [1, 1]} : vector<32x256xf32> to vector<8x256xf32>
    %228 = vector.extract_strided_slice %204 {offsets = [0, 8], sizes = [8, 8], strides = [1, 1]} : vector<8x32xf32> to vector<8x8xf32>
    %229 = vector.extract_strided_slice %209 {offsets = [8, 0], sizes = [8, 8], strides = [1, 1]} : vector<32x8xf32> to vector<8x8xf32>
    %cst_90 = arith.constant dense<0.000000e+00> : vector<8x256xf32>
    %230 = tpu.matmul %228, %227, %cst_90 {dimension_numbers = #tpu.dot_dimension_numbers<[1], [0], [0], [1], [0, 0, 1, 1], [], []>} : vector<8x8xf32>, vector<8x256xf32>, vector<8x256xf32> -> vector<8x256xf32>
    %cst_91 = arith.constant 0.353553385 : f32
    %231 = vector.broadcast %cst_91 : f32 to vector<8x256xf32>
    %232 = arith.mulf %230, %231 : vector<8x256xf32>
    %cst_92 = arith.constant dense<0xFF800000> : vector<256xf32>
    %233 = vector.multi_reduction <maximumf>, %232, %cst_92 [0] : vector<8x256xf32> to vector<256xf32>
    %234 = vector.shape_cast %233 : vector<256xf32> to vector<1x256xf32>
    %235 = vector.broadcast %234 : vector<1x256xf32> to vector<8x256xf32>
    %236 = arith.subf %232, %235 : vector<8x256xf32>
    %237 = math.exp %236 : vector<8x256xf32>
    %cst_93 = arith.constant dense<0.000000e+00> : vector<256xf32>
    %238 = vector.multi_reduction <add>, %237, %cst_93 [0] : vector<8x256xf32> to vector<256xf32>
    %239 = vector.shape_cast %238 : vector<256xf32> to vector<1x256xf32>
    %240 = tpu.reciprocal %239 {approx = true} : vector<1x256xf32> -> vector<1x256xf32>
    %241 = vector.broadcast %240 : vector<1x256xf32> to vector<8x256xf32>
    %242 = arith.mulf %237, %241 : vector<8x256xf32>
    %cst_94 = arith.constant dense<0.000000e+00> : vector<8x256xf32>
    %243 = tpu.matmul %229, %242, %cst_94 {dimension_numbers = #tpu.dot_dimension_numbers<[1], [0], [0], [1], [0, 0, 1, 1], [], []>} : vector<8x8xf32>, vector<8x256xf32>, vector<8x256xf32> -> vector<8x256xf32>
    %244 = vector.extract_strided_slice %199 {offsets = [16, 0], sizes = [8, 256], strides = [1, 1]} : vector<32x256xf32> to vector<8x256xf32>
    %245 = vector.extract_strided_slice %204 {offsets = [0, 16], sizes = [8, 8], strides = [1, 1]} : vector<8x32xf32> to vector<8x8xf32>
    %246 = vector.extract_strided_slice %209 {offsets = [16, 0], sizes = [8, 8], strides = [1, 1]} : vector<32x8xf32> to vector<8x8xf32>
    %cst_95 = arith.constant dense<0.000000e+00> : vector<8x256xf32>
    %247 = tpu.matmul %245, %244, %cst_95 {dimension_numbers = #tpu.dot_dimension_numbers<[1], [0], [0], [1], [0, 0, 1, 1], [], []>} : vector<8x8xf32>, vector<8x256xf32>, vector<8x256xf32> -> vector<8x256xf32>
    %cst_96 = arith.constant 0.353553385 : f32
    %248 = vector.broadcast %cst_96 : f32 to vector<8x256xf32>
    %249 = arith.mulf %247, %248 : vector<8x256xf32>
    %cst_97 = arith.constant dense<0xFF800000> : vector<256xf32>
    %250 = vector.multi_reduction <maximumf>, %249, %cst_97 [0] : vector<8x256xf32> to vector<256xf32>
    %251 = vector.shape_cast %250 : vector<256xf32> to vector<1x256xf32>
    %252 = vector.broadcast %251 : vector<1x256xf32> to vector<8x256xf32>
    %253 = arith.subf %249, %252 : vector<8x256xf32>
    %254 = math.exp %253 : vector<8x256xf32>
    %cst_98 = arith.constant dense<0.000000e+00> : vector<256xf32>
    %255 = vector.multi_reduction <add>, %254, %cst_98 [0] : vector<8x256xf32> to vector<256xf32>
    %256 = vector.shape_cast %255 : vector<256xf32> to vector<1x256xf32>
    %257 = tpu.reciprocal %256 {approx = true} : vector<1x256xf32> -> vector<1x256xf32>
    %258 = vector.broadcast %257 : vector<1x256xf32> to vector<8x256xf32>
    %259 = arith.mulf %254, %258 : vector<8x256xf32>
    %cst_99 = arith.constant dense<0.000000e+00> : vector<8x256xf32>
    %260 = tpu.matmul %246, %259, %cst_99 {dimension_numbers = #tpu.dot_dimension_numbers<[1], [0], [0], [1], [0, 0, 1, 1], [], []>} : vector<8x8xf32>, vector<8x256xf32>, vector<8x256xf32> -> vector<8x256xf32>
    %261 = vector.extract_strided_slice %199 {offsets = [24, 0], sizes = [8, 256], strides = [1, 1]} : vector<32x256xf32> to vector<8x256xf32>
    %262 = vector.extract_strided_slice %204 {offsets = [0, 24], sizes = [8, 8], strides = [1, 1]} : vector<8x32xf32> to vector<8x8xf32>
    %263 = vector.extract_strided_slice %209 {offsets = [24, 0], sizes = [8, 8], strides = [1, 1]} : vector<32x8xf32> to vector<8x8xf32>
    %cst_100 = arith.constant dense<0.000000e+00> : vector<8x256xf32>
    %264 = tpu.matmul %262, %261, %cst_100 {dimension_numbers = #tpu.dot_dimension_numbers<[1], [0], [0], [1], [0, 0, 1, 1], [], []>} : vector<8x8xf32>, vector<8x256xf32>, vector<8x256xf32> -> vector<8x256xf32>
    %cst_101 = arith.constant 0.353553385 : f32
    %265 = vector.broadcast %cst_101 : f32 to vector<8x256xf32>
    %266 = arith.mulf %264, %265 : vector<8x256xf32>
    %cst_102 = arith.constant dense<0xFF800000> : vector<256xf32>
    %267 = vector.multi_reduction <maximumf>, %266, %cst_102 [0] : vector<8x256xf32> to vector<256xf32>
    %268 = vector.shape_cast %267 : vector<256xf32> to vector<1x256xf32>
    %269 = vector.broadcast %268 : vector<1x256xf32> to vector<8x256xf32>
    %270 = arith.subf %266, %269 : vector<8x256xf32>
    %271 = math.exp %270 : vector<8x256xf32>
    %cst_103 = arith.constant dense<0.000000e+00> : vector<256xf32>
    %272 = vector.multi_reduction <add>, %271, %cst_103 [0] : vector<8x256xf32> to vector<256xf32>
    %273 = vector.shape_cast %272 : vector<256xf32> to vector<1x256xf32>
    %274 = tpu.reciprocal %273 {approx = true} : vector<1x256xf32> -> vector<1x256xf32>
    %275 = vector.broadcast %274 : vector<1x256xf32> to vector<8x256xf32>
    %276 = arith.mulf %271, %275 : vector<8x256xf32>
    %cst_104 = arith.constant dense<0.000000e+00> : vector<8x256xf32>
    %277 = tpu.matmul %263, %276, %cst_104 {dimension_numbers = #tpu.dot_dimension_numbers<[1], [0], [0], [1], [0, 0, 1, 1], [], []>} : vector<8x8xf32>, vector<8x256xf32>, vector<8x256xf32> -> vector<8x256xf32>
    %278 = tpu.concatenate %226, %243, %260, %277 in 0 : vector<8x256xf32>, vector<8x256xf32>, vector<8x256xf32>, vector<8x256xf32> -> vector<32x256xf32>
    %c1072 = arith.constant 1072 : index
    %c0_105 = arith.constant 0 : index
    %279 = vector.load %arg3[%c1072, %c0_105] : memref<1488x128xf32, #tpu.memory_space<vmem>>, vector<32x32xf32>
    %cst_106 = arith.constant dense<0.000000e+00> : vector<4x32xf32>
    %280 = tpu.matmul %52, %279, %cst_106 {dimension_numbers = #tpu.dot_dimension_numbers<[1], [0], [0], [1], [0, 0, 1, 1], [], []>} : vector<4x32xf32>, vector<32x32xf32>, vector<4x32xf32> -> vector<4x32xf32>
    %c1104 = arith.constant 1104 : index
    %c0_107 = arith.constant 0 : index
    %281 = vector.load %arg3[%c1104, %c0_107] : memref<1488x128xf32, #tpu.memory_space<vmem>>, vector<1x32xf32>
    %282 = vector.broadcast %281 : vector<1x32xf32> to vector<4x32xf32>
    %283 = arith.addf %280, %282 : vector<4x32xf32>
    %c1112 = arith.constant 1112 : index
    %c0_108 = arith.constant 0 : index
    %284 = vector.load %arg3[%c1112, %c0_108] : memref<1488x128xf32, #tpu.memory_space<vmem>>, vector<32x32xf32>
    %cst_109 = arith.constant dense<0.000000e+00> : vector<32x4xf32>
    %285 = tpu.matmul %284, %87, %cst_109 {dimension_numbers = #tpu.dot_dimension_numbers<[1], [0], [0], [1], [0, 0, 1, 1], [], []>} : vector<32x32xf32>, vector<32x4xf32>, vector<32x4xf32> -> vector<32x4xf32>
    %c1144 = arith.constant 1144 : index
    %c0_110 = arith.constant 0 : index
    %286 = vector.load %arg3[%c1144, %c0_110] : memref<1488x128xf32, #tpu.memory_space<vmem>>, vector<32x1xf32>
    %287 = vector.broadcast %286 : vector<32x1xf32> to vector<32x4xf32>
    %288 = arith.addf %285, %287 : vector<32x4xf32>
    %289 = vector.extract_strided_slice %199 {offsets = [0, 0], sizes = [8, 256], strides = [1, 1]} : vector<32x256xf32> to vector<8x256xf32>
    %290 = vector.extract_strided_slice %283 {offsets = [0, 0], sizes = [4, 8], strides = [1, 1]} : vector<4x32xf32> to vector<4x8xf32>
    %291 = vector.extract_strided_slice %288 {offsets = [0, 0], sizes = [8, 4], strides = [1, 1]} : vector<32x4xf32> to vector<8x4xf32>
    %cst_111 = arith.constant dense<0.000000e+00> : vector<4x256xf32>
    %292 = tpu.matmul %290, %289, %cst_111 {dimension_numbers = #tpu.dot_dimension_numbers<[1], [0], [0], [1], [0, 0, 1, 1], [], []>} : vector<4x8xf32>, vector<8x256xf32>, vector<4x256xf32> -> vector<4x256xf32>
    %cst_112 = arith.constant 0.353553385 : f32
    %293 = vector.broadcast %cst_112 : f32 to vector<4x256xf32>
    %294 = arith.mulf %292, %293 : vector<4x256xf32>
    %cst_113 = arith.constant dense<0xFF800000> : vector<256xf32>
    %295 = vector.multi_reduction <maximumf>, %294, %cst_113 [0] : vector<4x256xf32> to vector<256xf32>
    %296 = vector.shape_cast %295 : vector<256xf32> to vector<1x256xf32>
    %297 = vector.broadcast %296 : vector<1x256xf32> to vector<4x256xf32>
    %298 = arith.subf %294, %297 : vector<4x256xf32>
    %299 = math.exp %298 : vector<4x256xf32>
    %cst_114 = arith.constant dense<0.000000e+00> : vector<256xf32>
    %300 = vector.multi_reduction <add>, %299, %cst_114 [0] : vector<4x256xf32> to vector<256xf32>
    %301 = vector.shape_cast %300 : vector<256xf32> to vector<1x256xf32>
    %302 = tpu.reciprocal %301 {approx = true} : vector<1x256xf32> -> vector<1x256xf32>
    %303 = vector.broadcast %302 : vector<1x256xf32> to vector<4x256xf32>
    %304 = arith.mulf %299, %303 : vector<4x256xf32>
    %cst_115 = arith.constant dense<0.000000e+00> : vector<8x256xf32>
    %305 = tpu.matmul %291, %304, %cst_115 {dimension_numbers = #tpu.dot_dimension_numbers<[1], [0], [0], [1], [0, 0, 1, 1], [], []>} : vector<8x4xf32>, vector<4x256xf32>, vector<8x256xf32> -> vector<8x256xf32>
    %306 = vector.extract_strided_slice %199 {offsets = [8, 0], sizes = [8, 256], strides = [1, 1]} : vector<32x256xf32> to vector<8x256xf32>
    %307 = vector.extract_strided_slice %283 {offsets = [0, 8], sizes = [4, 8], strides = [1, 1]} : vector<4x32xf32> to vector<4x8xf32>
    %308 = vector.extract_strided_slice %288 {offsets = [8, 0], sizes = [8, 4], strides = [1, 1]} : vector<32x4xf32> to vector<8x4xf32>
    %cst_116 = arith.constant dense<0.000000e+00> : vector<4x256xf32>
    %309 = tpu.matmul %307, %306, %cst_116 {dimension_numbers = #tpu.dot_dimension_numbers<[1], [0], [0], [1], [0, 0, 1, 1], [], []>} : vector<4x8xf32>, vector<8x256xf32>, vector<4x256xf32> -> vector<4x256xf32>
    %cst_117 = arith.constant 0.353553385 : f32
    %310 = vector.broadcast %cst_117 : f32 to vector<4x256xf32>
    %311 = arith.mulf %309, %310 : vector<4x256xf32>
    %cst_118 = arith.constant dense<0xFF800000> : vector<256xf32>
    %312 = vector.multi_reduction <maximumf>, %311, %cst_118 [0] : vector<4x256xf32> to vector<256xf32>
    %313 = vector.shape_cast %312 : vector<256xf32> to vector<1x256xf32>
    %314 = vector.broadcast %313 : vector<1x256xf32> to vector<4x256xf32>
    %315 = arith.subf %311, %314 : vector<4x256xf32>
    %316 = math.exp %315 : vector<4x256xf32>
    %cst_119 = arith.constant dense<0.000000e+00> : vector<256xf32>
    %317 = vector.multi_reduction <add>, %316, %cst_119 [0] : vector<4x256xf32> to vector<256xf32>
    %318 = vector.shape_cast %317 : vector<256xf32> to vector<1x256xf32>
    %319 = tpu.reciprocal %318 {approx = true} : vector<1x256xf32> -> vector<1x256xf32>
    %320 = vector.broadcast %319 : vector<1x256xf32> to vector<4x256xf32>
    %321 = arith.mulf %316, %320 : vector<4x256xf32>
    %cst_120 = arith.constant dense<0.000000e+00> : vector<8x256xf32>
    %322 = tpu.matmul %308, %321, %cst_120 {dimension_numbers = #tpu.dot_dimension_numbers<[1], [0], [0], [1], [0, 0, 1, 1], [], []>} : vector<8x4xf32>, vector<4x256xf32>, vector<8x256xf32> -> vector<8x256xf32>
    %323 = vector.extract_strided_slice %199 {offsets = [16, 0], sizes = [8, 256], strides = [1, 1]} : vector<32x256xf32> to vector<8x256xf32>
    %324 = vector.extract_strided_slice %283 {offsets = [0, 16], sizes = [4, 8], strides = [1, 1]} : vector<4x32xf32> to vector<4x8xf32>
    %325 = vector.extract_strided_slice %288 {offsets = [16, 0], sizes = [8, 4], strides = [1, 1]} : vector<32x4xf32> to vector<8x4xf32>
    %cst_121 = arith.constant dense<0.000000e+00> : vector<4x256xf32>
    %326 = tpu.matmul %324, %323, %cst_121 {dimension_numbers = #tpu.dot_dimension_numbers<[1], [0], [0], [1], [0, 0, 1, 1], [], []>} : vector<4x8xf32>, vector<8x256xf32>, vector<4x256xf32> -> vector<4x256xf32>
    %cst_122 = arith.constant 0.353553385 : f32
    %327 = vector.broadcast %cst_122 : f32 to vector<4x256xf32>
    %328 = arith.mulf %326, %327 : vector<4x256xf32>
    %cst_123 = arith.constant dense<0xFF800000> : vector<256xf32>
    %329 = vector.multi_reduction <maximumf>, %328, %cst_123 [0] : vector<4x256xf32> to vector<256xf32>
    %330 = vector.shape_cast %329 : vector<256xf32> to vector<1x256xf32>
    %331 = vector.broadcast %330 : vector<1x256xf32> to vector<4x256xf32>
    %332 = arith.subf %328, %331 : vector<4x256xf32>
    %333 = math.exp %332 : vector<4x256xf32>
    %cst_124 = arith.constant dense<0.000000e+00> : vector<256xf32>
    %334 = vector.multi_reduction <add>, %333, %cst_124 [0] : vector<4x256xf32> to vector<256xf32>
    %335 = vector.shape_cast %334 : vector<256xf32> to vector<1x256xf32>
    %336 = tpu.reciprocal %335 {approx = true} : vector<1x256xf32> -> vector<1x256xf32>
    %337 = vector.broadcast %336 : vector<1x256xf32> to vector<4x256xf32>
    %338 = arith.mulf %333, %337 : vector<4x256xf32>
    %cst_125 = arith.constant dense<0.000000e+00> : vector<8x256xf32>
    %339 = tpu.matmul %325, %338, %cst_125 {dimension_numbers = #tpu.dot_dimension_numbers<[1], [0], [0], [1], [0, 0, 1, 1], [], []>} : vector<8x4xf32>, vector<4x256xf32>, vector<8x256xf32> -> vector<8x256xf32>
    %340 = vector.extract_strided_slice %199 {offsets = [24, 0], sizes = [8, 256], strides = [1, 1]} : vector<32x256xf32> to vector<8x256xf32>
    %341 = vector.extract_strided_slice %283 {offsets = [0, 24], sizes = [4, 8], strides = [1, 1]} : vector<4x32xf32> to vector<4x8xf32>
    %342 = vector.extract_strided_slice %288 {offsets = [24, 0], sizes = [8, 4], strides = [1, 1]} : vector<32x4xf32> to vector<8x4xf32>
    %cst_126 = arith.constant dense<0.000000e+00> : vector<4x256xf32>
    %343 = tpu.matmul %341, %340, %cst_126 {dimension_numbers = #tpu.dot_dimension_numbers<[1], [0], [0], [1], [0, 0, 1, 1], [], []>} : vector<4x8xf32>, vector<8x256xf32>, vector<4x256xf32> -> vector<4x256xf32>
    %cst_127 = arith.constant 0.353553385 : f32
    %344 = vector.broadcast %cst_127 : f32 to vector<4x256xf32>
    %345 = arith.mulf %343, %344 : vector<4x256xf32>
    %cst_128 = arith.constant dense<0xFF800000> : vector<256xf32>
    %346 = vector.multi_reduction <maximumf>, %345, %cst_128 [0] : vector<4x256xf32> to vector<256xf32>
    %347 = vector.shape_cast %346 : vector<256xf32> to vector<1x256xf32>
    %348 = vector.broadcast %347 : vector<1x256xf32> to vector<4x256xf32>
    %349 = arith.subf %345, %348 : vector<4x256xf32>
    %350 = math.exp %349 : vector<4x256xf32>
    %cst_129 = arith.constant dense<0.000000e+00> : vector<256xf32>
    %351 = vector.multi_reduction <add>, %350, %cst_129 [0] : vector<4x256xf32> to vector<256xf32>
    %352 = vector.shape_cast %351 : vector<256xf32> to vector<1x256xf32>
    %353 = tpu.reciprocal %352 {approx = true} : vector<1x256xf32> -> vector<1x256xf32>
    %354 = vector.broadcast %353 : vector<1x256xf32> to vector<4x256xf32>
    %355 = arith.mulf %350, %354 : vector<4x256xf32>
    %cst_130 = arith.constant dense<0.000000e+00> : vector<8x256xf32>
    %356 = tpu.matmul %342, %355, %cst_130 {dimension_numbers = #tpu.dot_dimension_numbers<[1], [0], [0], [1], [0, 0, 1, 1], [], []>} : vector<8x4xf32>, vector<4x256xf32>, vector<8x256xf32> -> vector<8x256xf32>
    %357 = tpu.concatenate %305, %322, %339, %356 in 0 : vector<8x256xf32>, vector<8x256xf32>, vector<8x256xf32>, vector<8x256xf32> -> vector<32x256xf32>
    %cst_131 = arith.constant 1.000000e+00 : f32
    %358 = vector.broadcast %cst_131 : f32 to vector<32x256xf32>
    %359 = arith.mulf %358, %357 : vector<32x256xf32>
    %360 = arith.addf %278, %359 : vector<32x256xf32>
    %c1008 = arith.constant 1008 : index
    %c0_132 = arith.constant 0 : index
    %361 = vector.load %arg3[%c1008, %c0_132] : memref<1488x128xf32, #tpu.memory_space<vmem>>, vector<32x32xf32>
    %cst_133 = arith.constant dense<0.000000e+00> : vector<32x256xf32>
    %362 = tpu.matmul %361, %360, %cst_133 {dimension_numbers = #tpu.dot_dimension_numbers<[1], [0], [0], [1], [0, 0, 1, 1], [], []>} : vector<32x32xf32>, vector<32x256xf32>, vector<32x256xf32> -> vector<32x256xf32>
    %363 = arith.addf %166, %362 : vector<32x256xf32>
    %c1040 = arith.constant 1040 : index
    %c0_134 = arith.constant 0 : index
    %364 = vector.load %arg3[%c1040, %c0_134] : memref<1488x128xf32, #tpu.memory_space<vmem>>, vector<32x1xf32>
    %365 = vector.broadcast %364 : vector<32x1xf32> to vector<32x256xf32>
    %366 = arith.addf %363, %365 : vector<32x256xf32>
    %c1176 = arith.constant 1176 : index
    %c0_135 = arith.constant 0 : index
    %367 = vector.load %arg3[%c1176, %c0_135] : memref<1488x128xf32, #tpu.memory_space<vmem>>, vector<32x1xf32>
    %c1208 = arith.constant 1208 : index
    %c0_136 = arith.constant 0 : index
    %368 = vector.load %arg3[%c1208, %c0_136] : memref<1488x128xf32, #tpu.memory_space<vmem>>, vector<32x1xf32>
    %cst_137 = arith.constant dense<0.000000e+00> : vector<256xf32>
    %369 = vector.multi_reduction <add>, %366, %cst_137 [0] : vector<32x256xf32> to vector<256xf32>
    %370 = vector.shape_cast %369 : vector<256xf32> to vector<1x256xf32>
    %cst_138 = arith.constant 3.200000e+01 : f32
    %371 = vector.broadcast %cst_138 : f32 to vector<1x256xf32>
    %372 = arith.divf %370, %371 : vector<1x256xf32>
    %373 = vector.broadcast %372 : vector<1x256xf32> to vector<32x256xf32>
    %374 = arith.subf %366, %373 : vector<32x256xf32>
    %375 = arith.mulf %374, %374 : vector<32x256xf32>
    %cst_139 = arith.constant dense<0.000000e+00> : vector<256xf32>
    %376 = vector.multi_reduction <add>, %375, %cst_139 [0] : vector<32x256xf32> to vector<256xf32>
    %377 = vector.shape_cast %376 : vector<256xf32> to vector<1x256xf32>
    %cst_140 = arith.constant 3.200000e+01 : f32
    %378 = vector.broadcast %cst_140 : f32 to vector<1x256xf32>
    %379 = arith.divf %377, %378 : vector<1x256xf32>
    %380 = vector.broadcast %372 : vector<1x256xf32> to vector<32x256xf32>
    %381 = arith.subf %366, %380 : vector<32x256xf32>
    %cst_141 = arith.constant 9.99999974E-6 : f32
    %382 = vector.broadcast %cst_141 : f32 to vector<1x256xf32>
    %383 = arith.addf %379, %382 : vector<1x256xf32>
    %384 = math.rsqrt %383 : vector<1x256xf32>
    %385 = vector.broadcast %384 : vector<1x256xf32> to vector<32x256xf32>
    %386 = arith.mulf %381, %385 : vector<32x256xf32>
    %387 = vector.broadcast %367 : vector<32x1xf32> to vector<32x256xf32>
    %388 = arith.mulf %386, %387 : vector<32x256xf32>
    %389 = vector.broadcast %368 : vector<32x1xf32> to vector<32x256xf32>
    %390 = arith.addf %388, %389 : vector<32x256xf32>
    %c1240 = arith.constant 1240 : index
    %c0_142 = arith.constant 0 : index
    %391 = vector.load %arg3[%c1240, %c0_142] : memref<1488x128xf32, #tpu.memory_space<vmem>>, vector<32x32xf32>
    %cst_143 = arith.constant dense<0.000000e+00> : vector<32x256xf32>
    %392 = tpu.matmul %391, %390, %cst_143 {dimension_numbers = #tpu.dot_dimension_numbers<[1], [0], [0], [1], [0, 0, 1, 1], [], []>} : vector<32x32xf32>, vector<32x256xf32>, vector<32x256xf32> -> vector<32x256xf32>
    %c1272 = arith.constant 1272 : index
    %c0_144 = arith.constant 0 : index
    %393 = vector.load %arg3[%c1272, %c0_144] : memref<1488x128xf32, #tpu.memory_space<vmem>>, vector<32x1xf32>
    %394 = vector.broadcast %393 : vector<32x1xf32> to vector<32x256xf32>
    %395 = arith.addf %392, %394 : vector<32x256xf32>
    %c1304 = arith.constant 1304 : index
    %c0_145 = arith.constant 0 : index
    %396 = vector.load %arg3[%c1304, %c0_145] : memref<1488x128xf32, #tpu.memory_space<vmem>>, vector<32x32xf32>
    %cst_146 = arith.constant dense<0.000000e+00> : vector<4x32xf32>
    %397 = tpu.matmul %122, %396, %cst_146 {dimension_numbers = #tpu.dot_dimension_numbers<[1], [0], [0], [1], [0, 0, 1, 1], [], []>} : vector<4x32xf32>, vector<32x32xf32>, vector<4x32xf32> -> vector<4x32xf32>
    %c1336 = arith.constant 1336 : index
    %c0_147 = arith.constant 0 : index
    %398 = vector.load %arg3[%c1336, %c0_147] : memref<1488x128xf32, #tpu.memory_space<vmem>>, vector<1x32xf32>
    %399 = vector.broadcast %398 : vector<1x32xf32> to vector<4x32xf32>
    %400 = arith.addf %397, %399 : vector<4x32xf32>
    %c1344 = arith.constant 1344 : index
    %c0_148 = arith.constant 0 : index
    %401 = vector.load %arg3[%c1344, %c0_148] : memref<1488x128xf32, #tpu.memory_space<vmem>>, vector<32x32xf32>
    %cst_149 = arith.constant dense<0.000000e+00> : vector<32x4xf32>
    %402 = tpu.matmul %401, %157, %cst_149 {dimension_numbers = #tpu.dot_dimension_numbers<[1], [0], [0], [1], [0, 0, 1, 1], [], []>} : vector<32x32xf32>, vector<32x4xf32>, vector<32x4xf32> -> vector<32x4xf32>
    %c1376 = arith.constant 1376 : index
    %c0_150 = arith.constant 0 : index
    %403 = vector.load %arg3[%c1376, %c0_150] : memref<1488x128xf32, #tpu.memory_space<vmem>>, vector<32x1xf32>
    %404 = vector.broadcast %403 : vector<32x1xf32> to vector<32x4xf32>
    %405 = arith.addf %402, %404 : vector<32x4xf32>
    %406 = vector.extract_strided_slice %395 {offsets = [0, 0], sizes = [8, 256], strides = [1, 1]} : vector<32x256xf32> to vector<8x256xf32>
    %407 = vector.extract_strided_slice %400 {offsets = [0, 0], sizes = [4, 8], strides = [1, 1]} : vector<4x32xf32> to vector<4x8xf32>
    %408 = vector.extract_strided_slice %405 {offsets = [0, 0], sizes = [8, 4], strides = [1, 1]} : vector<32x4xf32> to vector<8x4xf32>
    %cst_151 = arith.constant dense<0.000000e+00> : vector<4x256xf32>
    %409 = tpu.matmul %407, %406, %cst_151 {dimension_numbers = #tpu.dot_dimension_numbers<[1], [0], [0], [1], [0, 0, 1, 1], [], []>} : vector<4x8xf32>, vector<8x256xf32>, vector<4x256xf32> -> vector<4x256xf32>
    %cst_152 = arith.constant 0.353553385 : f32
    %410 = vector.broadcast %cst_152 : f32 to vector<4x256xf32>
    %411 = arith.mulf %409, %410 : vector<4x256xf32>
    %cst_153 = arith.constant dense<0xFF800000> : vector<256xf32>
    %412 = vector.multi_reduction <maximumf>, %411, %cst_153 [0] : vector<4x256xf32> to vector<256xf32>
    %413 = vector.shape_cast %412 : vector<256xf32> to vector<1x256xf32>
    %414 = vector.broadcast %413 : vector<1x256xf32> to vector<4x256xf32>
    %415 = arith.subf %411, %414 : vector<4x256xf32>
    %416 = math.exp %415 : vector<4x256xf32>
    %cst_154 = arith.constant dense<0.000000e+00> : vector<256xf32>
    %417 = vector.multi_reduction <add>, %416, %cst_154 [0] : vector<4x256xf32> to vector<256xf32>
    %418 = vector.shape_cast %417 : vector<256xf32> to vector<1x256xf32>
    %419 = tpu.reciprocal %418 {approx = true} : vector<1x256xf32> -> vector<1x256xf32>
    %420 = vector.broadcast %419 : vector<1x256xf32> to vector<4x256xf32>
    %421 = arith.mulf %416, %420 : vector<4x256xf32>
    %cst_155 = arith.constant dense<0.000000e+00> : vector<8x256xf32>
    %422 = tpu.matmul %408, %421, %cst_155 {dimension_numbers = #tpu.dot_dimension_numbers<[1], [0], [0], [1], [0, 0, 1, 1], [], []>} : vector<8x4xf32>, vector<4x256xf32>, vector<8x256xf32> -> vector<8x256xf32>
    %423 = vector.extract_strided_slice %395 {offsets = [8, 0], sizes = [8, 256], strides = [1, 1]} : vector<32x256xf32> to vector<8x256xf32>
    %424 = vector.extract_strided_slice %400 {offsets = [0, 8], sizes = [4, 8], strides = [1, 1]} : vector<4x32xf32> to vector<4x8xf32>
    %425 = vector.extract_strided_slice %405 {offsets = [8, 0], sizes = [8, 4], strides = [1, 1]} : vector<32x4xf32> to vector<8x4xf32>
    %cst_156 = arith.constant dense<0.000000e+00> : vector<4x256xf32>
    %426 = tpu.matmul %424, %423, %cst_156 {dimension_numbers = #tpu.dot_dimension_numbers<[1], [0], [0], [1], [0, 0, 1, 1], [], []>} : vector<4x8xf32>, vector<8x256xf32>, vector<4x256xf32> -> vector<4x256xf32>
    %cst_157 = arith.constant 0.353553385 : f32
    %427 = vector.broadcast %cst_157 : f32 to vector<4x256xf32>
    %428 = arith.mulf %426, %427 : vector<4x256xf32>
    %cst_158 = arith.constant dense<0xFF800000> : vector<256xf32>
    %429 = vector.multi_reduction <maximumf>, %428, %cst_158 [0] : vector<4x256xf32> to vector<256xf32>
    %430 = vector.shape_cast %429 : vector<256xf32> to vector<1x256xf32>
    %431 = vector.broadcast %430 : vector<1x256xf32> to vector<4x256xf32>
    %432 = arith.subf %428, %431 : vector<4x256xf32>
    %433 = math.exp %432 : vector<4x256xf32>
    %cst_159 = arith.constant dense<0.000000e+00> : vector<256xf32>
    %434 = vector.multi_reduction <add>, %433, %cst_159 [0] : vector<4x256xf32> to vector<256xf32>
    %435 = vector.shape_cast %434 : vector<256xf32> to vector<1x256xf32>
    %436 = tpu.reciprocal %435 {approx = true} : vector<1x256xf32> -> vector<1x256xf32>
    %437 = vector.broadcast %436 : vector<1x256xf32> to vector<4x256xf32>
    %438 = arith.mulf %433, %437 : vector<4x256xf32>
    %cst_160 = arith.constant dense<0.000000e+00> : vector<8x256xf32>
    %439 = tpu.matmul %425, %438, %cst_160 {dimension_numbers = #tpu.dot_dimension_numbers<[1], [0], [0], [1], [0, 0, 1, 1], [], []>} : vector<8x4xf32>, vector<4x256xf32>, vector<8x256xf32> -> vector<8x256xf32>
    %440 = vector.extract_strided_slice %395 {offsets = [16, 0], sizes = [8, 256], strides = [1, 1]} : vector<32x256xf32> to vector<8x256xf32>
    %441 = vector.extract_strided_slice %400 {offsets = [0, 16], sizes = [4, 8], strides = [1, 1]} : vector<4x32xf32> to vector<4x8xf32>
    %442 = vector.extract_strided_slice %405 {offsets = [16, 0], sizes = [8, 4], strides = [1, 1]} : vector<32x4xf32> to vector<8x4xf32>
    %cst_161 = arith.constant dense<0.000000e+00> : vector<4x256xf32>
    %443 = tpu.matmul %441, %440, %cst_161 {dimension_numbers = #tpu.dot_dimension_numbers<[1], [0], [0], [1], [0, 0, 1, 1], [], []>} : vector<4x8xf32>, vector<8x256xf32>, vector<4x256xf32> -> vector<4x256xf32>
    %cst_162 = arith.constant 0.353553385 : f32
    %444 = vector.broadcast %cst_162 : f32 to vector<4x256xf32>
    %445 = arith.mulf %443, %444 : vector<4x256xf32>
    %cst_163 = arith.constant dense<0xFF800000> : vector<256xf32>
    %446 = vector.multi_reduction <maximumf>, %445, %cst_163 [0] : vector<4x256xf32> to vector<256xf32>
    %447 = vector.shape_cast %446 : vector<256xf32> to vector<1x256xf32>
    %448 = vector.broadcast %447 : vector<1x256xf32> to vector<4x256xf32>
    %449 = arith.subf %445, %448 : vector<4x256xf32>
    %450 = math.exp %449 : vector<4x256xf32>
    %cst_164 = arith.constant dense<0.000000e+00> : vector<256xf32>
    %451 = vector.multi_reduction <add>, %450, %cst_164 [0] : vector<4x256xf32> to vector<256xf32>
    %452 = vector.shape_cast %451 : vector<256xf32> to vector<1x256xf32>
    %453 = tpu.reciprocal %452 {approx = true} : vector<1x256xf32> -> vector<1x256xf32>
    %454 = vector.broadcast %453 : vector<1x256xf32> to vector<4x256xf32>
    %455 = arith.mulf %450, %454 : vector<4x256xf32>
    %cst_165 = arith.constant dense<0.000000e+00> : vector<8x256xf32>
    %456 = tpu.matmul %442, %455, %cst_165 {dimension_numbers = #tpu.dot_dimension_numbers<[1], [0], [0], [1], [0, 0, 1, 1], [], []>} : vector<8x4xf32>, vector<4x256xf32>, vector<8x256xf32> -> vector<8x256xf32>
    %457 = vector.extract_strided_slice %395 {offsets = [24, 0], sizes = [8, 256], strides = [1, 1]} : vector<32x256xf32> to vector<8x256xf32>
    %458 = vector.extract_strided_slice %400 {offsets = [0, 24], sizes = [4, 8], strides = [1, 1]} : vector<4x32xf32> to vector<4x8xf32>
    %459 = vector.extract_strided_slice %405 {offsets = [24, 0], sizes = [8, 4], strides = [1, 1]} : vector<32x4xf32> to vector<8x4xf32>
    %cst_166 = arith.constant dense<0.000000e+00> : vector<4x256xf32>
    %460 = tpu.matmul %458, %457, %cst_166 {dimension_numbers = #tpu.dot_dimension_numbers<[1], [0], [0], [1], [0, 0, 1, 1], [], []>} : vector<4x8xf32>, vector<8x256xf32>, vector<4x256xf32> -> vector<4x256xf32>
    %cst_167 = arith.constant 0.353553385 : f32
    %461 = vector.broadcast %cst_167 : f32 to vector<4x256xf32>
    %462 = arith.mulf %460, %461 : vector<4x256xf32>
    %cst_168 = arith.constant dense<0xFF800000> : vector<256xf32>
    %463 = vector.multi_reduction <maximumf>, %462, %cst_168 [0] : vector<4x256xf32> to vector<256xf32>
    %464 = vector.shape_cast %463 : vector<256xf32> to vector<1x256xf32>
    %465 = vector.broadcast %464 : vector<1x256xf32> to vector<4x256xf32>
    %466 = arith.subf %462, %465 : vector<4x256xf32>
    %467 = math.exp %466 : vector<4x256xf32>
    %cst_169 = arith.constant dense<0.000000e+00> : vector<256xf32>
    %468 = vector.multi_reduction <add>, %467, %cst_169 [0] : vector<4x256xf32> to vector<256xf32>
    %469 = vector.shape_cast %468 : vector<256xf32> to vector<1x256xf32>
    %470 = tpu.reciprocal %469 {approx = true} : vector<1x256xf32> -> vector<1x256xf32>
    %471 = vector.broadcast %470 : vector<1x256xf32> to vector<4x256xf32>
    %472 = arith.mulf %467, %471 : vector<4x256xf32>
    %cst_170 = arith.constant dense<0.000000e+00> : vector<8x256xf32>
    %473 = tpu.matmul %459, %472, %cst_170 {dimension_numbers = #tpu.dot_dimension_numbers<[1], [0], [0], [1], [0, 0, 1, 1], [], []>} : vector<8x4xf32>, vector<4x256xf32>, vector<8x256xf32> -> vector<8x256xf32>
    %474 = tpu.concatenate %422, %439, %456, %473 in 0 : vector<8x256xf32>, vector<8x256xf32>, vector<8x256xf32>, vector<8x256xf32> -> vector<32x256xf32>
    %c1408 = arith.constant 1408 : index
    %c0_171 = arith.constant 0 : index
    %475 = vector.load %arg3[%c1408, %c0_171] : memref<1488x128xf32, #tpu.memory_space<vmem>>, vector<32x32xf32>
    %cst_172 = arith.constant dense<0.000000e+00> : vector<32x256xf32>
    %476 = tpu.matmul %475, %474, %cst_172 {dimension_numbers = #tpu.dot_dimension_numbers<[1], [0], [0], [1], [0, 0, 1, 1], [], []>} : vector<32x32xf32>, vector<32x256xf32>, vector<32x256xf32> -> vector<32x256xf32>
    %477 = arith.addf %366, %476 : vector<32x256xf32>
    %c1440 = arith.constant 1440 : index
    %c0_173 = arith.constant 0 : index
    %478 = vector.load %arg3[%c1440, %c0_173] : memref<1488x128xf32, #tpu.memory_space<vmem>>, vector<32x1xf32>
    %479 = vector.broadcast %478 : vector<32x1xf32> to vector<32x256xf32>
    %480 = arith.addf %477, %479 : vector<32x256xf32>
    %c1472 = arith.constant 1472 : index
    %c0_174 = arith.constant 0 : index
    %481 = vector.load %arg3[%c1472, %c0_174] : memref<1488x128xf32, #tpu.memory_space<vmem>>, vector<4x32xf32>
    %cst_175 = arith.constant dense<0.000000e+00> : vector<4x256xf32>
    %482 = tpu.matmul %481, %480, %cst_175 {dimension_numbers = #tpu.dot_dimension_numbers<[1], [0], [0], [1], [0, 0, 1, 1], [], []>} : vector<4x32xf32>, vector<32x256xf32>, vector<4x256xf32> -> vector<4x256xf32>
    %c1480 = arith.constant 1480 : index
    %c0_176 = arith.constant 0 : index
    %483 = vector.load %arg3[%c1480, %c0_176] : memref<1488x128xf32, #tpu.memory_space<vmem>>, vector<4x1xf32>
    %484 = vector.broadcast %483 : vector<4x1xf32> to vector<4x256xf32>
    %485 = arith.addf %482, %484 : vector<4x256xf32>
    %c0_177 = arith.constant 0 : index
    %c0_178 = arith.constant 0 : index
    %c0_179 = arith.constant 0 : index
    %486 = vector.load %arg4[%c0_177, %c0_178, %c0_179] : memref<1x4x256xf32, #tpu.memory_space<vmem>>, vector<1x4x256xf32>
    %487 = vector.shape_cast %486 : vector<1x4x256xf32> to vector<4x256xf32>
    %488 = vector.shape_cast %485 : vector<4x256xf32> to vector<1x4x256xf32>
    tpu.vector_store %arg4[%c0_177, %c0_178, %c0_179], %488 {strides = array<i32>} : memref<1x4x256xf32, #tpu.memory_space<vmem>>, vector<1x4x256xf32>,
    return
  }
  func.func @transform_0(%arg0: i32) -> (i32, i32, i32) {
    %c0_i32 = arith.constant 0 : i32
    %c0_i32_0 = arith.constant 0 : i32
    %c0_i32_1 = arith.constant 0 : i32
    return %arg0, %c0_i32, %c0_i32_0 : i32, i32, i32
  }
  func.func @transform_1(%arg0: i32) -> (i32, i32, i32) {
    %c0_i32 = arith.constant 0 : i32
    %c0_i32_0 = arith.constant 0 : i32
    %c0_i32_1 = arith.constant 0 : i32
    return %arg0, %c0_i32, %c0_i32_0 : i32, i32, i32
  }
  func.func @transform_2(%arg0: i32) -> (i32, i32) {
    %c0_i32 = arith.constant 0 : i32
    %c0_i32_0 = arith.constant 0 : i32
    %c0_i32_1 = arith.constant 0 : i32
    return %c0_i32, %c0_i32_0 : i32, i32
  }
  func.func @transform_3(%arg0: i32) -> (i32, i32, i32) {
    %c0_i32 = arith.constant 0 : i32
    %c0_i32_0 = arith.constant 0 : i32
    %c0_i32_1 = arith.constant 0 : i32
    return %arg0, %c0_i32, %c0_i32_0 : i32, i32, i32
  }
}

</mosaic_0001>

<bundles_post_ra>
// kernel: _forward.1
= control target key start
LH: loop header
LB: loop body
LE: loop exit
PB: predicated region body
PF: predicated region fallthrough
CT: control target
= control target key end

     0   :  { %8 = vsyncpa [#allocation3], 0  ;;  %s4468_s12 = smov 0   ;;  %s5477_s0 = inlined_call_operand.vmem [shape: f32[2,4,256], index: 0, kind: input, shape index: {}]   ;;  %s5478_s1 = inlined_call_operand.vmem [shape: f32[2,176,128], index: 1, kind: input, shape index: {}]   ;;  %s5479_s2 = inlined_call_operand.hbm [shape: f32[1488,128], index: 2, kind: input, shape index: {}]   ;;  %s5480_s3 = inlined_call_operand.vmem [shape: f32[2,4,256], index: 3, kind: output, shape index: {}]  }
   0x1 LB: > { %s129_s15 = sshll.u32 %s5479_s2, 4  ;;  %s4032_s16 = sadd.s32 4294967295, %s4432_s12   ;;  %s4432_s12 = sphi %s4468_s12, %s14_s12   ;;  %s130_s15 = int_to_ptr.hbm [resolvable:$true] %s129_s15 }
   0x2   : > { %p4034_p0 = scmp.ge.s32.totalorder %s4432_s12, 1  ;;  %p118_p1 = scmp.lt.s32.totalorder %s4432_s12, 3 }
   0x3   : > { %p4228_p2 = scmp.eq.s32.totalorder %s4032_s16, 0  ;;  %s4434_s17 = smov [#allocation2]  }
   0x4   : > { %p119_p3 = pnand %p4034_p0, %p118_p1  ;;  %s131_s18 = sshll.u32 %s4434_s17, 4  ;;  %s132_s18 = int_to_ptr.vmem [resolvable:$true] %s131_s18 }
   0x5   : > { %s4435_s19 = smov 128   ;;  %s4436_s20 = smov 8  }
   0x6   : > { %p4224_p4 = pneg %p119_p3  ;;  %163 = sbr.rel (%p119_p3) target bundleno = 3021 (0xbcd), region = 32 }
   0x8   : > { %p4225_p5 = pnand %p4228_p2, %p4224_p4 }
   0xa   : > { %4227 = dma.hbm_to_vmem [thread:$0]  (!%p4225_p5), %s130_s15, 23808, %s132_s18, [#allocation3], %s4435_s19, %s4435_s19, %s4436_s20  }
   0xb   : > { %4427 = dma.done.wait (%p4228_p2), [#allocation3], 23808  }
   0xc   : > { %4429 = vsyncadd (%p4228_p2), [#allocation3], 4294943488  ;;  %p193_p6 = scmp.lt.s32.totalorder %s4032_s16, 1  ;;  %v208_v4 = vld [vmem:[#allocation2 + $0x288] sm:$0xff]  ;;  %vm220_vm0 = vcmask 261120   ;;  %v209_v5 = vld [vmem:[#allocation2 + $0x290] sm:$0xff] }
   0xd   : > { %v210_v6 = vld [vmem:[#allocation2 + $0x298] sm:$0xff]  ;;  %v211_v7 = vld [vmem:[#allocation2 + $0x2a0] sm:$0xff]  ;;  %v216_v9 = vld [vmem:[#allocation2 + $0x2a8] sm:$0xff]  ;;  %s4438_s29 = smov 64   ;;  %s4440_s30 = smov 104  }
   0xe   : > { %s5486_s16 = smov (!%p193_p6, %s4032_s16), 1  ;;  %v217_v11 = vld [vmem:[#allocation2 + $0x2b0] sm:$0xff]  ;;  %v218_v18 = vld [vmem:[#allocation2 + $0x2b8] sm:$0xff]  ;;  %v219_v24 = vld [vmem:[#allocation2 + $0x2c0] sm:$0xff]  ;;  %s4441_s4 = smov 112  }
   0xf   : > { %s4219_s21 = smul.u32 176, %s5486_s16  ;;  %s4211_s25 = sshll.u32 %s5486_s16, 3  ;;  %v1318_v63 = vld [vmem:[#allocation2 + $0x310] sm:$0xff] }
  0x10   : > { %s197_s28 = scalar_lea.vmem %s5477_s0, %s4211_s25  ;;  %s4442_s5 = smov 120  }
  0x11   : > { %s4485_s24 = scalar_lea.vmem %s5478_s1, %s4219_s21  ;;  %s4443_s6 = smov 1  }
  0x12   : > { %v215_v0 = vld [vmem:[%s4485_s24 + $0x40] sm:$0xff]  ;;  %v214_v1 = vld [vmem:[%s4485_s24 + $0x38] sm:$0xff]  ;;  %v213_v2 = vld [vmem:[%s4485_s24 + $0x30] sm:$0xff]  ;;  %s4444_s7 = smov 32   ;;  %s4445_s8 = smov 96  }
  0x13   : > { %245 = vmatpush.msra.mxu0 %v215_v0  ;;  %v212_v3 = vld [vmem:[%s4485_s24 + $0x28] sm:$0xff]  ;;  %s4446_s9 = smov 2   ;;  %s4447_s10 = smov 3  }
  0x14   : > { %s207_s14 = scalar_lea.vmem %s5480_s3, %s4211_s25 }
  0x15   : > { %246 = vmatpush.msra.mxu0 %v214_v1 }
  0x17   : > { %247 = vmatpush.msra.mxu0 %v213_v2 }
  0x19   : > { %248 = vmatpush.msra.mxu0 %v212_v3 }
  0x1a   : > { %4044 = vmatmul.msk.f32.vlgmr.msra.gmra.mxu0 %vm220_vm0, %v208_v4 }
  0x22   : > { %4045 = vmatmul.msk.f32.gmra.mxu0 %vm220_vm0, %v209_v5 }
  0x2a   : > { %4046 = vmatmul.msk.f32.gmra.mxu0 %vm220_vm0, %v210_v6 }
  0x32   : > { %4047 = vmatmul.msk.f32.gmra.mxu0 %vm220_vm0, %v211_v7 }
  0x97   : > { %v250_v8 = vpop.f32.mrf.mxu0 }
  0x98   : > { %v4495_v10 = vadd.f32 %v250_v8, %v216_v9 }
  0x9a   : > { %v262_v12 = vsub.f32 0.0, %v4495_v10 }
  0x9c   : > { %v266_v16 = vmul.f32 1.442695, %v262_v12 }
  0x9e   : > { %4262 = vpow2.f32 %v266_v16 }
  0x9f   : > { %v253_v13 = vpop.f32.mrf.mxu0 }
  0xa0   : > { %v4498_v14 = vadd.f32 %v253_v13, %v217_v11 }
  0xa2   : > { %v263_v15 = vsub.f32 0.0, %v4498_v14 }
  0xa4   : > { %v268_v17 = vmul.f32 1.442695, %v263_v15  ;;  %v4263_v23 = vpop.eup %4262 }
  0xa5   : > { %v4504_v27 = vadd.f32 1.0, %v4263_v23  ;;  %v499_v23 = vld [vmem:[%s4485_s24 + $0x78] sm:$0xff] }
  0xa6   : > { %4264 = vpow2.f32 %v268_v17  ;;  %558 = vmatpush.msrb.mxu0 %v499_v23  ;;  %4213 = vmatpush.msra.mxu3 %v499_v23 }
  0xa7   : > { %v256_v19 = vpop.f32.mrf.mxu0  ;;  %vm283_vm1 = vweird.f32 %v4504_v27  ;;  %v287_v3 = vand.u32 2147483647, %v4504_v27  ;;  %v289_v4 = vand.u32 2147483648, %v4504_v27 }
  0xa8   : > { %v4501_v20 = vadd.f32 %v256_v19, %v218_v18 }
  0xa9   : > { %v290_v15 = vor.u32 1.1754944e-38, %v289_v4  ;;  %v1472_v4 = vld [vmem:[#allocation2 + $0x370] sm:$0xff] }
  0xaa   : > { %v264_v21 = vsub.f32 0.0, %v4501_v20 }
  0xac   : > { %v270_v22 = vmul.f32 1.442695, %v264_v21  ;;  %v4265_v25 = vpop.eup %4264  ;;  %v342_v21 = vld [vmem:[#allocation2 + $0x2c8] sm:$0xff] }
  0xad   : > { %v4508_v29 = vadd.f32 1.0, %v4265_v25  ;;  %v497_v25 = vld [vmem:[%s4485_s24 + $0x68] sm:$0xff] }
  0xae   : > { %4266 = vpow2.f32 %v270_v22  ;;  %v397_v22 = vld [vmem:[#allocation2 + $0x28] sm:$0xff] }
  0xaf   : > { %v259_v26 = vpop.f32.mrf.mxu0  ;;  %4268 = vrcp.f32 %v4504_v27  ;;  %vm298_vm7 = vweird.f32 %v4508_v29  ;;  %v302_v59 = vand.u32 2147483647, %v4508_v29  ;;  %v304_v60 = vand.u32 2147483648, %v4508_v29 }
  0xb0   : > { %v4506_v28 = vadd.f32 %v259_v26, %v219_v24  ;;  %4270 = vrcp.f32 %v4508_v29  ;;  %v498_v24 = vld [vmem:[%s4485_s24 + $0x70] sm:$0xff]  ;;  %v394_v26 = vld [vmem:[#allocation2 + $0x10] sm:$0xff] }
  0xb1   : > { %v305_v9 = vor.u32 1.1754944e-38, %v304_v60  ;;  %vm303_vm15 = vcmp.eq.f32.partialorder %v302_v59, 8.507059e+37  ;;  %559 = vmatpush.msrb.mxu0 %v498_v24  ;;  %4214 = vmatpush.msra.mxu3 %v498_v24  ;;  %v1319_v59 = vld [vmem:[#allocation2 + $0x318] sm:$0xff]  ;;  %v1320_v60 = vld [vmem:[#allocation2 + $0x320] sm:$0xff] }
  0xb2   : > { %v265_v30 = vsub.f32 0.0, %v4506_v28 }
  0xb3   : > { %560 = vmatpush.msrb.mxu0 %v497_v25  ;;  %4215 = vmatpush.msra.mxu3 %v497_v25 }
  0xb4   : > { %v4267_v31 = vpop.eup %4266  ;;  %v272_v32 = vmul.f32 1.442695, %v265_v30  ;;  %v495_v30 = vld [vmem:[%s4485_s24 + $0x58] sm:$0xff] }
  0xb5   : > { %v276_v33 = vadd.f32 1.0, %v4267_v31  ;;  %v4513_v34 = vpop.eup %4268  ;;  %v392_v31 = vld [vmem:[#allocation2] sm:$0xff] }
  0xb6   : > { %4272 = vpow2.f32 %v272_v32  ;;  %v4271_v35 = vpop.eup %4270  ;;  %v279_v41 = vmul.f32 %v4513_v34, %v4504_v27  ;;  %vm284_vm8 = vweird.f32 %v4513_v34  ;;  %v496_v27 = vld [vmem:[%s4485_s24 + $0x60] sm:$0xff]  ;;  %v494_v32 = vld [vmem:[%s4485_s24 + $0x50] sm:$0xff] }
  0xb7   : > { %4274 = vrcp.f32 %v276_v33  ;;  %v294_v40 = vmul.f32 %v4271_v35, %v4508_v29  ;;  %vm299_vm3 = vweird.f32 %v4271_v35  ;;  %vm313_vm4 = vweird.f32 %v276_v33  ;;  %vm285_vm14 = vmor %vm283_vm1, %vm284_vm8  ;;  %v393_v29 = vld [vmem:[#allocation2 + $0x8] sm:$0xff]  ;;  %561 = vmatpush.msrb.mxu0 %v496_v27  ;;  %4216 = vmatpush.msra.mxu3 %v496_v27 }
  0xb8   : > { %v280_v44 = vsub.f32 1.0, %v279_v41  ;;  %v317_v53 = vand.u32 2147483647, %v276_v33  ;;  %v319_v54 = vand.u32 2147483648, %v276_v33  ;;  %vm4531_vm10 = vmor %vm298_vm7, %vm299_vm3  ;;  %vm1221_vm1 = vcmask 1043456   ;;  %v345_v41 = vld [vmem:[#allocation2 + $0x2e0] sm:$0xff] }
  0xb9   : > { %v295_v43 = vsub.f32 1.0, %v294_v40  ;;  %562 = vmatpush.msrb.mxu0 %v495_v30  ;;  %4217 = vmatpush.msra.mxu3 %v495_v30  ;;  %vm399_vm3 = vcmask 392192   ;;  %v4437_v40 = vmov 0  }
  0xba   : > { %v281_v49 = vmul.f32 %v4513_v34, %v280_v44  ;;  %v320_v2 = vor.u32 1.1754944e-38, %v319_v54  ;;  %vm318_vm13 = vcmp.eq.f32.partialorder %v317_v53, 8.507059e+37  ;;  %4252 = vset.pattern.permute.xlu0 %v4437_v40  ;;  %4253 = vset.pattern.permute.xlu1 %v4437_v40  ;;  %v391_v44 = vld [vmem:[%s4485_s24 + $0x48] sm:$0x1]  ;;  %v348_v53 = vld [vmem:[#allocation2 + $0x2f8] sm:$0xff] }
  0xbb   : > { %v296_v48 = vmul.f32 %v4271_v35, %v295_v43  ;;  %563 = vmatpush.msrb.mxu0 %v494_v32  ;;  %4218 = vmatpush.msra.mxu3 %v494_v32  ;;  %v1177_v43 = vld [vmem:[#allocation2 + $0x250] sm:$0xff] }
  0xbc   : > { %v4273_v36 = vpop.eup %4272  ;;  %v282_v0 = vadd.f32 %v4513_v34, %v281_v49  ;;  %4254 = vset.pattern.permute.xlu2 %v4437_v40 }
  0xbd   : > { %v4275_v37 = vpop.eup %4274  ;;  %v277_v38 = vadd.f32 1.0, %v4273_v36  ;;  %v297_v57 = vadd.f32 %v4271_v35, %v296_v48  ;;  %v344_v36 = vld [vmem:[#allocation2 + $0x2d8] sm:$0xff] }
  0xbe   : > { %v309_v39 = vmul.f32 %v4275_v37, %v276_v33  ;;  %vm314_vm2 = vweird.f32 %v4275_v37  ;;  %v286_v12 = vsel %vm285_vm14, %v4513_v34, %v282_v0  ;;  %v478_v33 = vld [vmem:[#allocation2 + $0x38] sm:$0xff]  ;;  %v1324_v0 = vld [vmem:[#allocation2 + $0x340] sm:$0xff]  ;;  %vm436_vm14 = vcmask 1040384  }
  0xbf   : > { %4276 = vrcp.f32 %v277_v38  ;;  %v334_v52 = vand.u32 2147483648, %v277_v38  ;;  %v332_v56 = vand.u32 2147483647, %v277_v38  ;;  %vm4520_vm6 = vmor %vm313_vm4, %vm314_vm2  ;;  %vm328_vm9 = vweird.f32 %v277_v38  ;;  %4053 = vmatmul.msk.f32.vlgmr.msrb.gmra.mxu0 %vm399_vm3, %v478_v33 }
  0xc0   : > { %v310_v42 = vsub.f32 1.0, %v309_v39  ;;  %v301_v6 = vsel %vm4531_vm10, %v4271_v35, %v297_v57  ;;  %vm288_vm2 = vcmp.eq.f32.partialorder %v287_v3, 8.507059e+37  ;;  %vm692_vm4 = vcmask 31744   ;;  %v1176_v39 = vld [vmem:[#allocation2 + $0x248] sm:$0xff]  ;;  %v349_v57 = vld [vmem:[#allocation2 + $0x300] sm:$0xff] }
  0xc1   : > { %v335_v1 = vor.u32 1.1754944e-38, %v334_v52  ;;  %vm333_vm12 = vcmp.eq.f32.partialorder %v332_v56, 8.507059e+37  ;;  %v306_v13 = vsel %vm303_vm15, %v305_v9, %v301_v6  ;;  %v291_v17 = vsel %vm288_vm2, %v290_v15, %v286_v12  ;;  %v1317_v3 = vld [vmem:[#allocation2 + $0x308] sm:$0xff]  ;;  %v1473_v6 = vld [vmem:[#allocation2 + $0x378] sm:$0xff]  ;;  %v1598_v12 = vld [vmem:[#allocation2 + $0x3d0] sm:$0xff] }
  0xc2   : > { %v311_v45 = vmul.f32 %v4275_v37, %v310_v42  ;;  %v339_v18 = vmul.f32 %v306_v13, %v4498_v14  ;;  %v338_v19 = vmul.f32 %v291_v17, %v4495_v10  ;;  %v395_v14 = vld [vmem:[#allocation2 + $0x18] sm:$0xff]  ;;  %v1182_v42 = vld [vmem:[#allocation2 + $0x270] sm:$0xff]  ;;  %v1600_v13 = vld [vmem:[#allocation2 + $0x3e0] sm:$0xff]  ;;  %vm438_vm15 = vcmask 1041408  }
  0xc3   : > { %v1180_v10 = vld [vmem:[%s197_s28] sm:$0xff]  ;;  %v1474_v15 = vld [vmem:[#allocation2 + $0x380] sm:$0xff]  ;;  %vm440_vm2 = vcmask 1042432  }
  0xc4   : > { %v312_v51 = vadd.f32 %v4275_v37, %v311_v45  ;;  %1206 = vst [vmem:[#allocation1] ss:$2 sm:$0xff] %v1180_v10  ;;  %v1178_v45 = vld [vmem:[#allocation2 + $0x258] sm:$0xff]  ;;  %v4439_v10 = vmov 32.0  }
  0xc5   : > { %v4277_v46 = vpop.eup %4276  ;;  %4278 = vrcp.f32 %v4439_v10 }
  0xc6   : > { %v324_v47 = vmul.f32 %v4277_v46, %v277_v38  ;;  %vm329_vm5 = vweird.f32 %v4277_v46  ;;  %v316_v62 = vsel %vm4520_vm6, %v4275_v37, %v312_v51  ;;  %v1181_v37 = vld [vmem:[#allocation2 + $0x268] sm:$0xff]  ;;  %v1183_v38 = vld [vmem:[#allocation2 + $0x278] sm:$0xff] }
  0xc7   : > { %vm330_vm11 = vmor %vm328_vm9, %vm329_vm5  ;;  %v321_v8 = vsel %vm318_vm13, %v320_v2, %v316_v62  ;;  %1187 = vperm.xlu0 %4252, %v1181_v37   ;;  %1197 = vperm.xlu1 %4253, %v1183_v38   ;;  %v1323_v62 = vld [vmem:[#allocation2 + $0x338] sm:$0xff]  ;;  %v1322_v2 = vld [vmem:[#allocation2 + $0x330] sm:$0xff]  ;;  %vm799_vm13 = vcmask 326656  }
  0xc8   : > { %v325_v50 = vsub.f32 1.0, %v324_v47  ;;  %v340_v16 = vmul.f32 %v321_v8, %v4501_v20  ;;  %v396_v20 = vld [vmem:[#allocation2 + $0x20] sm:$0xff]  ;;  %v346_v47 = vld [vmem:[#allocation2 + $0x2e8] sm:$0xff] }
  0xca   : > { %v326_v55 = vmul.f32 %v4277_v46, %v325_v50  ;;  %v347_v50 = vld [vmem:[#allocation2 + $0x2f0] sm:$0xff] }
  0xcb   : > { %v1207_v34 = vld.sshfl [vmem:[#allocation1] sm:$0xff pattern:$0x75316420]  ;;  %v1208_v35 = vld.sshfl [vmem:[#allocation1 + $0x8] sm:$0xff pattern:$0x75316420]  ;;  %v4279_v32 = vpop.eup %4278 }
  0xcc   : > { %v327_v61 = vadd.f32 %v4277_v46, %v326_v55  ;;  %4086 = vmatpush.msk.msra.mxu0 %vm1221_vm1, %v1207_v34  ;;  %v1184_v55 = vld [vmem:[#allocation2 + $0x280] sm:$0xff]  ;;  %vm453_vm5 = vweird.f32 %v4279_v32 }
  0xcd   : > { %4087 = vmatmul.msk.f32.vlgmr.msra.gmra.mxu0 %vm692_vm4, %v1176_v39 }
  0xce   : > { %v331_v5 = vsel %vm330_vm11, %v4277_v46, %v327_v61  ;;  %v1179_v46 = vld [vmem:[#allocation2 + $0x260] sm:$0xff] }
  0xcf   : > { %v336_v7 = vsel %vm333_vm12, %v335_v1, %v331_v5  ;;  %1192 = vperm.xlu0 %4252, %v1182_v42   ;;  %v1321_v1 = vld [vmem:[#allocation2 + $0x328] sm:$0xff]  ;;  %vm1663_vm12 = vcmask 64512  }
  0xd0   : > { %v341_v11 = vmul.f32 %v336_v7, %v4506_v28  ;;  %v343_v28 = vld [vmem:[#allocation2 + $0x2d0] sm:$0xff]  ;;  %v1471_v5 = vld [vmem:[#allocation2 + $0x368] sm:$0xff] }
  0xd1   : > { %v398_v7 = vld [vmem:[#allocation2 + $0x30] sm:$0x1] }
  0xd2   : > { %374 = vmatpush.msra.mxu1 %v341_v11 }
  0xd4   : > { %375 = vmatpush.msra.mxu1 %v340_v16 }
  0xd5   : > { %4088 = vmatmul.msk.f32.gmra.mxu0 %vm692_vm4, %v1177_v43 }
  0xd6   : > { %376 = vmatpush.msra.mxu1 %v339_v18 }
  0xd8   : > { %377 = vmatpush.msra.mxu1 %v338_v19 }
  0xd9   : > { %4048 = vmatmul.msk.f32.vlgmr.msra.gmra.mxu1 %vm220_vm0, %v342_v21 }
  0xda   : > { %413 = vmatpush.msrb.mxu1 %v397_v22 }
  0xdc   : > { %414 = vmatpush.msrb.mxu1 %v396_v20 }
  0xdd   : > { %4089 = vmatmul.msk.f32.gmra.mxu0 %vm692_vm4, %v1178_v45 }
  0xde   : > { %415 = vmatpush.msrb.mxu1 %v395_v14 }
  0xe0   : > { %416 = vmatpush.msrb.mxu1 %v394_v26 }
  0xe1   : > { %4049 = vmatmul.msk.f32.gmra.mxu1 %vm220_vm0, %v343_v28 }
  0xe2   : > { %417 = vmatpush.msrb.mxu1 %v393_v29 }
  0xe4   : > { %418 = vmatpush.msrb.mxu1 %v392_v31 }
  0xe5   : > { %4090 = vmatmul.msk.f32.gmra.mxu0 %vm692_vm4, %v1179_v46 }
  0xe6   : > { %4091 = vmatpush.msk.msra.mxu1 %vm1221_vm1, %v1208_v35 }
  0xe9   : > { %4050 = vmatmul.msk.f32.gmra.mxu1 %vm220_vm0, %v344_v36 }
  0xf1   : > { %4051 = vmatmul.msk.f32.gmra.mxu1 %vm220_vm0, %v345_v41 }
  0xf9   : > { %4052 = vmatmul.msk.f32.vlgmr.msrb.gmra.mxu1 %vm399_vm3, %v391_v44  ;;  %v449_v44 = vmul.f32 32.0, %v4279_v32 }
 0x101   : > { %4092 = vmatmul.msk.f32.vlgmr.msra.gmra.mxu1 %vm692_vm4, %v1176_v39 }
 0x109   : > { %4093 = vmatmul.msk.f32.gmra.mxu1 %vm692_vm4, %v1177_v43 }
 0x111   : > { %4094 = vmatmul.msk.f32.gmra.mxu1 %vm692_vm4, %v1178_v45 }
 0x119   : > { %4095 = vmatmul.msk.f32.gmra.mxu1 %vm692_vm4, %v1179_v46 }
 0x139   : > { %v1188_v19 = vpop.permute.xlu0 %1187  ;;  %v1198_v20 = vpop.permute.xlu1 %1197 }
 0x13c   : > { %v4582_v16 = vpop.f32.mrf.mxu0 }
 0x141   : > { %v1193_v23 = vpop.permute.xlu0 %1192 }
 0x14a   : > { %v1243_v17 = vpop.f32.mrf.mxu0 }
 0x14b   : > { %v1244_v26 = vadd.f32 %v1243_v17, %v1188_v19 }
 0x152   : > { %v1246_v21 = vpop.f32.mrf.mxu0 }
 0x153   : > { %v1247_v29 = vadd.f32 %v1246_v21, %v1193_v23 }
 0x156   : > { %v379_v48 = vpop.f32.mrf.mxu1 }
 0x157   : > { %v380_v49 = vadd.f32 %v379_v48, %v346_v47 }
 0x159   : > { %1286 = vperm.xlu1 %4253, %v380_v49  }
 0x15a   : > { %v1249_v24 = vpop.f32.mrf.mxu0 }
 0x15b   : > { %v1250_v35 = vadd.f32 %v1249_v24, %v1198_v20 }
 0x15e   : > { %v382_v51 = vpop.f32.mrf.mxu1 }
 0x15f   : > { %v383_v52 = vadd.f32 %v382_v51, %v347_v50 }
 0x161   : > { %1291 = vperm.xlu2 %4254, %v383_v52  }
 0x162   : > { %v1252_v37 = vpop.f32.mrf.mxu0 }
 0x166   : > { %v385_v54 = vpop.f32.mrf.mxu1 }
 0x167   : > { %v386_v56 = vadd.f32 %v385_v54, %v348_v53  ;;  %v450_v54 = vsub.f32 1.0, %v449_v44 }
 0x169   : > { %1296 = vperm.xlu0 %4252, %v386_v56   ;;  %1202 = vperm.xlu2 %4254, %v1184_v55  }
 0x16e   : > { %v388_v58 = vpop.f32.mrf.mxu1 }
 0x16f   : > { %v389_v61 = vadd.f32 %v388_v58, %v349_v57 }
 0x171   : > { %1423 = vperm.xlu0 %4252, %v1319_v59   ;;  %1428 = vperm.xlu2 %4254, %v1320_v60   ;;  %v451_v59 = vmul.f32 %v4279_v32, %v450_v54 }
 0x172   : > { %1301 = vperm.xlu1 %4253, %v389_v61  }
 0x176   : > { %v420_v8 = vpop.f32.mrf.mxu1 }
 0x177   : > { %v4578_v9 = vadd.f32 %v420_v8, %v398_v7 }
 0x179   : > { %1451 = vperm.xlu0 %4252, %v1323_v62   ;;  %1418 = vperm.xlu2 %4254, %v1318_v63   ;;  %v428_v11 = vrot.slane %v4578_v9, 6 }
 0x17a   : > { %1456 = vperm.xlu1 %4253, %v1324_v0   ;;  %v452_v0 = vadd.f32 %v4279_v32, %v451_v59 }
 0x17e   : > { %v1272_v18 = vpop.f32.mrf.mxu1 }
 0x17f   : > { %v1273_v27 = vadd.f32 %v1272_v18, %v1188_v19 }
 0x181   : > { %1441 = vperm.xlu0 %4252, %v1321_v1   ;;  %1446 = vperm.xlu2 %4254, %v1322_v2  }
 0x182   : > { %1413 = vperm.xlu1 %4253, %v1317_v3  }
 0x186   : > { %v1275_v22 = vpop.f32.mrf.mxu1 }
 0x187   : > { %v1276_v30 = vadd.f32 %v1275_v22, %v1193_v23 }
 0x189   : > { %1482 = vperm.xlu2 %4254, %v1472_v4  }
 0x18a   : > { %1477 = vperm.xlu1 %4253, %v1471_v5   ;;  %v4608_v5 = vsel %vm453_vm5, %v4279_v32, %v452_v0  ;;  %vm661_vm5 = vcmask 7168  }
 0x18e   : > { %v1278_v14 = vpop.f32.mrf.mxu1 }
 0x18f   : > { %v1279_v36 = vadd.f32 %v1278_v14, %v1198_v20 }
 0x192   : > { %1487 = vperm.xlu1 %4253, %v1473_v6  }
 0x196   : > { %v1281_v38 = vpop.f32.mrf.mxu1 }
 0x19a   : > { %429 = vrot.lane.b32.xlu1 %v428_v11, %s4438_s29 }
 0x1a2   : > { %1604 = vperm.xlu1 %4253, %v1598_v12   ;;  %v479_v12 = vld [vmem:[#allocation2 + $0x40] sm:$0xff] }
 0x1a3   : > { %4054 = vmatmul.msk.f32.vlgmr.msra.gmra.mxu3 %vm399_vm3, %v479_v12 }
 0x1aa   : > { %1614 = vperm.xlu1 %4253, %v1600_v13  }
 0x1b2   : > { %1492 = vperm.xlu1 %4253, %v1474_v15  }
 0x1bb   : > { %v1292_v25 = vpop.permute.xlu2 %1291 }
 0x1bc   : > { %v4588_v39 = vadd.f32 %v1292_v25, %v1247_v29  ;;  %v4590_v40 = vadd.f32 %v1292_v25, %v1276_v30  ;;  %v480_v29 = vld [vmem:[#allocation2 + $0x48] sm:$0xff] }
 0x1bd   : > { %4055 = vmatmul.msk.f32.gmra.mxu3 %vm399_vm3, %v480_v29  ;;  %v485_v29 = vld [vmem:[#allocation2 + $0x70] sm:$0xff] }
 0x1c3   : > { %v1203_v43 = vpop.permute.xlu2 %1202 }
 0x1c4   : > { %v1253_v47 = vadd.f32 %v1252_v37, %v1203_v43  ;;  %v1282_v48 = vadd.f32 %v1281_v38, %v1203_v43 }
 0x1cb   : > { %v1287_v28 = vpop.permute.xlu1 %1286 }
 0x1cc   : > { %v4584_v33 = vadd.f32 %v1287_v28, %v1244_v26  ;;  %v4586_v34 = vadd.f32 %v1287_v28, %v1273_v27 }
 0x1ce   : > { %v1325_v45 = vadd.f32 %v4588_v39, %v4584_v33  ;;  %v1334_v46 = vadd.f32 %v4590_v40, %v4586_v34 }
 0x1db   : > { %v1297_v31 = vpop.permute.xlu0 %1296 }
 0x1dc   : > { %v4592_v41 = vadd.f32 %v1297_v31, %v1250_v35  ;;  %v4594_v42 = vadd.f32 %v1297_v31, %v1279_v36 }
 0x1de   : > { %v1326_v50 = vadd.f32 %v1325_v45, %v4592_v41  ;;  %v1335_v51 = vadd.f32 %v1334_v46, %v4594_v42  ;;  %v481_v46 = vld [vmem:[#allocation2 + $0x50] sm:$0xff] }
 0x1df   : > { %4056 = vmatmul.msk.f32.gmra.mxu3 %vm399_vm3, %v481_v46 }
 0x1e4   : > { %v1302_v49 = vpop.permute.xlu1 %1301 }
 0x1e5   : > { %v4602_v52 = vadd.f32 %v1302_v49, %v1253_v47  ;;  %v4604_v53 = vadd.f32 %v1302_v49, %v1282_v48 }
 0x1e7   : > { %v1327_v55 = vadd.f32 %v1326_v50, %v4602_v52  ;;  %v1336_v56 = vadd.f32 %v1335_v51, %v4604_v53 }
 0x1e9   : > { %v1328_v57 = vrot.slane %v1327_v55, 4  ;;  %v1337_v58 = vrot.slane %v1336_v56, 4 }
 0x1eb   : > { %v1329_v60 = vadd.f32 %v1328_v57, %v1327_v55  ;;  %v1338_v61 = vadd.f32 %v1337_v58, %v1336_v56  ;;  %v482_v57 = vld [vmem:[#allocation2 + $0x58] sm:$0xff] }
 0x1ec   : > { %4057 = vmatmul.msk.f32.gmra.mxu3 %vm399_vm3, %v482_v57 }
 0x1ed   : > { %v1330_v62 = vrot.slane %v1329_v60, 2  ;;  %v1339_v63 = vrot.slane %v1338_v61, 2 }
 0x1ef   : > { %v1331_v1 = vadd.f32 %v1330_v62, %v1329_v60  ;;  %v1340_v2 = vadd.f32 %v1339_v63, %v1338_v61  ;;  %v483_v62 = vld [vmem:[#allocation2 + $0x60] sm:$0xff]  ;;  %v1429_v63 = vpop.permute.xlu2 %1428 }
 0x1f1   : > { %v1332_v3 = vrot.slane %v1331_v1, 1  ;;  %v1341_v4 = vrot.slane %v1340_v2, 1 }
 0x1f3   : > { %v1333_v6 = vadd.f32 %v1332_v3, %v1331_v1  ;;  %v1342_v7 = vadd.f32 %v1341_v4, %v1340_v2  ;;  %v1424_v2 = vpop.permute.xlu0 %1423 }
 0x1f4   : > { %4058 = vmatmul.msk.f32.gmra.mxu3 %vm399_vm3, %v483_v62  ;;  %v1567_v62 = vld [vmem:[#allocation2 + $0x398] sm:$0xff] }
 0x1f5   : > { %v1343_v8 = vmul.f32 %v1333_v6, %v4608_v5  ;;  %v1344_v11 = vmul.f32 %v1342_v7, %v4608_v5  ;;  %v484_v7 = vld [vmem:[#allocation2 + $0x68] sm:$0xff] }
 0x1f7   : > { %v4614_v13 = vsub.f32 %v4584_v33, %v1343_v8  ;;  %v4617_v15 = vsub.f32 %v4586_v34, %v1344_v11  ;;  %v4620_v17 = vsub.f32 %v4588_v39, %v1343_v8  ;;  %v4623_v18 = vsub.f32 %v4590_v40, %v1344_v11 }
 0x1f8   : > { %v4626_v19 = vsub.f32 %v4592_v41, %v1343_v8  ;;  %v4629_v21 = vsub.f32 %v4594_v42, %v1344_v11  ;;  %v4636_v23 = vsub.f32 %v4602_v52, %v1343_v8  ;;  %v4639_v24 = vsub.f32 %v4604_v53, %v1344_v11 }
 0x1f9   : > { %v1353_v22 = vmul.f32 %v4614_v13, %v4614_v13  ;;  %v1354_v20 = vmul.f32 %v4617_v15, %v4617_v15  ;;  %v1355_v14 = vmul.f32 %v4620_v17, %v4620_v17  ;;  %v1356_v25 = vmul.f32 %v4623_v18, %v4623_v18 }
 0x1fa   : > { %v1357_v10 = vmul.f32 %v4626_v19, %v4626_v19  ;;  %v1358_v26 = vmul.f32 %v4629_v21, %v4629_v21  ;;  %v1359_v30 = vmul.f32 %v4636_v23, %v4636_v23  ;;  %v1360_v31 = vmul.f32 %v4639_v24, %v4639_v24 }
 0x1fb   : > { %v1361_v27 = vadd.f32 %v1355_v14, %v1353_v22  ;;  %v1370_v28 = vadd.f32 %v1356_v25, %v1354_v20  ;;  %v1457_v20 = vpop.permute.xlu1 %1456  ;;  %v1419_v25 = vpop.permute.xlu2 %1418 }
 0x1fc   : > { %4059 = vmatmul.msk.f32.gmra.mxu3 %vm399_vm3, %v484_v7  ;;  %v488_v7 = vld [vmem:[#allocation2 + $0x88] sm:$0xff] }
 0x1fd   : > { %v1362_v32 = vadd.f32 %v1361_v27, %v1357_v10  ;;  %v1371_v35 = vadd.f32 %v1370_v28, %v1358_v26  ;;  %v1452_v27 = vpop.permute.xlu0 %1451 }
 0x1ff   : > { %v1363_v36 = vadd.f32 %v1362_v32, %v1359_v30  ;;  %v1372_v37 = vadd.f32 %v1371_v35, %v1360_v31 }
 0x201   : > { %v1364_v38 = vrot.slane %v1363_v36, 4  ;;  %v1373_v43 = vrot.slane %v1372_v37, 4 }
 0x203   : > { %v1365_v44 = vadd.f32 %v1364_v38, %v1363_v36  ;;  %v1374_v45 = vadd.f32 %v1373_v43, %v1372_v37 }
 0x204   : > { %4060 = vmatmul.msk.f32.gmra.mxu3 %vm399_vm3, %v485_v29 }
 0x205   : > { %v1366_v47 = vrot.slane %v1365_v44, 2  ;;  %v1375_v48 = vrot.slane %v1374_v45, 2 }
 0x207   : > { %v1367_v49 = vadd.f32 %v1366_v47, %v1365_v44  ;;  %v1376_v50 = vadd.f32 %v1375_v48, %v1374_v45 }
 0x209   : > { %v1368_v51 = vrot.slane %v1367_v49, 1  ;;  %v1377_v54 = vrot.slane %v1376_v50, 1 }
 0x20b   : > { %v1369_v55 = vadd.f32 %v1368_v51, %v1367_v49  ;;  %v1378_v56 = vadd.f32 %v1377_v54, %v1376_v50 }
 0x20d   : > { %v1379_v58 = vmul.f32 %v1369_v55, %v4608_v5  ;;  %v1380_v59 = vmul.f32 %v1378_v56, %v4608_v5  ;;  %v1442_v56 = vpop.permute.xlu0 %1441 }
 0x20f   : > { %v1381_v60 = vadd.f32 1e-05, %v1379_v58  ;;  %v1382_v61 = vadd.f32 1e-05, %v1380_v59  ;;  %v1467_v58 = vld [vmem:[#allocation2 + $0x348] sm:$0xff] }
 0x211   : > { %4280 = vrsqrt.f32 %v1381_v60  ;;  %vm1389_vm8 = vweird.f32 %v1381_v60  ;;  %vm1399_vm10 = vweird.f32 %v1382_v61 }
 0x212   : > { %4282 = vrsqrt.f32 %v1382_v61 }
 0x217   : > { %v4281_v0 = vpop.eup %4280 }
 0x218   : > { %v4283_v1 = vpop.eup %4282  ;;  %v1384_v3 = vmul.f32 %v4281_v0, %v1381_v60  ;;  %vm1390_vm6 = vweird.f32 %v4281_v0  ;;  %v1568_v60 = vld [vmem:[#allocation2 + $0x3a0] sm:$0xff] }
 0x219   : > { %v1394_v4 = vmul.f32 %v4283_v1, %v1382_v61  ;;  %vm1400_vm7 = vweird.f32 %v4283_v1  ;;  %vm1391_vm9 = vmor %vm1389_vm8, %vm1390_vm6  ;;  %v1316_v61 = vld [vmem:[%s4485_s24 + $0x20] sm:$0xff]  ;;  %vm666_vm6 = vcmask 15360  }
 0x21a   : > { %v1385_v6 = vmul.f32 %v4281_v0, %v1384_v3  ;;  %vm1401_vm11 = vmor %vm1399_vm10, %vm1400_vm7  ;;  %v1565_v3 = vld [vmem:[#allocation2 + $0x388] sm:$0xff]  ;;  %vm671_vm7 = vcmask 23552  }
 0x21b   : > { %v1395_v8 = vmul.f32 %v4283_v1, %v1394_v4  ;;  %v1468_v4 = vld [vmem:[#allocation2 + $0x350] sm:$0xff] }
 0x21c   : > { %v1386_v11 = vmul.f32 0.5, %v1385_v6  ;;  %v1313_v6 = vld [vmem:[%s4485_s24 + $0x8] sm:$0xff] }
 0x21d   : > { %v1396_v12 = vmul.f32 0.5, %v1395_v8  ;;  %v1469_v8 = vld [vmem:[#allocation2 + $0x358] sm:$0xff] }
 0x21e   : > { %v1387_v22 = vsub.f32 1.5, %v1386_v11  ;;  %v489_v11 = vld [vmem:[#allocation2 + $0x90] sm:$0xff] }
 0x21f   : > { %v1397_v14 = vsub.f32 1.5, %v1396_v12  ;;  %v1470_v12 = vld [vmem:[#allocation2 + $0x360] sm:$0xff] }
 0x220   : > { %v1388_v10 = vmul.f32 %v4281_v0, %v1387_v22  ;;  %v490_v22 = vld [vmem:[#allocation2 + $0x98] sm:$0xff] }
 0x221   : > { %v1398_v26 = vmul.f32 %v4283_v1, %v1397_v14  ;;  %v1594_v14 = vld [vmem:[#allocation2 + $0x3b0] sm:$0xff] }
 0x222   : > { %v1392_v28 = vsel %vm1391_vm9, %v4281_v0, %v1388_v10  ;;  %v1566_v0 = vld [vmem:[#allocation2 + $0x390] sm:$0xff]  ;;  %v1595_v10 = vld [vmem:[#allocation2 + $0x3b8] sm:$0xff] }
 0x223   : > { %v1402_v30 = vsel %vm1401_vm11, %v4283_v1, %v1398_v26  ;;  %v1407_v31 = vmul.f32 %v1392_v28, %v4626_v19  ;;  %v1409_v32 = vmul.f32 %v1392_v28, %v4636_v23  ;;  %v1405_v37 = vmul.f32 %v1392_v28, %v4620_v17  ;;  %v1447_v17 = vpop.permute.xlu2 %1446  ;;  %v487_v1 = vld [vmem:[#allocation2 + $0x80] sm:$0xff]  ;;  %v492_v26 = vld [vmem:[#allocation2 + $0xa8] sm:$0xff] }
 0x224   : > { %v1408_v35 = vmul.f32 %v1402_v30, %v4629_v21  ;;  %v1410_v36 = vmul.f32 %v1402_v30, %v4639_v24  ;;  %v1403_v44 = vmul.f32 %v1392_v28, %v4614_v13  ;;  %v1406_v45 = vmul.f32 %v1402_v30, %v4623_v18  ;;  %v1414_v21 = vpop.permute.xlu1 %1413  ;;  %v486_v13 = vld [vmem:[#allocation2 + $0x78] sm:$0xff] }
 0x225   : > { %v1435_v38 = vmul.f32 %v1424_v2, %v1407_v31  ;;  %v1437_v43 = vmul.f32 %v1429_v63, %v1409_v32  ;;  %v1404_v19 = vmul.f32 %v1402_v30, %v4617_v15  ;;  %v1433_v23 = vmul.f32 %v1419_v25, %v1405_v37  ;;  %4061 = vmatmul.msk.f32.gmra.mxu3 %vm399_vm3, %v486_v13 }
 0x226   : > { %v1436_v46 = vmul.f32 %v1424_v2, %v1408_v35  ;;  %v1438_v47 = vmul.f32 %v1429_v63, %v1410_v36  ;;  %v1434_v50 = vmul.f32 %v1419_v25, %v1406_v45  ;;  %v1431_v51 = vmul.f32 %v1414_v21, %v1403_v44  ;;  %v1315_v63 = vld [vmem:[%s4485_s24 + $0x18] sm:$0xff]  ;;  %v1314_v2 = vld [vmem:[%s4485_s24 + $0x10] sm:$0xff]  ;;  %v491_v25 = vld [vmem:[#allocation2 + $0xa0] sm:$0xff]  ;;  %v4693_v28 = vpop.f32.mrf.mxu3 }
 0x227   : > { %v1465_v48 = vadd.f32 %v1457_v20, %v1437_v43  ;;  %v1463_v24 = vadd.f32 %v1452_v27, %v1435_v38  ;;  %v1432_v55 = vmul.f32 %v1414_v21, %v1404_v19  ;;  %v1461_v18 = vadd.f32 %v1447_v17, %v1433_v23 }
 0x228   : > { %v1466_v49 = vadd.f32 %v1457_v20, %v1438_v47  ;;  %v1464_v54 = vadd.f32 %v1452_v27, %v1436_v46  ;;  %v1462_v15 = vadd.f32 %v1447_v17, %v1434_v50  ;;  %v1459_v57 = vadd.f32 %v1442_v56, %v1431_v51  ;;  %v1312_v20 = vld [vmem:[%s4485_s24] sm:$0xff]  ;;  %v1596_v27 = vld [vmem:[#allocation2 + $0x3c0] sm:$0xff]  ;;  %v4255_v17 = vld [vmem:[#allocation2 + $0x3a8] ss:$0 sm:$0xff] }
 0x229   : > { %1519 = vmatpush.msrb.mxu0 %v1465_v48  ;;  %v1460_v59 = vadd.f32 %v1442_v56, %v1432_v55 }
 0x22a   : > { %1548 = vmatpush.msrb.mxu1 %v1466_v49 }
 0x22b   : > { %1520 = vmatpush.msrb.mxu0 %v1463_v24  ;;  %v1483_v45 = vpop.permute.xlu2 %1482 }
 0x22c   : > { %1549 = vmatpush.msrb.mxu1 %v1464_v54  ;;  %v1478_v35 = vpop.permute.xlu1 %1477 }
 0x22d   : > { %1521 = vmatpush.msrb.mxu0 %v1461_v18  ;;  %4062 = vmatmul.msk.f32.gmra.mxu3 %vm399_vm3, %v487_v1  ;;  %v493_v18 = vld [vmem:[#allocation2 + $0xb0] sm:$0xff]  ;;  %v795_v1 = vld [vmem:[#allocation2 + $0x138] sm:$0xff] }
 0x22e   : > { %1550 = vmatpush.msrb.mxu1 %v1462_v15  ;;  %v432_v15 = vrot.slane %v4578_v9, 5 }
 0x22f   : > { %1522 = vmatpush.msrb.mxu0 %v1459_v57  ;;  %v424_v57 = vrot.slane %v4578_v9, 7 }
 0x230   : > { %1551 = vmatpush.msrb.mxu1 %v1460_v59  ;;  %4096 = vmatmul.msk.f32.vlgmr.msrb.gmra.mxu0 %vm220_vm0, %v1467_v58  ;;  %v1599_v59 = vld [vmem:[#allocation2 + $0x3d8] sm:$0xff] }
 0x231   : > { %4100 = vmatmul.msk.f32.vlgmr.msrb.gmra.mxu1 %vm220_vm0, %v1467_v58  ;;  %1586 = vmatpush.msra.mxu0 %v1568_v60  ;;  %v1597_v58 = vld [vmem:[#allocation2 + $0x3c8] sm:$0xff] }
 0x232   : > { %1646 = vmatpush.msra.mxu1 %v1316_v61 }
 0x233   : > { %1587 = vmatpush.msra.mxu0 %v1567_v62 }
 0x234   : > { %1647 = vmatpush.msra.mxu1 %v1315_v63  ;;  %v4715_v49 = vpop.permute.xlu1 %1487  ;;  %v797_v63 = vld [vmem:[#allocation2 + $0x148] sm:$0xff] }
 0x235   : > { %1588 = vmatpush.msra.mxu0 %v1566_v0  ;;  %4063 = vmatmul.msk.f32.gmra.mxu3 %vm399_vm3, %v488_v7  ;;  %v796_v0 = vld [vmem:[#allocation2 + $0x140] sm:$0xff]  ;;  %v1601_v7 = vld [vmem:[#allocation2 + $0x3e8] sm:$0xff] }
 0x236   : > { %1648 = vmatpush.msra.mxu1 %v1314_v2  ;;  %814 = vmatpush.msra.mxu2 %v797_v63  ;;  %v794_v2 = vld [vmem:[#allocation2 + $0x130] sm:$0xff] }
 0x237   : > { %1589 = vmatpush.msra.mxu0 %v1565_v3 }
 0x238   : > { %4097 = vmatmul.msk.f32.gmra.mxu0 %vm220_vm0, %v1468_v4  ;;  %1649 = vmatpush.msra.mxu1 %v1313_v6  ;;  %v792_v6 = vld [vmem:[%s4485_s24 + $0x80] sm:$0x1] }
 0x239   : > { %4101 = vmatmul.msk.f32.gmra.mxu1 %vm220_vm0, %v1468_v4  ;;  %815 = vmatpush.msra.mxu2 %v796_v0  ;;  %v793_v4 = vld [vmem:[#allocation2 + $0x128] sm:$0xff] }
 0x23b   : > { %816 = vmatpush.msra.mxu2 %v795_v1 }
 0x23d   : > { %4064 = vmatmul.msk.f32.gmra.mxu3 %vm399_vm3, %v489_v11  ;;  %817 = vmatpush.msra.mxu2 %v794_v2  ;;  %v690_v11 = vld [vmem:[#allocation2 + $0x118] sm:$0xff] }
 0x23f   : > { %818 = vmatpush.msra.mxu2 %v793_v4 }
 0x240   : > { %4098 = vmatmul.msk.f32.gmra.mxu0 %vm220_vm0, %v1469_v8  ;;  %v4695_v29 = vpop.f32.mrf.mxu3  ;;  %4069 = vmatmul.msk.f32.vlgmr.msra.gmra.mxu2 %vm799_vm13, %v792_v6 }
 0x241   : > { %4102 = vmatmul.msk.f32.gmra.mxu1 %vm220_vm0, %v1469_v8  ;;  %v686_v8 = vld [vmem:[#allocation2 + $0xf8] sm:$0xff] }
 0x245   : > { %4065 = vmatmul.msk.f32.gmra.mxu3 %vm399_vm3, %v490_v22  ;;  %v688_v22 = vld [vmem:[#allocation2 + $0x108] sm:$0xff] }
 0x248   : > { %4099 = vmatmul.msk.f32.gmra.mxu0 %vm220_vm0, %v1470_v12 }
 0x249   : > { %4103 = vmatmul.msk.f32.gmra.mxu1 %vm220_vm0, %v1470_v12  ;;  %v430_v12 = vpop.permute.xlu1 %429 }
 0x24d   : > { %4066 = vmatmul.msk.f32.gmra.mxu3 %vm399_vm3, %v491_v25 }
 0x250   : > { %4104 = vmatmul.msk.f32.vlgmr.msra.gmra.mxu0 %vm220_vm0, %v1312_v20 }
 0x251   : > { %4105 = vmatmul.msk.f32.vlgmr.msra.gmra.mxu1 %vm220_vm0, %v1594_v14  ;;  %v4748_v20 = vpop.permute.xlu1 %1604 }
 0x255   : > { %4067 = vmatmul.msk.f32.gmra.mxu3 %vm399_vm3, %v492_v26 }
 0x259   : > { %4106 = vmatmul.msk.f32.gmra.mxu1 %vm220_vm0, %v1595_v10  ;;  %v4750_v14 = vpop.permute.xlu1 %1614 }
 0x25d   : > { %4068 = vmatmul.msk.f32.gmra.mxu3 %vm399_vm3, %v493_v18  ;;  %vm444_vm3 = vcmask 257024  }
 0x261   : > { %4107 = vmatmul.msk.f32.gmra.mxu1 %vm220_vm0, %v1596_v27  ;;  %v4752_v25 = vpop.permute.xlu1 %1492 }
 0x262   : > { %v4697_v30 = vpop.f32.mrf.mxu3 }
 0x269   : > { %4108 = vmatmul.msk.f32.gmra.mxu1 %vm220_vm0, %v1597_v58 }
 0x26f   : > { %v577_v31 = vpop.f32.mrf.mxu3 }
 0x277   : > { %v580_v32 = vpop.f32.mrf.mxu3 }
 0x27f   : > { %v4699_v37 = vpop.f32.mrf.mxu3 }
 0x287   : > { %v4711_v23 = vpop.f32.mrf.mxu3 }
 0x2a8   : > { %v4721_v24 = vpop.f32.mrf.mxu3 }
 0x2ad   : > { %v1524_v36 = vpop.f32.mrf.mxu0 }
 0x2ae   : > { %v4701_v38 = vadd.f32 %v1524_v36, %v1478_v35  ;;  %v1553_v43 = vpop.f32.mrf.mxu1 }
 0x2af   : > { %v4703_v44 = vadd.f32 %v1553_v43, %v1478_v35 }
 0x2b0   : > { %1682 = vmatpush.msrb.mxu0 %v4701_v38  ;;  %v592_v54 = vpop.f32.mrf.mxu3 }
 0x2b2   : > { %1702 = vmatpush.msra.mxu0 %v4703_v44 }
 0x2b5   : > { %v1527_v46 = vpop.f32.mrf.mxu0 }
 0x2b6   : > { %v4707_v47 = vadd.f32 %v1527_v46, %v1483_v45  ;;  %v1556_v19 = vpop.f32.mrf.mxu1 }
 0x2b7   : > { %v4709_v48 = vadd.f32 %v1556_v19, %v1483_v45 }
 0x2b8   : > { %1805 = vmatpush.msrb.mxu1 %v4707_v47  ;;  %v595_v56 = vpop.f32.mrf.mxu3 }
 0x2b9   : > { %1825 = vmatpush.msrb.mxu3 %v4709_v48 }
 0x2bd   : > { %v1530_v21 = vpop.f32.mrf.mxu0 }
 0x2be   : > { %v4718_v50 = vadd.f32 %v1530_v21, %v4715_v49 }
 0x2c0   : > { %1928 = vmatpush.msra.mxu3 %v4718_v50  ;;  %v4737_v60 = vpop.f32.mrf.mxu3 }
 0x2c5   : > { %v4723_v51 = vpop.f32.mrf.mxu0 }
 0x2c8   : > { %v601_v61 = vpop.f32.mrf.mxu3 }
 0x2cd   : > { %v1591_v55 = vpop.f32.mrf.mxu0 }
 0x2ce   : > { %v1592_v13 = vadd.f32 %v4255_v17, %v1591_v55 }
 0x2d0   : > { %2032 = vrot.lane.b32.xlu1 %v1592_v13, %s4440_s30  ;;  %1909 = vrot.lane.b32.xlu2 %v1592_v13, %s4441_s4  ;;  %v4742_v62 = vpop.f32.mrf.mxu3 }
 0x2d1   : > { %1786 = vrot.lane.b32.xlu0 %v1592_v13, %s4442_s5  ;;  %4109 = vmatmul.msk.f32.vlgmr.msrb.gmra.mxu0 %vm1663_vm12, %v1592_v13 }
 0x2d8   : > { %617 = vrot.lane.b32.xlu1 %v577_v31, %s4443_s6  ;;  %433 = vrot.lane.b32.xlu2 %v432_v15, %s4444_s7  ;;  %v607_v3 = vpop.f32.mrf.mxu3 }
 0x2d9   : > { %425 = vrot.lane.b32.xlu0 %v424_v57, %s4445_s8  ;;  %4110 = vmatmul.msk.f32.vlgmr.msra.gmra.mxu0 %vm1663_vm12, %v1592_v13 }
 0x2e0   : > { %619 = vrot.lane.b32.xlu1 %v580_v32, %s4443_s6  ;;  %1609 = vperm.xlu2 %4254, %v1599_v59  }
 0x2e8   : > { %635 = vrot.lane.b32.xlu1 %v592_v54, %s4446_s9 }
 0x2f0   : > { %649 = vrot.lane.b32.xlu1 %v601_v61, %s4447_s10 }
 0x2f8   : > { %637 = vrot.lane.b32.xlu1 %v595_v56, %s4446_s9 }
 0x300   : > { %653 = vrot.lane.b32.xlu1 %v607_v3, %s4447_s10 }
 0x308   : > { %1619 = vperm.xlu1 %4253, %v1601_v7  }
 0x310   : > { %756 = vperm.xlu1 %4253, %v686_v8  }
 0x318   : > { %780 = vperm.xlu1 %4253, %v690_v11  }
 0x320   : > { %770 = vperm.xlu1 %4253, %v688_v22  }
 0x32a   : > { %v4756_v26 = vpop.permute.xlu2 %1909 }
 0x332   : > { %v434_v36 = vpop.permute.xlu2 %433 }
 0x342   : > { %v4754_v10 = vpop.permute.xlu1 %2032 }
 0x343   : > { %v1787_v27 = vpop.permute.xlu0 %1786 }
 0x344   : > { %4113 = vmatmul.msk.f32.vlgmr.msrb.gmra.mxu1 %vm1663_vm12, %v1787_v27  ;;  %4114 = vmatmul.msk.f32.vlgmr.msrb.gmra.mxu3 %vm1663_vm12, %v1787_v27 }
 0x34a   : > { %v4760_v31 = vpop.permute.xlu1 %617 }
 0x34b   : > { %v426_v32 = vpop.permute.xlu0 %425 }
 0x34c   : > { %v437_v35 = vsel %vm436_vm14, %v4578_v9, %v426_v32  ;;  %4117 = vmatmul.msk.f32.vlgmr.msra.gmra.mxu3 %vm1663_vm12, %v4756_v26 }
 0x34d   : > { %v439_v43 = vsel %vm438_vm15, %v437_v35, %v430_v12 }
 0x34e   : > { %v1684_v45 = vpop.f32.mrf.mxu0  ;;  %v4768_v46 = vsel %vm440_vm2, %v439_v43, %v434_v36 }
 0x34f   : > { %v1707_v19 = vmul.f32 0.35355338, %v1684_v45  ;;  %v445_v21 = vsel %vm444_vm3, %v4768_v46, 0.0 }
 0x350   : > { %446 = vadd.xlane.f32.xlu0 %v445_v21 }
 0x351   : > { %v1709_v17 = vrot.slane %v1707_v19, 4 }
 0x352   : > { %v620_v54 = vpop.permute.xlu1 %619 }
 0x353   : > { %v1710_v55 = vmax.f32 %v1707_v19, %v1709_v17  ;;  %v663_v15 = vsel %vm661_vm5, %v4693_v28, %v620_v54  ;;  %v4779_v28 = vpop.f32.mrf.mxu1 }
 0x355   : > { %v1711_v9 = vrot.slane %v1710_v55, 2 }
 0x356   : > { %v1704_v13 = vpop.f32.mrf.mxu0 }
 0x357   : > { %v1712_v18 = vmax.f32 %v1710_v55, %v1711_v9  ;;  %v1708_v56 = vmul.f32 0.35355338, %v1704_v13  ;;  %v610_v13 = vpop.f32.mrf.mxu3 }
 0x359   : > { %v1713_v57 = vrot.slane %v1712_v18, 1  ;;  %v1715_v58 = vrot.slane %v1708_v56, 4 }
 0x35a   : > { %v636_v59 = vpop.permute.xlu1 %635 }
 0x35b   : > { %v1714_v61 = vmax.f32 %v1712_v18, %v1713_v57  ;;  %v1716_v63 = vmax.f32 %v1708_v56, %v1715_v58  ;;  %v4775_v0 = vsel %vm666_vm6, %v663_v15, %v636_v59  ;;  %v4783_v43 = vpop.f32.mrf.mxu1  ;;  %v687_v57 = vld [vmem:[#allocation2 + $0x100] sm:$0xff]  ;;  %v685_v59 = vld [vmem:[#allocation2 + $0xf0] sm:$0xff] }
 0x35d   : > { %v1721_v1 = vsub.f32 %v1707_v19, %v1714_v61  ;;  %v1717_v2 = vrot.slane %v1716_v63, 2  ;;  %v689_v61 = vld [vmem:[#allocation2 + $0x110] sm:$0xff] }
 0x35f   : > { %v1723_v3 = vmul.f32 1.442695, %v1721_v1  ;;  %v1718_v4 = vmax.f32 %v1716_v63, %v1717_v2  ;;  %v2189_v63 = vld [vmem:[#allocation2 + $0x480] sm:$0xff]  ;;  %v798_v1 = vld [vmem:[#allocation2 + $0x150] sm:$0x1]  ;;  %v820_v2 = vpop.f32.mrf.mxu2 }
 0x361   : > { %4284 = vpow2.f32 %v1723_v3  ;;  %v1719_v6 = vrot.slane %v1718_v4, 1  ;;  %v4791_v3 = vadd.f32 %v820_v2, %v798_v1 }
 0x363   : > { %v1720_v7 = vmax.f32 %v1718_v4, %v1719_v6  ;;  %v1651_v9 = vpop.f32.mrf.mxu1  ;;  %v828_v6 = vrot.slane %v4791_v3, 6 }
 0x364   : > { %633 = vrot.lane.b32.xlu0 %v4721_v24, %s4446_s9  ;;  %v1652_v15 = vadd.f32 %v1651_v9, %v4748_v20  ;;  %v2190_v20 = vld [vmem:[#allocation2 + $0x488] sm:$0xff] }
 0x365   : > { %v1722_v8 = vsub.f32 %v1708_v56, %v1720_v7 }
 0x367   : > { %v4285_v11 = vpop.eup %4284  ;;  %v1725_v12 = vmul.f32 1.442695, %v1722_v8  ;;  %v2874_v8 = vld [vmem:[#allocation2 + $0x410] sm:$0xff] }
 0x368   : > { %v1727_v22 = vrot.slane %v4285_v11, 4 }
 0x369   : > { %4286 = vpow2.f32 %v1725_v12  ;;  %v2876_v12 = vld [vmem:[#allocation2 + $0x420] sm:$0xff] }
 0x36a   : > { %v1728_v27 = vadd.f32 %v4285_v11, %v1727_v22 }
 0x36b   : > { %v4793_v4 = vpop.f32.mrf.mxu1 }
 0x36c   : > { %651 = vrot.lane.b32.xlu0 %v4742_v62, %s4447_s10  ;;  %v1729_v32 = vrot.slane %v1728_v27, 2 }
 0x36e   : > { %v1730_v35 = vadd.f32 %v1729_v32, %v1728_v27 }
 0x36f   : > { %v4287_v36 = vpop.eup %4286 }
 0x370   : > { %v1731_v45 = vrot.slane %v1730_v35, 1  ;;  %v1733_v19 = vrot.slane %v4287_v36, 4 }
 0x372   : > { %v1732_v21 = vadd.f32 %v1731_v45, %v1730_v35  ;;  %v1734_v24 = vadd.f32 %v4287_v36, %v1733_v19 }
 0x373   : > { %v4797_v7 = vpop.f32.mrf.mxu1 }
 0x374   : > { %623 = vrot.lane.b32.xlu0 %v4711_v23, %s4443_s6  ;;  %4288 = vrcp.f32 %v1732_v21  ;;  %v1735_v17 = vrot.slane %v1734_v24, 2 }
 0x376   : > { %v1736_v54 = vadd.f32 %v1735_v17, %v1734_v24 }
 0x378   : > { %v1737_v55 = vrot.slane %v1736_v54, 1 }
 0x37a   : > { %v4289_v18 = vpop.eup %4288  ;;  %v1738_v62 = vadd.f32 %v1737_v55, %v1736_v54 }
 0x37b   : > { %v1741_v56 = vmul.f32 %v4289_v18, %v4285_v11  ;;  %v4799_v11 = vpop.f32.mrf.mxu1 }
 0x37c   : > { %655 = vrot.lane.b32.xlu0 %v610_v13, %s4447_s10  ;;  %4290 = vrcp.f32 %v1738_v62 }
 0x37d   : > { %1761 = vmatpush.msrb.mxu0 %v1741_v56 }
 0x37e   : > { %4111 = vmatmul.msk.f32.vlgmr.msrb.gmra.mxu0 %vm1663_vm12, %v1652_v15 }
 0x382   : > { %v4291_v58 = vpop.eup %4290 }
 0x383   : > { %v1742_v23 = vmul.f32 %v4291_v58, %v4287_v36 }
 0x384   : > { %761 = vperm.xlu0 %4252, %v687_v57  }
 0x385   : > { %1781 = vmatpush.msra.mxu0 %v1742_v23 }
 0x386   : > { %4112 = vmatmul.msk.f32.vlgmr.msra.gmra.mxu0 %vm1663_vm12, %v1652_v15 }
 0x38c   : > { %751 = vperm.xlu0 %4252, %v685_v59  }
 0x394   : > { %775 = vperm.xlu0 %4252, %v689_v61  }
 0x39c   : > { %2199 = vperm.xlu0 %4252, %v2189_v63  }
 0x3a4   : > { %2204 = vperm.xlu0 %4252, %v2190_v20  }
 0x3ac   : > { %829 = vrot.lane.b32.xlu0 %v828_v6, %s4438_s29 }
 0x3b4   : > { %2880 = vperm.xlu0 %4252, %v2874_v8  }
 0x3bc   : > { %2890 = vperm.xlu0 %4252, %v2876_v12   ;;  %v662_v12 = vsel %vm661_vm5, %v4582_v16, %v4760_v31 }
 0x3c1   : > { %v1807_v22 = vpop.f32.mrf.mxu1 }
 0x3c2   : > { %v1830_v27 = vmul.f32 0.35355338, %v1807_v22 }
 0x3c3   : > { %v447_v32 = vpop.xlane.xlu0 %446 }
 0x3c4   : > { %v1832_v35 = vrot.slane %v1830_v27, 4  ;;  %v455_v36 = vmul.f32 %v4608_v5, %v447_v32 }
 0x3c6   : > { %v1833_v45 = vmax.f32 %v1830_v27, %v1832_v35  ;;  %v4803_v19 = vsub.f32 %v4768_v46, %v455_v36  ;;  %v650_v36 = vpop.permute.xlu1 %649 }
 0x3c7   : > { %v1827_v21 = vpop.f32.mrf.mxu3 }
 0x3c8   : > { %v1834_v24 = vrot.slane %v1833_v45, 2  ;;  %v1831_v17 = vmul.f32 0.35355338, %v1827_v21  ;;  %v457_v54 = vmul.f32 %v4803_v19, %v4803_v19  ;;  %v676_v21 = vld [vmem:[#allocation2 + $0xb8] sm:$0xff] }
 0x3ca   : > { %v1835_v55 = vmax.f32 %v1833_v45, %v1834_v24  ;;  %v1838_v9 = vrot.slane %v1831_v17, 4  ;;  %v458_v13 = vsel %vm444_vm3, %v457_v54, 0.0 }
 0x3cb   : > { %459 = vadd.xlane.f32.xlu2 %v458_v13 }
 0x3cc   : > { %v1836_v18 = vrot.slane %v1835_v55, 1  ;;  %v1839_v62 = vmax.f32 %v1831_v17, %v1838_v9 }
 0x3ce   : > { %v1837_v56 = vmax.f32 %v1835_v55, %v1836_v18  ;;  %v1840_v15 = vrot.slane %v1839_v62, 2  ;;  %v677_v55 = vld [vmem:[#allocation2 + $0xc0] sm:$0xff] }
 0x3cf   : > { %v1930_v57 = vpop.f32.mrf.mxu3 }
 0x3d0   : > { %v1844_v58 = vsub.f32 %v1830_v27, %v1837_v56  ;;  %v1841_v23 = vmax.f32 %v1839_v62, %v1840_v15  ;;  %v1953_v46 = vmul.f32 0.35355338, %v1930_v57 }
 0x3d2   : > { %v1846_v59 = vmul.f32 1.442695, %v1844_v58  ;;  %v1842_v61 = vrot.slane %v1841_v23, 1  ;;  %v1955_v63 = vrot.slane %v1953_v46, 4 }
 0x3d4   : > { %4292 = vpow2.f32 %v1846_v59  ;;  %v1843_v20 = vmax.f32 %v1841_v23, %v1842_v61  ;;  %v1956_v1 = vmax.f32 %v1953_v46, %v1955_v63 }
 0x3d6   : > { %v1845_v2 = vsub.f32 %v1831_v17, %v1843_v20  ;;  %v1957_v6 = vrot.slane %v1956_v1, 2  ;;  %v634_v8 = vpop.permute.xlu0 %633 }
 0x3d7   : > { %v667_v27 = vsel %vm666_vm6, %v662_v12, %v634_v8 }
 0x3d8   : > { %v1848_v22 = vmul.f32 1.442695, %v1845_v2  ;;  %v1958_v32 = vmax.f32 %v1956_v1, %v1957_v6  ;;  %v672_v24 = vsel %vm671_vm7, %v667_v27, %v650_v36  ;;  %v1610_v27 = vpop.permute.xlu2 %1609 }
 0x3d9   : > { %v4813_v18 = vadd.f32 %v676_v21, %v672_v24 }
 0x3da   : > { %v4293_v35 = vpop.eup %4292  ;;  %4294 = vpow2.f32 %v1848_v22  ;;  %v1959_v45 = vrot.slane %v1958_v32, 1 }
 0x3db   : > { %v1850_v54 = vrot.slane %v4293_v35, 4  ;;  %v693_v59 = vsel %vm692_vm4, %v4813_v18, 0.0 }
 0x3dc   : > { %v1960_v17 = vmax.f32 %v1958_v32, %v1959_v45 }
 0x3dd   : > { %v1851_v9 = vadd.f32 %v4293_v35, %v1850_v54  ;;  %v4832_v54 = vadd.f32 %v4779_v28, %v4715_v49  ;;  %v4846_v28 = vadd.f32 %v4797_v7, %v4750_v14  ;;  %v884_v14 = vld [vmem:[%s4485_s24 + $0x90] sm:$0xff]  ;;  %v868_v7 = vld [vmem:[#allocation2 + $0x160] sm:$0xff] }
 0x3de   : > { %v1967_v13 = vsub.f32 %v1953_v46, %v1960_v17  ;;  %v652_v16 = vpop.permute.xlu0 %651  ;;  %v4836_v17 = vadd.f32 %v4723_v51, %v4752_v25 }
 0x3df   : > { %v673_v31 = vsel %vm671_vm7, %v4775_v0, %v652_v16  ;;  %v1852_v62 = vrot.slane %v1851_v9, 2  ;;  %v885_v16 = vld [vmem:[%s4485_s24 + $0x98] sm:$0xff] }
 0x3e0   : > { %v4295_v56 = vpop.eup %4294  ;;  %v1969_v15 = vmul.f32 1.442695, %v1967_v13  ;;  %v4817_v57 = vadd.f32 %v677_v55, %v673_v31  ;;  %v887_v13 = vld [vmem:[%s4485_s24 + $0xa8] sm:$0xff]  ;;  %v869_v31 = vld [vmem:[#allocation2 + $0x168] sm:$0xff] }
 0x3e1   : > { %v1853_v58 = vadd.f32 %v1852_v62, %v1851_v9  ;;  %v1856_v23 = vrot.slane %v4295_v56, 4  ;;  %v4850_v9 = vadd.f32 %v4783_v43, %v4752_v25  ;;  %947 = vmatpush.msrb.mxu2 %v887_v13  ;;  %v883_v25 = vld [vmem:[%s4485_s24 + $0x88] sm:$0xff]  ;;  %v867_v43 = vld [vmem:[#allocation2 + $0x158] sm:$0xff]  ;;  %v870_v62 = vld [vmem:[#allocation2 + $0x170] sm:$0xff] }
 0x3e2   : > { %4296 = vpow2.f32 %v1969_v15  ;;  %v694_v46 = vsel %vm692_vm4, %v4817_v57, 0.0  ;;  %v872_v15 = vld [vmem:[#allocation2 + $0x180] sm:$0xff] }
 0x3e3   : > { %v4823_v61 = vadd.f32 %v694_v46, %v693_v59  ;;  %621 = vrot.lane.b32.xlu2 %v4699_v37, %s4443_s6  ;;  %v1854_v0 = vrot.slane %v1853_v58, 1  ;;  %v1857_v63 = vadd.f32 %v4295_v56, %v1856_v23  ;;  %v1655_v37 = vadd.f32 %v4793_v4, %v1610_v27  ;;  %v2156_v23 = vld [vmem:[#allocation2 + $0x438] sm:$0xff]  ;;  %v2155_v59 = vld [vmem:[#allocation2 + $0x430] sm:$0xff]  ;;  %v638_v46 = vpop.permute.xlu1 %637 }
 0x3e5   : > { %v1855_v20 = vadd.f32 %v1854_v0, %v1853_v58  ;;  %v1858_v1 = vrot.slane %v1857_v63, 2  ;;  %v2157_v58 = vld [vmem:[#allocation2 + $0x440] sm:$0xff] }
 0x3e7   : > { %4298 = vrcp.f32 %v1855_v20  ;;  %v1859_v2 = vadd.f32 %v1858_v1, %v1857_v63  ;;  %v873_v63 = vld [vmem:[#allocation2 + $0x188] sm:$0xff] }
 0x3e8   : > { %v4297_v6 = vpop.eup %4296 }
 0x3e9   : > { %v1860_v8 = vrot.slane %v1859_v2, 1  ;;  %v1973_v12 = vrot.slane %v4297_v6, 4 }
 0x3eb   : > { %639 = vrot.lane.b32.xlu2 %v4737_v60, %s4446_s9  ;;  %v1861_v22 = vadd.f32 %v1860_v8, %v1859_v2  ;;  %v1974_v32 = vadd.f32 %v4297_v6, %v1973_v12  ;;  %v874_v2 = vld [vmem:[#allocation2 + $0x190] sm:$0xff] }
 0x3ed   : > { %v4299_v36 = vpop.eup %4298  ;;  %4300 = vrcp.f32 %v1861_v22  ;;  %v1975_v45 = vrot.slane %v1974_v32, 2  ;;  %v654_v22 = vpop.permute.xlu1 %653 }
 0x3ee   : > { %v1864_v21 = vmul.f32 %v4299_v36, %v4293_v35 }
 0x3ef   : > { %v1976_v24 = vadd.f32 %v1975_v45, %v1974_v32  ;;  %v678_v32 = vld [vmem:[#allocation2 + $0xc8] sm:$0xff] }
 0x3f0   : > { %1884 = vmatpush.msrb.mxu0 %v1864_v21 }
 0x3f1   : > { %4115 = vmatmul.msk.f32.vlgmr.msrb.gmra.mxu0 %vm1663_vm12, %v1655_v37  ;;  %v1977_v60 = vrot.slane %v1976_v24, 1 }
 0x3f2   : > { %1948 = vmatpush.msra.mxu0 %v4832_v54 }
 0x3f3   : > { %v4301_v55 = vpop.eup %4300  ;;  %v1978_v4 = vadd.f32 %v1977_v60, %v1976_v24  ;;  %v875_v60 = vld [vmem:[#allocation2 + $0x198] sm:$0xff] }
 0x3f4   : > { %2051 = vmatpush.msrb.mxu0 %v4836_v17  ;;  %v1865_v35 = vmul.f32 %v4301_v55, %v4295_v56  ;;  %v871_v56 = vld [vmem:[#allocation2 + $0x178] sm:$0xff] }
 0x3f5   : > { %4302 = vrcp.f32 %v1978_v4 }
 0x3f6   : > { %1904 = vmatpush.msra.mxu1 %v1865_v35  ;;  %v679_v35 = vld [vmem:[#allocation2 + $0xd0] sm:$0xff] }
 0x3f7   : > { %4116 = vmatmul.msk.f32.vlgmr.msra.gmra.mxu1 %vm1663_vm12, %v1655_v37 }
 0x3f9   : > { %4118 = vmatmul.msk.f32.vlgmr.msra.gmra.mxu0 %vm1663_vm12, %v4756_v26  ;;  %v886_v26 = vld [vmem:[%s4485_s24 + $0xa0] sm:$0xff] }
 0x3fa   : > { %948 = vmatpush.msrb.mxu2 %v886_v26 }
 0x3fb   : > { %v4303_v49 = vpop.eup %4302 }
 0x3fc   : > { %v1987_v51 = vmul.f32 %v4303_v49, %v4297_v6  ;;  %949 = vmatpush.msrb.mxu2 %v885_v16  ;;  %v624_v6 = vpop.permute.xlu0 %623 }
 0x3fd   : > { %v665_v55 = vsel %vm661_vm5, %v4697_v30, %v624_v6  ;;  %v4256_v30 = vld [vmem:[#allocation2 + $0xd8] ss:$0 sm:$0xff] }
 0x3fe   : > { %2007 = vmatpush.msrb.mxu1 %v1987_v51  ;;  %950 = vmatpush.msrb.mxu2 %v884_v14 }
 0x3ff   : > { %4119 = vmatmul.msk.f32.vlgmr.msrb.gmra.mxu1 %vm1663_vm12, %v4846_v28 }
 0x400   : > { %2071 = vmatpush.msra.mxu1 %v4850_v9  ;;  %951 = vmatpush.msrb.mxu2 %v883_v25 }
 0x401   : > { %4121 = vmatmul.msk.f32.vlgmr.msrb.gmra.mxu0 %vm1663_vm12, %v4754_v10  ;;  %4070 = vmatmul.msk.f32.vlgmr.msrb.gmra.mxu2 %vm799_vm13, %v867_v43 }
 0x407   : > { %4122 = vmatmul.msk.f32.vlgmr.msra.gmra.mxu1 %vm1663_vm12, %v4754_v10  ;;  %v2158_v10 = vld [vmem:[#allocation2 + $0x448] sm:$0xff] }
 0x408   : > { %2176 = vmatpush.msra.mxu0 %v2158_v10 }
 0x409   : > { %4071 = vmatmul.msk.f32.gmra.mxu2 %vm799_vm13, %v868_v7 }
 0x40a   : > { %2177 = vmatpush.msra.mxu0 %v2157_v58 }
 0x40c   : > { %2178 = vmatpush.msra.mxu0 %v2156_v23 }
 0x40e   : > { %2179 = vmatpush.msra.mxu0 %v2155_v59 }
 0x411   : > { %4072 = vmatmul.msk.f32.gmra.mxu2 %vm799_vm13, %v869_v31 }
 0x419   : > { %4073 = vmatmul.msk.f32.gmra.mxu2 %vm799_vm13, %v870_v62 }
 0x421   : > { %4074 = vmatmul.msk.f32.gmra.mxu2 %vm799_vm13, %v871_v56  ;;  %v876_v56 = vld [vmem:[#allocation2 + $0x1a0] sm:$0xff] }
 0x429   : > { %4075 = vmatmul.msk.f32.gmra.mxu2 %vm799_vm13, %v872_v15  ;;  %v4257_v15 = vld [vmem:[#allocation2 + $0xe0] ss:$0 sm:$0xff] }
 0x431   : > { %4076 = vmatmul.msk.f32.gmra.mxu2 %vm799_vm13, %v873_v63 }
 0x439   : > { %4077 = vmatmul.msk.f32.gmra.mxu2 %vm799_vm13, %v874_v2 }
 0x43e   : > { %v460_v0 = vpop.xlane.xlu2 %459 }
 0x43f   : > { %v461_v20 = vmul.f32 %v460_v0, %v4608_v5 }
 0x441   : > { %v462_v1 = vadd.f32 1e-05, %v461_v20  ;;  %4078 = vmatmul.msk.f32.gmra.mxu2 %vm799_vm13, %v875_v60 }
 0x443   : > { %4304 = vrsqrt.f32 %v462_v1  ;;  %vm469_vm9 = vweird.f32 %v462_v1 }
 0x446   : > { %v622_v8 = vpop.permute.xlu2 %621 }
 0x447   : > { %v664_v12 = vsel %vm661_vm5, %v4695_v29, %v622_v8  ;;  %v656_v29 = vpop.permute.xlu0 %655 }
 0x448   : > { %v669_v27 = vsel %vm666_vm6, %v664_v12, %v638_v46 }
 0x449   : > { %v4305_v36 = vpop.eup %4304  ;;  %v674_v45 = vsel %vm671_vm7, %v669_v27, %v654_v22  ;;  %4079 = vmatmul.msk.f32.gmra.mxu2 %vm799_vm13, %v876_v56  ;;  %v878_v27 = vld [vmem:[#allocation2 + $0x1b0] sm:$0xff] }
 0x44a   : > { %v464_v21 = vmul.f32 %v4305_v36, %v462_v1  ;;  %v682_v37 = vadd.f32 %v678_v32, %v674_v45  ;;  %vm470_vm8 = vweird.f32 %v4305_v36  ;;  %v877_v1 = vld [vmem:[#allocation2 + $0x1a8] sm:$0xff] }
 0x44b   : > { %vm471_vm10 = vmor %vm469_vm9, %vm470_vm8 }
 0x44c   : > { %v465_v24 = vmul.f32 %v4305_v36, %v464_v21  ;;  %v696_v51 = vsel %vm692_vm4, %v682_v37, 0.0 }
 0x44d   : > { %v697_v43 = vadd.f32 %v696_v51, %v4823_v61  ;;  %v4888_v61 = vpop.f32.mrf.mxu0 }
 0x44e   : > { %v466_v4 = vmul.f32 0.5, %v465_v24  ;;  %v640_v49 = vpop.permute.xlu2 %639 }
 0x44f   : > { %v670_v13 = vsel %vm666_vm6, %v665_v55, %v640_v49 }
 0x450   : > { %v467_v26 = vsub.f32 1.5, %v466_v4  ;;  %v675_v16 = vsel %vm671_vm7, %v670_v13, %v656_v29  ;;  %v879_v29 = vld [vmem:[#allocation2 + $0x1b8] sm:$0xff] }
 0x451   : > { %v683_v14 = vadd.f32 %v679_v35, %v675_v16  ;;  %4080 = vmatmul.msk.f32.gmra.mxu2 %vm799_vm13, %v877_v1 }
 0x452   : > { %v468_v25 = vmul.f32 %v4305_v36, %v467_v26 }
 0x453   : > { %v698_v7 = vsel %vm692_vm4, %v683_v14, 0.0 }
 0x454   : > { %v472_v31 = vsel %vm471_vm10, %v4305_v36, %v468_v25  ;;  %v699_v62 = vadd.f32 %v698_v7, %v697_v43  ;;  %v880_v43 = vld [vmem:[#allocation2 + $0x1c0] sm:$0xff] }
 0x455   : > { %v473_v10 = vmul.f32 %v472_v31, %v4803_v19  ;;  %v4902_v32 = vpop.f32.mrf.mxu0 }
 0x456   : > { %v700_v58 = vrot.slane %v699_v62, 4 }
 0x457   : > { %v475_v23 = vmul.f32 %v4256_v30, %v473_v10 }
 0x458   : > { %v701_v59 = vadd.f32 %v700_v58, %v699_v62  ;;  %v881_v58 = vld [vmem:[#allocation2 + $0x1c8] sm:$0xff] }
 0x459   : > { %v477_v46 = vadd.f32 %v4257_v15, %v475_v23  ;;  %4081 = vmatmul.msk.f32.gmra.mxu2 %vm799_vm13, %v878_v27 }
 0x45a   : > { %v702_v0 = vrot.slane %v701_v59, 2 }
 0x45b   : > { %4125 = vmatmul.msk.f32.vlgmr.msra.gmra.mxu0 %vm220_vm0, %v477_v46 }
 0x45c   : > { %v703_v63 = vadd.f32 %v702_v0, %v701_v59 }
 0x45e   : > { %v704_v20 = vrot.slane %v703_v63, 1 }
 0x460   : > { %v705_v2 = vadd.f32 %v704_v20, %v703_v63 }
 0x461   : > { %4082 = vmatmul.msk.f32.gmra.mxu2 %vm799_vm13, %v879_v29 }
 0x462   : > { %v706_v19 = vmul.f32 %v705_v2, %v4608_v5 }
 0x464   : > { %v4893_v6 = vsub.f32 %v4813_v18, %v706_v19  ;;  %v4896_v8 = vsub.f32 %v4817_v57, %v706_v19  ;;  %v4898_v12 = vsub.f32 %v682_v37, %v706_v19  ;;  %v4900_v22 = vsub.f32 %v683_v14, %v706_v19 }
 0x466   : > { %v711_v36 = vmul.f32 %v4893_v6, %v4893_v6  ;;  %v712_v45 = vmul.f32 %v4896_v8, %v4896_v8  ;;  %v713_v18 = vmul.f32 %v4898_v12, %v4898_v12  ;;  %v714_v57 = vmul.f32 %v4900_v22, %v4900_v22 }
 0x468   : > { %v715_v21 = vsel %vm692_vm4, %v711_v36, 0.0  ;;  %v716_v37 = vsel %vm692_vm4, %v712_v45, 0.0  ;;  %v718_v60 = vsel %vm692_vm4, %v713_v18, 0.0  ;;  %v720_v4 = vsel %vm692_vm4, %v714_v57, 0.0 }
 0x469   : > { %v717_v24 = vadd.f32 %v716_v37, %v715_v21  ;;  %4083 = vmatmul.msk.f32.gmra.mxu2 %vm799_vm13, %v880_v43  ;;  %v882_v21 = vld [vmem:[#allocation2 + $0x1d0] sm:$0xff] }
 0x46b   : > { %v719_v55 = vadd.f32 %v718_v60, %v717_v24 }
 0x46d   : > { %v721_v35 = vadd.f32 %v720_v4, %v719_v55 }
 0x46e   : > { %v4917_v49 = vpop.f32.mrf.mxu0 }
 0x46f   : > { %v722_v51 = vrot.slane %v721_v35, 4 }
 0x471   : > { %v723_v13 = vadd.f32 %v722_v51, %v721_v35  ;;  %4084 = vmatmul.msk.f32.gmra.mxu2 %vm799_vm13, %v881_v58 }
 0x473   : > { %v724_v26 = vrot.slane %v723_v13, 2 }
 0x474   : > { %v4920_v16 = vpop.f32.mrf.mxu1 }
 0x475   : > { %v725_v14 = vadd.f32 %v724_v26, %v723_v13 }
 0x476   : > { %v1950_v25 = vpop.f32.mrf.mxu0 }
 0x477   : > { %v1954_v30 = vmul.f32 0.35355338, %v1950_v25  ;;  %v726_v7 = vrot.slane %v725_v14, 1 }
 0x479   : > { %v1961_v31 = vrot.slane %v1954_v30, 4  ;;  %v727_v62 = vadd.f32 %v726_v7, %v725_v14  ;;  %4085 = vmatmul.msk.f32.gmra.mxu2 %vm799_vm13, %v882_v21 }
 0x47b   : > { %v1962_v56 = vmax.f32 %v1954_v30, %v1961_v31  ;;  %v728_v10 = vmul.f32 %v727_v62, %v4608_v5 }
 0x47c   : > { %v4924_v15 = vpop.f32.mrf.mxu1 }
 0x47d   : > { %v1963_v23 = vrot.slane %v1962_v56, 2  ;;  %v729_v59 = vadd.f32 1e-05, %v728_v10 }
 0x47e   : > { %v2053_v46 = vpop.f32.mrf.mxu0 }
 0x47f   : > { %v1964_v0 = vmax.f32 %v1962_v56, %v1963_v23  ;;  %v2076_v63 = vmul.f32 0.35355338, %v2053_v46  ;;  %4306 = vrsqrt.f32 %v729_v59  ;;  %vm736_vm8 = vweird.f32 %v729_v59 }
 0x481   : > { %v1965_v20 = vrot.slane %v1964_v0, 1  ;;  %v2078_v1 = vrot.slane %v2076_v63, 4 }
 0x483   : > { %v1966_v2 = vmax.f32 %v1964_v0, %v1965_v20  ;;  %v2079_v19 = vmax.f32 %v2076_v63, %v2078_v1 }
 0x484   : > { %v2073_v27 = vpop.f32.mrf.mxu1 }
 0x485   : > { %v4307_v36 = vpop.eup %4306  ;;  %v1968_v45 = vsub.f32 %v1954_v30, %v1966_v2  ;;  %v2080_v18 = vrot.slane %v2079_v19, 2  ;;  %v2077_v57 = vmul.f32 0.35355338, %v2073_v27 }
 0x486   : > { %v731_v37 = vmul.f32 %v4307_v36, %v729_v59  ;;  %vm737_vm11 = vweird.f32 %v4307_v36 }
 0x487   : > { %v1971_v24 = vmul.f32 1.442695, %v1968_v45  ;;  %v2081_v60 = vmax.f32 %v2079_v19, %v2080_v18  ;;  %v2084_v55 = vrot.slane %v2077_v57, 4  ;;  %vm738_vm9 = vmor %vm736_vm8, %vm737_vm11 }
 0x488   : > { %v732_v4 = vmul.f32 %v4307_v36, %v731_v37 }
 0x489   : > { %4308 = vpow2.f32 %v1971_v24  ;;  %v2082_v35 = vrot.slane %v2081_v60, 1  ;;  %v2085_v29 = vmax.f32 %v2077_v57, %v2084_v55 }
 0x48a   : > { %v733_v51 = vmul.f32 0.5, %v732_v4 }
 0x48b   : > { %v2083_v13 = vmax.f32 %v2081_v60, %v2082_v35  ;;  %v2086_v26 = vrot.slane %v2085_v29, 2 }
 0x48c   : > { %v734_v14 = vsub.f32 1.5, %v733_v51 }
 0x48d   : > { %v2090_v25 = vsub.f32 %v2076_v63, %v2083_v13  ;;  %v2087_v43 = vmax.f32 %v2085_v29, %v2086_v26  ;;  %v1620_v13 = vpop.permute.xlu1 %1619 }
 0x48e   : > { %v735_v30 = vmul.f32 %v4307_v36, %v734_v14 }
 0x48f   : > { %v4309_v7 = vpop.eup %4308  ;;  %v2092_v31 = vmul.f32 1.442695, %v2090_v25  ;;  %v2088_v62 = vrot.slane %v2087_v43, 1  ;;  %v1661_v25 = vadd.f32 %v4799_v11, %v1620_v13 }
 0x490   : > { %v1979_v56 = vrot.slane %v4309_v7, 4  ;;  %v739_v10 = vsel %vm738_vm9, %v4307_v36, %v735_v30 }
 0x491   : > { %4310 = vpow2.f32 %v2092_v31  ;;  %v2089_v58 = vmax.f32 %v2087_v43, %v2088_v62  ;;  %v4929_v23 = vmul.f32 %v739_v10, %v4900_v22  ;;  %v4932_v46 = vmul.f32 %v739_v10, %v4898_v12  ;;  %v4258_v62 = vld [vmem:[#allocation2 + $0x450] ss:$0 sm:$0xff] }
 0x492   : > { %v1980_v0 = vadd.f32 %v4309_v7, %v1979_v56  ;;  %v4935_v63 = vmul.f32 %v739_v10, %v4896_v8  ;;  %v4938_v59 = vmul.f32 %v739_v10, %v4893_v6  ;;  %v691_v10 = vld [vmem:[#allocation2 + $0x120] sm:$0xff] }
 0x493   : > { %v2091_v20 = vsub.f32 %v2077_v57, %v2089_v58  ;;  %v832_v58 = vrot.slane %v4791_v3, 5 }
 0x494   : > { %v1981_v1 = vrot.slane %v1980_v0, 2 }
 0x495   : > { %v2094_v2 = vmul.f32 1.442695, %v2091_v20  ;;  %v684_v20 = vld [vmem:[#allocation2 + $0xe8] sm:$0xff] }
 0x496   : > { %v1982_v19 = vadd.f32 %v1981_v1, %v1980_v0  ;;  %v2875_v1 = vld [vmem:[#allocation2 + $0x418] sm:$0xff] }
 0x497   : > { %v4311_v27 = vpop.eup %4310  ;;  %4312 = vpow2.f32 %v2094_v2  ;;  %v2188_v2 = vld [vmem:[#allocation2 + $0x478] sm:$0xff] }
 0x498   : > { %v1983_v36 = vrot.slane %v1982_v19, 1  ;;  %v2096_v45 = vrot.slane %v4311_v27, 4 }
 0x49a   : > { %v1984_v22 = vadd.f32 %v1983_v36, %v1982_v19  ;;  %v2097_v18 = vadd.f32 %v4311_v27, %v2096_v45  ;;  %v824_v45 = vrot.slane %v4791_v3, 7 }
 0x49c   : > { %4314 = vrcp.f32 %v1984_v22  ;;  %v2098_v12 = vrot.slane %v2097_v18, 2  ;;  %v2909_v22 = vld [vmem:[#allocation2 + $0x4b0] sm:$0xff] }
 0x49d   : > { %v4313_v21 = vpop.eup %4312 }
 0x49e   : > { %v2099_v37 = vadd.f32 %v2098_v12, %v2097_v18  ;;  %v2102_v24 = vrot.slane %v4313_v21, 4  ;;  %v2908_v12 = vld [vmem:[#allocation2 + $0x4a8] sm:$0xff] }
 0x4a0   : > { %v2100_v8 = vrot.slane %v2099_v37, 1  ;;  %v2103_v60 = vadd.f32 %v4313_v21, %v2102_v24  ;;  %v2912_v24 = vld [vmem:[#allocation2 + $0x4c8] sm:$0xff] }
 0x4a2   : > { %v4315_v55 = vpop.eup %4314  ;;  %v2101_v6 = vadd.f32 %v2100_v8, %v2099_v37  ;;  %v2104_v4 = vrot.slane %v2103_v60, 2  ;;  %v2913_v37 = vld [vmem:[#allocation2 + $0x4d0] sm:$0xff] }
 0x4a3   : > { %v1988_v57 = vmul.f32 %v4315_v55, %v4309_v7 }
 0x4a4   : > { %4316 = vrcp.f32 %v2101_v6  ;;  %v2105_v35 = vadd.f32 %v2104_v4, %v2103_v60  ;;  %v2906_v60 = vld [vmem:[#allocation2 + $0x498] sm:$0xff]  ;;  %v762_v4 = vpop.permute.xlu0 %761 }
 0x4a5   : > { %2027 = vmatpush.msrb.mxu3 %v1988_v57  ;;  %v2910_v6 = vld [vmem:[#allocation2 + $0x4b8] sm:$0xff] }
 0x4a6   : > { %4120 = vmatmul.msk.f32.vlgmr.msrb.gmra.mxu3 %vm1663_vm12, %v4846_v28  ;;  %v2106_v29 = vrot.slane %v2105_v35, 1  ;;  %v4947_v28 = vpop.f32.mrf.mxu2 }
 0x4a8   : > { %v2107_v51 = vadd.f32 %v2106_v29, %v2105_v35  ;;  %v757_v35 = vpop.permute.xlu1 %756 }
 0x4aa   : > { %v4317_v26 = vpop.eup %4316  ;;  %4318 = vrcp.f32 %v2107_v51 }
 0x4ab   : > { %v2110_v14 = vmul.f32 %v4317_v26, %v4311_v27  ;;  %v2877_v27 = vld [vmem:[#allocation2 + $0x428] sm:$0xff] }
 0x4ac   : > { %v752_v51 = vpop.permute.xlu0 %751 }
 0x4ad   : > { %2130 = vmatpush.msra.mxu2 %v2110_v14  ;;  %v767_v14 = vmul.f32 %v762_v4, %v4929_v23 }
 0x4ae   : > { %4123 = vmatmul.msk.f32.vlgmr.msra.gmra.mxu2 %vm1663_vm12, %v1661_v25  ;;  %v4950_v7 = vpop.f32.mrf.mxu2 }
 0x4af   : > { %2271 = vmatpush.msrb.mxu2 %v4701_v38 }
 0x4b0   : > { %v4319_v43 = vpop.eup %4318  ;;  %v781_v26 = vpop.permute.xlu1 %780 }
 0x4b1   : > { %v2111_v30 = vmul.f32 %v4319_v43, %v4313_v21 }
 0x4b3   : > { %2150 = vmatpush.msra.mxu3 %v2111_v30 }
 0x4b4   : > { %4124 = vmatmul.msk.f32.vlgmr.msra.gmra.mxu3 %vm1663_vm12, %v1661_v25  ;;  %v766_v25 = vmul.f32 %v757_v35, %v4932_v46 }
 0x4b5   : > { %2291 = vmatpush.msrb.mxu3 %v4703_v44 }
 0x4b6   : > { %v4952_v31 = vpop.f32.mrf.mxu2 }
 0x4b7   : > { %2404 = vmatpush.msra.mxu3 %v4707_v47  ;;  %v2191_v47 = vld [vmem:[#allocation2 + $0x490] sm:$0xff] }
 0x4be   : > { %v4954_v11 = vpop.f32.mrf.mxu2 }
 0x4c6   : > { %v4960_v44 = vpop.f32.mrf.mxu2 }
 0x4ce   : > { %v968_v0 = vpop.f32.mrf.mxu2 }
 0x4d6   : > { %v4964_v19 = vpop.f32.mrf.mxu2 }
 0x4d8   : > { %v2181_v56 = vpop.f32.mrf.mxu0 }
 0x4d9   : > { %v2182_v38 = vadd.f32 %v4258_v62, %v2181_v56  ;;  %v765_v62 = vmul.f32 %v752_v51, %v4935_v63  ;;  %v776_v56 = vpop.permute.xlu0 %775 }
 0x4db   : > { %2518 = vrot.lane.b32.xlu1 %v2182_v38, %s4441_s4  ;;  %2385 = vrot.lane.b32.xlu2 %v2182_v38, %s4442_s5 }
 0x4dc   : > { %4130 = vmatmul.msk.f32.vlgmr.msrb.gmra.mxu2 %vm1663_vm12, %v2182_v38  ;;  %4131 = vmatmul.msk.f32.vlgmr.msrb.gmra.mxu3 %vm1663_vm12, %v2182_v38 }
 0x4de   : > { %v4967_v36 = vpop.f32.mrf.mxu2 }
 0x4e1   : > { %v4990_v46 = vpop.permute.xlu0 %2199 }
 0x4e3   : > { %2209 = vperm.xlu1 %4253, %v2191_v47   ;;  %785 = vperm.xlu2 %4254, %v691_v10   ;;  %v789_v10 = vadd.f32 %v776_v56, %v765_v62  ;;  %v1070_v56 = vld [vmem:[#allocation2 + $0x210] sm:$0xff] }
 0x4e6   : > { %v4971_v18 = vpop.f32.mrf.mxu2 }
 0x4eb   : > { %833 = vrot.lane.b32.xlu1 %v832_v58, %s4444_s7  ;;  %746 = vperm.xlu2 %4254, %v684_v20   ;;  %v771_v58 = vpop.permute.xlu1 %770 }
 0x4ee   : > { %v980_v21 = vpop.f32.mrf.mxu2 }
 0x4f3   : > { %2885 = vperm.xlu1 %4253, %v2875_v1   ;;  %2194 = vperm.xlu2 %4254, %v2188_v2   ;;  %v2184_v1 = vld [vmem:[#allocation2 + $0x458] sm:$0xff] }
 0x4f6   : > { %v4973_v8 = vpop.f32.mrf.mxu2 }
 0x4fb   : > { %2895 = vperm.xlu1 %4253, %v2877_v27   ;;  %2651 = vrot.lane.b32.xlu2 %v2182_v38, %s4440_s30  ;;  %v790_v38 = vadd.f32 %v781_v26, %v766_v25 }
 0x4fe   : > { %v4975_v55 = vpop.f32.mrf.mxu2 }
 0x503   : > { %3017 = vperm.xlu1 %4253, %v2909_v22   ;;  %825 = vrot.lane.b32.xlu2 %v824_v45, %s4445_s8  ;;  %v2185_v22 = vld [vmem:[#allocation2 + $0x460] sm:$0xff] }
 0x506   : > { %v4977_v57 = vpop.f32.mrf.mxu2 }
 0x50b   : > { %3012 = vperm.xlu1 %4253, %v2908_v12   ;;  %v5004_v12 = vpop.permute.xlu0 %2204 }
 0x50e   : > { %v992_v13 = vpop.f32.mrf.mxu2 }
 0x513   : > { %3045 = vperm.xlu1 %4253, %v2913_v37   ;;  %v830_v35 = vpop.permute.xlu0 %829 }
 0x516   : > { %v995_v47 = vpop.f32.mrf.mxu2 }
 0x51b   : > { %3040 = vperm.xlu1 %4253, %v2912_v24  }
 0x51e   : > { %v4994_v63 = vpop.f32.mrf.mxu2 }
 0x523   : > { %3002 = vperm.xlu1 %4253, %v2906_v60   ;;  %v1072_v60 = vld [vmem:[#allocation2 + $0x220] sm:$0xff] }
 0x529   : > { %v5001_v45 = vpop.f32.mrf.mxu3 }
 0x52b   : > { %3030 = vperm.xlu1 %4253, %v2910_v6   ;;  %v2186_v6 = vld [vmem:[#allocation2 + $0x468] sm:$0xff] }
 0x531   : > { %v5010_v24 = vpop.f32.mrf.mxu2 }
 0x533   : > { %1007 = vrot.lane.b32.xlu1 %v968_v0, %s4443_s6 }
 0x535   : > { %v4980_v29 = vpop.permute.xlu2 %2385 }
 0x536   : > { %4136 = vmatmul.msk.f32.vlgmr.msra.gmra.mxu3 %vm1663_vm12, %v4980_v29 }
 0x53b   : > { %1023 = vrot.lane.b32.xlu1 %v980_v21, %s4446_s9 }
 0x53d   : > { %v786_v43 = vpop.permute.xlu2 %785 }
 0x53e   : > { %v791_v30 = vadd.f32 %v786_v43, %v767_v14 }
 0x540   : > { %2236 = vmatpush.msrb.mxu1 %v791_v30 }
 0x542   : > { %2237 = vmatpush.msrb.mxu1 %v790_v38  ;;  %v2187_v38 = vld [vmem:[#allocation2 + $0x470] sm:$0xff] }
 0x543   : > { %1039 = vrot.lane.b32.xlu1 %v992_v13, %s4447_s10 }
 0x544   : > { %2238 = vmatpush.msrb.mxu1 %v789_v10 }
 0x545   : > { %v747_v0 = vpop.permute.xlu2 %746 }
 0x546   : > { %v764_v20 = vmul.f32 %v747_v0, %v4938_v59  ;;  %v3060_v59 = vld [vmem:[#allocation2 + $0x4f8] sm:$0xff] }
 0x548   : > { %v788_v23 = vadd.f32 %v771_v58, %v764_v20 }
 0x54a   : > { %2239 = vmatpush.msrb.mxu1 %v788_v23 }
 0x54b   : > { %1041 = vrot.lane.b32.xlu1 %v995_v47, %s4447_s10  ;;  %4126 = vmatmul.msk.f32.vlgmr.msrb.gmra.mxu1 %vm220_vm0, %v2184_v1 }
 0x54c   : > { %2670 = vmatpush.msra.mxu1 %v4836_v17  ;;  %v5012_v17 = vpop.f32.mrf.mxu3 }
 0x54d   : > { %v4997_v2 = vpop.permute.xlu2 %2194  ;;  %v4999_v27 = vpop.permute.xlu1 %2518 }
 0x553   : > { %3066 = vperm.xlu1 %4253, %v3060_v59   ;;  %4127 = vmatmul.msk.f32.gmra.mxu1 %vm220_vm0, %v2185_v22  ;;  %v1074_v22 = vld [vmem:[#allocation2 + $0x230] sm:$0xff] }
 0x555   : > { %v5006_v21 = vpop.permute.xlu2 %2651  ;;  %v5008_v37 = vpop.permute.xlu1 %2209 }
 0x55b   : > { %1145 = vperm.xlu1 %4253, %v1072_v60   ;;  %4128 = vmatmul.msk.f32.gmra.mxu1 %vm220_vm0, %v2186_v6 }
 0x55d   : > { %v826_v4 = vpop.permute.xlu2 %825  ;;  %v834_v13 = vpop.permute.xlu1 %833 }
 0x55e   : > { %v836_v51 = vsel %vm436_vm14, %v4791_v3, %v826_v4 }
 0x55f   : > { %v2273_v26 = vpop.f32.mrf.mxu2  ;;  %v2293_v14 = vpop.f32.mrf.mxu3  ;;  %v837_v25 = vsel %vm438_vm15, %v836_v51, %v830_v35 }
 0x560   : > { %v2296_v43 = vmul.f32 0.35355338, %v2273_v26  ;;  %v2297_v30 = vmul.f32 0.35355338, %v2293_v14  ;;  %v5019_v62 = vsel %vm440_vm2, %v837_v25, %v834_v13  ;;  %v3188_v25 = vld [vmem:[#allocation2 + $0x568] sm:$0xff] }
 0x561   : > { %v841_v47 = vsel %vm444_vm3, %v5019_v62, 0.0 }
 0x562   : > { %v2298_v10 = vsel %vm1221_vm1, %v2296_v43, -inf  ;;  %v2305_v58 = vsel %vm1221_vm1, %v2297_v30, -inf  ;;  %842 = vadd.xlane.f32.xlu2 %v841_v47  ;;  %v2907_v47 = vld [vmem:[#allocation2 + $0x4a0] sm:$0xff] }
 0x563   : > { %v2299_v3 = vrot.slane %v2298_v10, 4  ;;  %v2306_v0 = vrot.slane %v2305_v58, 4  ;;  %1135 = vperm.xlu1 %4253, %v1070_v56   ;;  %4129 = vmatmul.msk.f32.gmra.mxu1 %vm220_vm0, %v2187_v38 }
 0x565   : > { %v2300_v20 = vmax.f32 %v2298_v10, %v2299_v3  ;;  %v2307_v23 = vmax.f32 %v2305_v58, %v2306_v0  ;;  %v3063_v10 = vld [vmem:[#allocation2 + $0x510] sm:$0xff] }
 0x567   : > { %v2301_v1 = vrot.slane %v2300_v20, 2  ;;  %v2308_v59 = vrot.slane %v2307_v23, 2 }
 0x569   : > { %v2302_v60 = vmax.f32 %v2300_v20, %v2301_v1  ;;  %v2309_v6 = vmax.f32 %v2307_v23, %v2308_v59 }
 0x56b   : > { %v2303_v4 = vrot.slane %v2302_v60, 1  ;;  %v2310_v35 = vrot.slane %v2309_v6, 1  ;;  %1159 = vperm.xlu1 %4253, %v1074_v22   ;;  %4148 = vmatmul.msk.f32.vlgmr.msra.gmra.mxu1 %vm1663_vm12, %v5006_v21 }
 0x56d   : > { %v2304_v51 = vmax.f32 %v2302_v60, %v2303_v4  ;;  %v2311_v13 = vmax.f32 %v2309_v6, %v2310_v35  ;;  %v3190_v60 = vld [vmem:[#allocation2 + $0x578] sm:$0xff] }
 0x56f   : > { %v2312_v26 = vsub.f32 %v2296_v43, %v2304_v51  ;;  %v2313_v14 = vsub.f32 %v2297_v30, %v2311_v13 }
 0x571   : > { %v2314_v56 = vmul.f32 1.442695, %v2312_v26  ;;  %v2316_v38 = vmul.f32 1.442695, %v2313_v14  ;;  %v3866_v14 = vld [vmem:[#allocation2 + $0x5a8] sm:$0xff] }
 0x573   : > { %4320 = vpow2.f32 %v2314_v56  ;;  %3198 = vperm.xlu1 %4253, %v3188_v25  }
 0x574   : > { %4322 = vpow2.f32 %v2316_v38 }
 0x579   : > { %v4321_v58 = vpop.eup %4320 }
 0x57a   : > { %v4323_v3 = vpop.eup %4322  ;;  %v2318_v0 = vsel %vm1221_vm1, %v4321_v58, 0.0  ;;  %3007 = vperm.xlu2 %4254, %v2907_v47  }
 0x57b   : > { %v2319_v20 = vrot.slane %v2318_v0, 4  ;;  %v2325_v23 = vsel %vm1221_vm1, %v4323_v3, 0.0  ;;  %3081 = vperm.xlu1 %4253, %v3063_v10   ;;  %v1075_v10 = vld [vmem:[#allocation2 + $0x238] sm:$0xff] }
 0x57c   : > { %v2326_v1 = vrot.slane %v2325_v23, 4 }
 0x57d   : > { %v2320_v43 = vadd.f32 %v2319_v20, %v2318_v0 }
 0x57e   : > { %v2327_v30 = vadd.f32 %v2326_v1, %v2325_v23  ;;  %v1073_v23 = vld [vmem:[#allocation2 + $0x228] sm:$0xff] }
 0x57f   : > { %v2321_v59 = vrot.slane %v2320_v43, 2 }
 0x580   : > { %v2328_v22 = vrot.slane %v2327_v30, 2 }
 0x581   : > { %v2322_v6 = vadd.f32 %v2321_v59, %v2320_v43 }
 0x582   : > { %v2329_v4 = vadd.f32 %v2328_v22, %v2327_v30  ;;  %1005 = vrot.lane.b32.xlu2 %v4960_v44, %s4443_s6  ;;  %v3061_v44 = vld [vmem:[#allocation2 + $0x500] sm:$0xff]  ;;  %v3062_v30 = vld [vmem:[#allocation2 + $0x508] sm:$0xff] }
 0x583   : > { %v2323_v35 = vrot.slane %v2322_v6, 1  ;;  %3208 = vperm.xlu1 %4253, %v3190_v60  }
 0x584   : > { %v2330_v51 = vrot.slane %v2329_v4, 1 }
 0x585   : > { %v2324_v13 = vadd.f32 %v2323_v35, %v2322_v6 }
 0x586   : > { %v2331_v26 = vadd.f32 %v2330_v51, %v2329_v4 }
 0x587   : > { %4324 = vrcp.f32 %v2324_v13 }
 0x588   : > { %4326 = vrcp.f32 %v2331_v26 }
 0x58a   : > { %1021 = vrot.lane.b32.xlu2 %v4971_v18, %s4446_s9  ;;  %v1071_v18 = vld [vmem:[#allocation2 + $0x218] sm:$0xff] }
 0x58b   : > { %3876 = vperm.xlu1 %4253, %v3866_v14  }
 0x58d   : > { %v4325_v25 = vpop.eup %4324 }
 0x58e   : > { %v4327_v56 = vpop.eup %4326  ;;  %v2334_v38 = vmul.f32 %v4325_v25, %v4321_v58 }
 0x58f   : > { %v2335_v47 = vmul.f32 %v4327_v56, %v4323_v3 }
 0x590   : > { %4132 = vmatpush.msk.msrb.mxu0 %vm1221_vm1, %v2334_v38 }
 0x591   : > { %4134 = vmatpush.msk.msra.mxu2 %vm1221_vm1, %v2335_v47 }
 0x592   : > { %2424 = vmatpush.msra.mxu0 %v4709_v48  ;;  %1009 = vrot.lane.b32.xlu2 %v4964_v19, %s4443_s6 }
 0x59a   : > { %1025 = vrot.lane.b32.xlu2 %v4973_v8, %s4446_s9 }
 0x5a2   : > { %1027 = vrot.lane.b32.xlu2 %v4975_v55, %s4446_s9 }
 0x5aa   : > { %3071 = vperm.xlu2 %4254, %v3061_v44  }
 0x5b2   : > { %1140 = vperm.xlu2 %4254, %v1071_v18  }
 0x5b9   : > { %v2406_v58 = vpop.f32.mrf.mxu3 }
 0x5ba   : > { %v2429_v3 = vmul.f32 0.35355338, %v2406_v58  ;;  %1164 = vperm.xlu2 %4254, %v1075_v10   ;;  %v2911_v10 = vld [vmem:[#allocation2 + $0x4c0] sm:$0xff] }
 0x5bc   : > { %v2431_v0 = vsel %vm1221_vm1, %v2429_v3, -inf }
 0x5bd   : > { %v2432_v48 = vrot.slane %v2431_v0, 4 }
 0x5bf   : > { %v2433_v20 = vmax.f32 %v2431_v0, %v2432_v48 }
 0x5c1   : > { %v2434_v19 = vrot.slane %v2433_v20, 2 }
 0x5c2   : > { %1154 = vperm.xlu2 %4254, %v1073_v23  }
 0x5c3   : > { %v2435_v1 = vmax.f32 %v2433_v20, %v2434_v19 }
 0x5c5   : > { %v2436_v8 = vrot.slane %v2435_v1, 1 }
 0x5c7   : > { %v2437_v43 = vmax.f32 %v2435_v1, %v2436_v8 }
 0x5c8   : > { %v2241_v55 = vpop.f32.mrf.mxu1 }
 0x5c9   : > { %v2445_v59 = vsub.f32 %v2429_v3, %v2437_v43  ;;  %v2242_v22 = vadd.f32 %v2241_v55, %v4997_v2 }
 0x5ca   : > { %3076 = vperm.xlu2 %4254, %v3062_v30  }
 0x5cb   : > { %v2447_v60 = vmul.f32 1.442695, %v2445_v59  ;;  %4133 = vmatmul.msk.f32.vlgmr.msrb.gmra.mxu0 %vm692_vm4, %v2242_v22  ;;  %4135 = vmatmul.msk.f32.vlgmr.msra.gmra.mxu2 %vm692_vm4, %v2242_v22 }
 0x5cc   : > { %2537 = vmatpush.msrb.mxu0 %v4718_v50 }
 0x5cd   : > { %4328 = vpow2.f32 %v2447_v60 }
 0x5d0   : > { %v2244_v47 = vpop.f32.mrf.mxu1 }
 0x5d3   : > { %v4329_v6 = vpop.eup %4328  ;;  %4137 = vmatmul.msk.f32.vlgmr.msra.gmra.mxu0 %vm1663_vm12, %v4980_v29 }
 0x5d4   : > { %v2451_v4 = vsel %vm1221_vm1, %v4329_v6, 0.0 }
 0x5d5   : > { %v2452_v35 = vrot.slane %v2451_v4, 4  ;;  %v843_v51 = vpop.xlane.xlu2 %842 }
 0x5d6   : > { %v844_v13 = vmul.f32 %v843_v51, %v4608_v5 }
 0x5d7   : > { %v2453_v2 = vadd.f32 %v2452_v35, %v2451_v4 }
 0x5d8   : > { %v5053_v26 = vsub.f32 %v5019_v62, %v844_v13  ;;  %v5061_v62 = vadd.f32 %v2244_v47, %v4990_v46 }
 0x5d9   : > { %v2454_v14 = vrot.slane %v2453_v2, 2 }
 0x5da   : > { %v846_v25 = vmul.f32 %v5053_v26, %v5053_v26 }
 0x5db   : > { %v2455_v50 = vadd.f32 %v2454_v14, %v2453_v2  ;;  %4142 = vmatmul.msk.f32.vlgmr.msrb.gmra.mxu0 %vm1663_vm12, %v4999_v27 }
 0x5dc   : > { %v847_v29 = vsel %vm444_vm3, %v846_v25, 0.0 }
 0x5dd   : > { %v2456_v56 = vrot.slane %v2455_v50, 1  ;;  %848 = vadd.xlane.f32.xlu0 %v847_v29 }
 0x5df   : > { %v2457_v38 = vadd.f32 %v2456_v56, %v2455_v50 }
 0x5e1   : > { %4330 = vrcp.f32 %v2457_v38 }
 0x5e7   : > { %v4331_v44 = vpop.eup %4330 }
 0x5e8   : > { %v2467_v18 = vmul.f32 %v4331_v44, %v4329_v6 }
 0x5ea   : > { %4138 = vmatpush.msk.msrb.mxu2 %vm1221_vm1, %v2467_v18 }
 0x5eb   : > { %4139 = vmatmul.msk.f32.vlgmr.msrb.gmra.mxu2 %vm692_vm4, %v5061_v62 }
 0x5ec   : > { %2557 = vmatpush.msra.mxu2 %v4832_v54  ;;  %v5078_v54 = vpop.f32.mrf.mxu1 }
 0x5ee   : > { %2690 = vmatpush.msrb.mxu2 %v4850_v9 }
 0x5f1   : > { %3035 = vperm.xlu0 %4252, %v2911_v10  }
 0x5f3   : > { %4143 = vmatmul.msk.f32.vlgmr.msra.gmra.mxu2 %vm1663_vm12, %v4999_v27 }
 0x5f4   : > { %v5080_v9 = vpop.f32.mrf.mxu1 }
 0x5f9   : > { %1037 = vrot.lane.b32.xlu0 %v4977_v57, %s4447_s10 }
 0x5fb   : > { %4149 = vmatmul.msk.f32.vlgmr.msrb.gmra.mxu2 %vm1663_vm12, %v5006_v21 }
 0x5fc   : > { %v2672_v46 = vpop.f32.mrf.mxu1 }
 0x5fd   : > { %v2695_v58 = vmul.f32 0.35355338, %v2672_v46 }
 0x5ff   : > { %v2697_v27 = vsel %vm1221_vm1, %v2695_v58, -inf }
 0x600   : > { %v2698_v3 = vrot.slane %v2697_v27, 4 }
 0x601   : > { %1011 = vrot.lane.b32.xlu0 %v4967_v36, %s4443_s6 }
 0x602   : > { %v2699_v0 = vmax.f32 %v2697_v27, %v2698_v3 }
 0x604   : > { %v2700_v57 = vrot.slane %v2699_v0, 2 }
 0x606   : > { %v2701_v48 = vmax.f32 %v2699_v0, %v2700_v57 }
 0x608   : > { %v2702_v21 = vrot.slane %v2701_v48, 1 }
 0x609   : > { %1043 = vrot.lane.b32.xlu0 %v4994_v63, %s4447_s10 }
 0x60a   : > { %v2703_v23 = vmax.f32 %v2701_v48, %v2702_v21 }
 0x60c   : > { %v2711_v1 = vsub.f32 %v2695_v58, %v2703_v23 }
 0x60e   : > { %v2713_v30 = vmul.f32 1.442695, %v2711_v1 }
 0x610   : > { %4332 = vpow2.f32 %v2713_v30 }
 0x616   : > { %v5087_v25 = vpop.eup %4332 }
 0x617   : > { %v2717_v56 = vsel %vm1221_vm1, %v5087_v25, 0.0 }
 0x618   : > { %v2718_v18 = vrot.slane %v2717_v56, 4 }
 0x61a   : > { %v2719_v27 = vadd.f32 %v2718_v18, %v2717_v56 }
 0x61c   : > { %v2720_v21 = vrot.slane %v2719_v27, 2 }
 0x61e   : > { %v2721_v1 = vadd.f32 %v2720_v21, %v2719_v27 }
 0x648   : > { %v5083_v20 = vpop.f32.mrf.mxu0 }
 0x64e   : > { %v5091_v47 = vpop.f32.mrf.mxu2 }
 0x650   : > { %v2426_v36 = vpop.f32.mrf.mxu0 }
 0x651   : > { %v2430_v19 = vmul.f32 0.35355338, %v2426_v36 }
 0x653   : > { %v2438_v63 = vsel %vm1221_vm1, %v2430_v19, -inf }
 0x654   : > { %v2439_v8 = vrot.slane %v2438_v63, 4 }
 0x656   : > { %v2440_v43 = vmax.f32 %v2438_v63, %v2439_v8 }
 0x658   : > { %v2441_v55 = vrot.slane %v2440_v43, 2  ;;  %v2539_v59 = vpop.f32.mrf.mxu0 }
 0x659   : > { %v2562_v22 = vmul.f32 0.35355338, %v2539_v59 }
 0x65a   : > { %v2442_v60 = vmax.f32 %v2440_v43, %v2441_v55 }
 0x65b   : > { %v2564_v6 = vsel %vm1221_vm1, %v2562_v22, -inf }
 0x65c   : > { %v2443_v4 = vrot.slane %v2442_v60, 1  ;;  %v2565_v35 = vrot.slane %v2564_v6, 4 }
 0x65e   : > { %v2444_v51 = vmax.f32 %v2442_v60, %v2443_v4  ;;  %v2566_v13 = vmax.f32 %v2564_v6, %v2565_v35 }
 0x660   : > { %v2446_v2 = vsub.f32 %v2430_v19, %v2444_v51  ;;  %v2567_v14 = vrot.slane %v2566_v13, 2 }
 0x662   : > { %v2449_v50 = vmul.f32 1.442695, %v2446_v2  ;;  %v2568_v29 = vmax.f32 %v2566_v13, %v2567_v14 }
 0x664   : > { %4334 = vpow2.f32 %v2449_v50  ;;  %v2569_v38 = vrot.slane %v2568_v29, 1 }
 0x666   : > { %v2570_v44 = vmax.f32 %v2568_v29, %v2569_v38 }
 0x668   : > { %v2578_v10 = vsub.f32 %v2562_v22, %v2570_v44  ;;  %v2722_v22 = vrot.slane %v2721_v1, 1 }
 0x66a   : > { %v4335_v46 = vpop.eup %4334  ;;  %v2580_v58 = vmul.f32 1.442695, %v2578_v10  ;;  %v2723_v13 = vadd.f32 %v2722_v22, %v2721_v1 }
 0x66b   : > { %v2458_v3 = vsel %vm1221_vm1, %v4335_v46, 0.0 }
 0x66c   : > { %v2459_v0 = vrot.slane %v2458_v3, 4  ;;  %4336 = vpow2.f32 %v2580_v58 }
 0x66e   : > { %v2460_v57 = vadd.f32 %v2459_v0, %v2458_v3  ;;  %v5094_v48 = vpop.f32.mrf.mxu2 }
 0x670   : > { %v2461_v23 = vrot.slane %v2460_v57, 2 }
 0x672   : > { %v4337_v36 = vpop.eup %4336  ;;  %v2462_v19 = vadd.f32 %v2461_v23, %v2460_v57 }
 0x673   : > { %v2584_v63 = vsel %vm1221_vm1, %v4337_v36, 0.0 }
 0x674   : > { %v2463_v8 = vrot.slane %v2462_v19, 1  ;;  %v2585_v43 = vrot.slane %v2584_v63, 4 }
 0x676   : > { %v2464_v30 = vadd.f32 %v2463_v8, %v2462_v19  ;;  %v2586_v55 = vadd.f32 %v2585_v43, %v2584_v63  ;;  %v2559_v59 = vpop.f32.mrf.mxu2 }
 0x677   : > { %v2563_v60 = vmul.f32 0.35355338, %v2559_v59 }
 0x678   : > { %4338 = vrcp.f32 %v2464_v30  ;;  %v2587_v6 = vrot.slane %v2586_v55, 2 }
 0x679   : > { %v2571_v4 = vsel %vm1221_vm1, %v2563_v60, -inf  ;;  %4340 = vrcp.f32 %v2723_v13 }
 0x67a   : > { %v2588_v35 = vadd.f32 %v2587_v6, %v2586_v55  ;;  %v2572_v51 = vrot.slane %v2571_v4, 4 }
 0x67c   : > { %v2589_v2 = vrot.slane %v2588_v35, 1  ;;  %v2573_v14 = vmax.f32 %v2571_v4, %v2572_v51 }
 0x67e   : > { %v4339_v50 = vpop.eup %4338  ;;  %v2590_v29 = vadd.f32 %v2589_v2, %v2588_v35  ;;  %v2574_v56 = vrot.slane %v2573_v14, 2  ;;  %v2692_v38 = vpop.f32.mrf.mxu2 }
 0x67f   : > { %v2468_v44 = vmul.f32 %v4339_v50, %v4335_v46  ;;  %v2696_v18 = vmul.f32 0.35355338, %v2692_v38  ;;  %v4341_v21 = vpop.eup %4340  ;;  %v2248_v46 = vadd.f32 %v5078_v54, %v5004_v12 }
 0x680   : > { %4342 = vrcp.f32 %v2590_v29  ;;  %v2575_v10 = vmax.f32 %v2573_v14, %v2574_v56  ;;  %v2733_v30 = vmul.f32 %v4341_v21, %v5087_v25 }
 0x681   : > { %v2704_v58 = vsel %vm1221_vm1, %v2696_v18, -inf  ;;  %4140 = vmatpush.msk.msrb.mxu3 %vm1221_vm1, %v2468_v44 }
 0x682   : > { %v2576_v27 = vrot.slane %v2575_v10, 1  ;;  %v2705_v3 = vrot.slane %v2704_v58, 4  ;;  %4141 = vmatmul.msk.f32.vlgmr.msrb.gmra.mxu3 %vm692_vm4, %v5061_v62 }
 0x684   : > { %v2577_v0 = vmax.f32 %v2575_v10, %v2576_v27  ;;  %v2706_v57 = vmax.f32 %v2704_v58, %v2705_v3  ;;  %v5117_v58 = vpop.permute.xlu0 %2880 }
 0x686   : > { %v4343_v23 = vpop.eup %4342  ;;  %v2579_v19 = vsub.f32 %v2563_v60, %v2577_v0  ;;  %v2707_v1 = vrot.slane %v2706_v57, 2 }
 0x687   : > { %v2600_v63 = vmul.f32 %v4343_v23, %v4337_v36  ;;  %v2251_v36 = vadd.f32 %v5080_v9, %v5008_v37 }
 0x688   : > { %v2582_v8 = vmul.f32 1.442695, %v2579_v19  ;;  %v2708_v43 = vmax.f32 %v2706_v57, %v2707_v1 }
 0x689   : > { %4144 = vmatpush.msk.msra.mxu3 %vm1221_vm1, %v2600_v63 }
 0x68a   : > { %4344 = vpow2.f32 %v2582_v8  ;;  %v2709_v55 = vrot.slane %v2708_v43, 1  ;;  %4145 = vmatmul.msk.f32.vlgmr.msra.gmra.mxu3 %vm692_vm4, %v2248_v46 }
 0x68b   : > { %4150 = vmatpush.msk.msrb.mxu3 %vm1221_vm1, %v2733_v30  ;;  %v2792_v30 = vld [vmem:[#allocation2 + $0x3f0] sm:$0xff] }
 0x68c   : > { %v2710_v62 = vmax.f32 %v2708_v43, %v2709_v55  ;;  %v5119_v27 = vpop.permute.xlu0 %2890  ;;  %v2784_v43 = vadd.f32 %v5083_v20, %v4888_v61  ;;  %v3157_v55 = vld [vmem:[#allocation2 + $0x530] sm:$0xff]  ;;  %v2794_v20 = vld [vmem:[#allocation2 + $0x400] sm:$0xff] }
 0x68e   : > { %v2712_v59 = vsub.f32 %v2696_v18, %v2710_v62 }
 0x690   : > { %v4345_v22 = vpop.eup %4344  ;;  %v2715_v54 = vmul.f32 1.442695, %v2712_v59  ;;  %v3156_v59 = vld [vmem:[#allocation2 + $0x528] sm:$0xff] }
 0x691   : > { %v2591_v12 = vsel %vm1221_vm1, %v4345_v22, 0.0 }
 0x692   : > { %v2592_v60 = vrot.slane %v2591_v12, 4  ;;  %4151 = vmatmul.msk.f32.vlgmr.msrb.gmra.mxu3 %vm692_vm4, %v2251_v36  ;;  %4346 = vpow2.f32 %v2715_v54 }
 0x694   : > { %v2593_v25 = vadd.f32 %v2592_v60, %v2591_v12  ;;  %v849_v0 = vpop.xlane.xlu0 %848 }
 0x695   : > { %v850_v57 = vmul.f32 %v849_v0, %v4608_v5 }
 0x696   : > { %v2594_v6 = vrot.slane %v2593_v25, 2 }
 0x697   : > { %v851_v23 = vadd.f32 1e-05, %v850_v57 }
 0x698   : > { %v2595_v4 = vadd.f32 %v2594_v6, %v2593_v25  ;;  %v4347_v35 = vpop.eup %4346 }
 0x699   : > { %v2724_v13 = vsel %vm1221_vm1, %v4347_v35, 0.0  ;;  %vm858_vm14 = vweird.f32 %v851_v23 }
 0x69a   : > { %v2596_v51 = vrot.slane %v2595_v4, 1  ;;  %v2725_v2 = vrot.slane %v2724_v13, 4 }
 0x69c   : > { %v2597_v14 = vadd.f32 %v2596_v51, %v2595_v4  ;;  %v2726_v50 = vadd.f32 %v2725_v2, %v2724_v13  ;;  %v2785_v51 = vadd.f32 %v5091_v47, %v4902_v32  ;;  %v4259_v13 = vld [vmem:[#allocation2 + $0x1f8] ss:$0 sm:$0xff] }
 0x69e   : > { %4348 = vrcp.f32 %v2597_v14  ;;  %v2727_v29 = vrot.slane %v2726_v50, 2 }
 0x6a0   : > { %v2728_v37 = vadd.f32 %v2727_v29, %v2726_v50 }
 0x6a2   : > { %v2729_v9 = vrot.slane %v2728_v37, 1 }
 0x6a4   : > { %v4349_v56 = vpop.eup %4348  ;;  %v2730_v44 = vadd.f32 %v2729_v9, %v2728_v37  ;;  %v5155_v37 = vpop.permute.xlu2 %3007 }
 0x6a5   : > { %v2601_v38 = vmul.f32 %v4349_v56, %v4345_v22  ;;  %v3154_v22 = vld [vmem:[#allocation2 + $0x518] sm:$0xff] }
 0x6a6   : > { %4350 = vrcp.f32 %v2730_v44  ;;  %v5161_v44 = vpop.permute.xlu0 %3035 }
 0x6a7   : > { %4146 = vmatpush.msk.msra.mxu0 %vm1221_vm1, %v2601_v38  ;;  %4352 = vrsqrt.f32 %v851_v23 }
 0x6a8   : > { %4147 = vmatmul.msk.f32.vlgmr.msra.gmra.mxu0 %vm692_vm4, %v2248_v46  ;;  %v2786_v46 = vadd.f32 %v5094_v48, %v4917_v49 }
 0x6ac   : > { %v4351_v18 = vpop.eup %4350  ;;  %v1006_v56 = vpop.permute.xlu2 %1005 }
 0x6ad   : > { %v2734_v10 = vmul.f32 %v4351_v18, %v4347_v35  ;;  %v4353_v8 = vpop.eup %4352  ;;  %v2795_v35 = vld [vmem:[#allocation2 + $0x408] sm:$0xff] }
 0x6ae   : > { %v853_v62 = vmul.f32 %v4353_v8, %v851_v23  ;;  %vm859_vm13 = vweird.f32 %v4353_v8 }
 0x6af   : > { %4152 = vmatpush.msk.msrb.mxu0 %vm1221_vm1, %v2734_v10  ;;  %vm860_vm15 = vmor %vm858_vm14, %vm859_vm13 }
 0x6b0   : > { %4153 = vmatmul.msk.f32.vlgmr.msrb.gmra.mxu0 %vm692_vm4, %v2251_v36  ;;  %v2793_v36 = vld [vmem:[#allocation2 + $0x3f8] sm:$0xff] }
 0x6b4   : > { %v1022_v18 = vpop.permute.xlu2 %1021 }
 0x6bc   : > { %v1010_v57 = vpop.permute.xlu2 %1009 }
 0x705   : > { %v2515_v3 = vpop.f32.mrf.mxu3 }
 0x706   : > { %v2787_v4 = vadd.f32 %v2515_v3, %v4920_v16  ;;  %v5141_v16 = vpop.permute.xlu1 %2885  ;;  %v1038_v3 = vpop.permute.xlu0 %1037 }
 0x70d   : > { %v2628_v21 = vpop.f32.mrf.mxu3 }
 0x70e   : > { %v2788_v63 = vadd.f32 %v2628_v21, %v4924_v15  ;;  %v854_v15 = vmul.f32 %v4353_v8, %v853_v62  ;;  %v5144_v32 = vpop.permute.xlu1 %2895  ;;  %v1061_v62 = vld [vmem:[#allocation2 + $0x1d8] sm:$0xff] }
 0x710   : > { %v855_v48 = vmul.f32 0.5, %v854_v15 }
 0x712   : > { %v856_v61 = vsub.f32 1.5, %v855_v48 }
 0x714   : > { %v857_v12 = vmul.f32 %v4353_v8, %v856_v61 }
 0x715   : > { %v2761_v19 = vpop.f32.mrf.mxu3 }
 0x716   : > { %v2790_v1 = vadd.f32 %v2761_v19, %v5010_v24  ;;  %v3155_v24 = vld [vmem:[#allocation2 + $0x520] sm:$0xff]  ;;  %v861_v6 = vsel %vm860_vm15, %v4353_v8, %v857_v12  ;;  %v1012_v19 = vpop.permute.xlu0 %1011 }
 0x717   : > { %v862_v2 = vmul.f32 %v861_v6, %v5053_v26  ;;  %v5147_v26 = vpop.permute.xlu1 %3017 }
 0x718   : > { %2820 = vmatpush.msrb.mxu1 %v2790_v1  ;;  %v1026_v1 = vpop.permute.xlu2 %1025 }
 0x71a   : > { %2821 = vmatpush.msrb.mxu1 %v2788_v63 }
 0x71c   : > { %2822 = vmatpush.msrb.mxu1 %v2786_v46  ;;  %v1049_v46 = vsel %vm661_vm5, %v4947_v28, %v1006_v56  ;;  %v1052_v28 = vsel %vm661_vm5, %v4954_v11, %v1012_v19 }
 0x71e   : > { %2823 = vmatpush.msrb.mxu1 %v2784_v43  ;;  %v1053_v43 = vsel %vm666_vm6, %v1049_v46, %v1022_v18 }
 0x71f   : > { %4154 = vmatmul.msk.f32.vlgmr.msrb.gmra.mxu1 %vm220_vm0, %v2792_v30  ;;  %v5149_v47 = vpop.permute.xlu1 %3012 }
 0x720   : > { %3175 = vmatpush.msra.mxu1 %v3157_v55  ;;  %v1028_v12 = vpop.permute.xlu2 %1027 }
 0x722   : > { %3176 = vmatpush.msra.mxu1 %v3156_v59  ;;  %v1057_v59 = vsel %vm671_vm7, %v1053_v43, %v1038_v3 }
 0x723   : > { %v5179_v61 = vadd.f32 %v1061_v62, %v1057_v59 }
 0x724   : > { %3177 = vmatpush.msra.mxu1 %v3155_v24 }
 0x725   : > { %v2648_v49 = vpop.f32.mrf.mxu0 }
 0x726   : > { %3178 = vmatpush.msra.mxu1 %v3154_v22  ;;  %v2789_v25 = vadd.f32 %v2648_v49, %v5001_v45  ;;  %v864_v45 = vmul.f32 %v4259_v13, %v862_v2  ;;  %v1062_v22 = vld [vmem:[#allocation2 + $0x1e0] sm:$0xff] }
 0x727   : > { %4155 = vmatmul.msk.f32.gmra.mxu1 %vm220_vm0, %v2793_v36  ;;  %v5151_v50 = vpop.permute.xlu1 %3045 }
 0x72d   : > { %v2781_v54 = vpop.f32.mrf.mxu0 }
 0x72e   : > { %v2791_v60 = vadd.f32 %v2781_v54, %v5012_v17  ;;  %v4260_v17 = vld [vmem:[#allocation2 + $0x200] ss:$0 sm:$0xff] }
 0x72f   : > { %4156 = vmatmul.msk.f32.gmra.mxu1 %vm220_vm0, %v2794_v20  ;;  %v866_v14 = vadd.f32 %v4260_v17, %v864_v45  ;;  %v5153_v29 = vpop.permute.xlu1 %3040 }
 0x730   : > { %2849 = vmatpush.msra.mxu2 %v2791_v60 }
 0x732   : > { %2850 = vmatpush.msra.mxu2 %v2789_v25  ;;  %v1063_v25 = vld [vmem:[#allocation2 + $0x1e8] sm:$0xff] }
 0x734   : > { %2851 = vmatpush.msra.mxu2 %v2787_v4 }
 0x736   : > { %2852 = vmatpush.msra.mxu2 %v2785_v51 }
 0x737   : > { %4157 = vmatmul.msk.f32.gmra.mxu1 %vm220_vm0, %v2795_v35  ;;  %4158 = vmatmul.msk.f32.vlgmr.msra.gmra.mxu2 %vm220_vm0, %v2792_v30  ;;  %v5157_v9 = vpop.permute.xlu1 %3002 }
 0x73f   : > { %4170 = vmatmul.msk.f32.vlgmr.msra.gmra.mxu1 %vm220_vm0, %v866_v14  ;;  %4159 = vmatmul.msk.f32.gmra.mxu2 %vm220_vm0, %v2793_v36  ;;  %v5159_v38 = vpop.permute.xlu1 %3030  ;;  %v1051_v36 = vsel %vm661_vm5, %v4952_v31, %v1010_v57  ;;  %v1056_v31 = vsel %vm666_vm6, %v1052_v28, %v1028_v12 }
 0x740   : > { %v1055_v48 = vsel %vm666_vm6, %v1051_v36, %v1026_v1 }
 0x747   : > { %4160 = vmatmul.msk.f32.gmra.mxu2 %vm220_vm0, %v2794_v20  ;;  %v1008_v10 = vpop.permute.xlu1 %1007  ;;  %v1044_v20 = vpop.permute.xlu0 %1043 }
 0x748   : > { %v1050_v8 = vsel %vm661_vm5, %v4950_v7, %v1008_v10 }
 0x74f   : > { %4161 = vmatmul.msk.f32.gmra.mxu2 %vm220_vm0, %v2795_v35  ;;  %v1024_v21 = vpop.permute.xlu1 %1023  ;;  %v1077_v35 = vsel %vm692_vm4, %v5179_v61, 0.0 }
 0x750   : > { %v1054_v55 = vsel %vm666_vm6, %v1050_v8, %v1024_v21 }
 0x757   : > { %v1040_v63 = vpop.permute.xlu1 %1039 }
 0x758   : > { %v1058_v15 = vsel %vm671_vm7, %v1054_v55, %v1040_v63 }
 0x759   : > { %v5184_v54 = vadd.f32 %v1062_v22, %v1058_v15  ;;  %v1076_v15 = vld [vmem:[#allocation2 + $0x240] sm:$0xff] }
 0x75b   : > { %v1078_v17 = vsel %vm692_vm4, %v5184_v54, 0.0 }
 0x75c   : > { %v1079_v56 = vadd.f32 %v1078_v17, %v1077_v35 }
 0x75f   : > { %v1042_v60 = vpop.permute.xlu1 %1041 }
 0x760   : > { %v1059_v11 = vsel %vm671_vm7, %v1055_v48, %v1042_v60 }
 0x761   : > { %v5202_v45 = vadd.f32 %v1063_v25, %v1059_v11 }
 0x763   : > { %v1080_v57 = vsel %vm692_vm4, %v5202_v45, 0.0 }
 0x764   : > { %v1081_v21 = vadd.f32 %v1080_v57, %v1079_v56 }
 0x79c   : > { %v2825_v0 = vpop.f32.mrf.mxu1 }
 0x79d   : > { %v2866_v7 = vadd.f32 %v2825_v0, %v4584_v33  ;;  %v1064_v33 = vld [vmem:[#allocation2 + $0x1f0] sm:$0xff]  ;;  %v4261_v0 = vld [vmem:[#allocation2 + $0x538] ss:$0 sm:$0xff] }
 0x79f   : > { %v5190_v6 = vadd.f32 %v5117_v58, %v2866_v7 }
 0x7a4   : > { %v2828_v23 = vpop.f32.mrf.mxu1 }
 0x7a5   : > { %v2868_v24 = vadd.f32 %v2828_v23, %v4588_v39 }
 0x7a7   : > { %v5182_v39 = vadd.f32 %v5141_v16, %v2868_v24  ;;  %v3868_v24 = vld [vmem:[#allocation2 + $0x5b8] sm:$0xff] }
 0x7a9   : > { %v2914_v13 = vadd.f32 %v5182_v39, %v5190_v6 }
 0x7ac   : > { %v2831_v30 = vpop.f32.mrf.mxu1 }
 0x7ad   : > { %v2870_v49 = vadd.f32 %v2831_v30, %v4592_v41  ;;  %v1060_v41 = vsel %vm671_vm7, %v1056_v31, %v1044_v20 }
 0x7ae   : > { %v5204_v14 = vadd.f32 %v1064_v33, %v1060_v41  ;;  %v3865_v33 = vld [vmem:[#allocation2 + $0x5a0] sm:$0xff]  ;;  %v1069_v41 = vld [vmem:[#allocation2 + $0x208] sm:$0xff] }
 0x7af   : > { %v5193_v4 = vadd.f32 %v5119_v27, %v2870_v49 }
 0x7b1   : > { %v2915_v18 = vadd.f32 %v2914_v13, %v5193_v4 }
 0x7b4   : > { %v2834_v51 = vpop.f32.mrf.mxu1 }
 0x7b5   : > { %v2872_v2 = vadd.f32 %v2834_v51, %v4602_v52  ;;  %v1082_v52 = vsel %vm692_vm4, %v5204_v14, 0.0 }
 0x7b6   : > { %v1083_v63 = vadd.f32 %v1082_v52, %v1081_v21 }
 0x7b7   : > { %v5208_v10 = vadd.f32 %v5144_v32, %v2872_v2 }
 0x7b8   : > { %v1084_v30 = vrot.slane %v1083_v63, 4 }
 0x7b9   : > { %v2916_v3 = vadd.f32 %v2915_v18, %v5208_v10 }
 0x7ba   : > { %v2854_v19 = vpop.f32.mrf.mxu2  ;;  %v1085_v22 = vadd.f32 %v1084_v30, %v1083_v63 }
 0x7bb   : > { %v2917_v23 = vrot.slane %v2916_v3, 4  ;;  %v2867_v2 = vadd.f32 %v2854_v19, %v4586_v34  ;;  %v3187_v19 = vld [vmem:[#allocation2 + $0x560] sm:$0xff] }
 0x7bc   : > { %v3180_v1 = vpop.f32.mrf.mxu1  ;;  %v1086_v7 = vrot.slane %v1085_v22, 2 }
 0x7bd   : > { %v2918_v46 = vadd.f32 %v2917_v23, %v2916_v3  ;;  %v5215_v8 = vadd.f32 %v4261_v0, %v3180_v1  ;;  %v5249_v57 = vadd.f32 %v5117_v58, %v2867_v2 }
 0x7be   : > { %v1087_v35 = vadd.f32 %v1086_v7, %v1085_v22 }
 0x7bf   : > { %v2919_v43 = vrot.slane %v2918_v46, 2  ;;  %3650 = vrot.lane.b32.xlu2 %v5215_v8, %s4440_s30  ;;  %3384 = vrot.lane.b32.xlu0 %v5215_v8, %s4442_s5 }
 0x7c1   : > { %v2920_v55 = vadd.f32 %v2919_v43, %v2918_v46 }
 0x7c2   : > { %v2857_v59 = vpop.f32.mrf.mxu2 }
 0x7c3   : > { %v2921_v62 = vrot.slane %v2920_v55, 1  ;;  %v2869_v11 = vadd.f32 %v2857_v59, %v4590_v40  ;;  %v1088_v40 = vrot.slane %v1087_v35, 1 }
 0x7c5   : > { %v2922_v36 = vadd.f32 %v2921_v62, %v2920_v55  ;;  %v5246_v3 = vadd.f32 %v5141_v16, %v2869_v11  ;;  %v1089_v1 = vadd.f32 %v1088_v40, %v1087_v35 }
 0x7c7   : > { %v2932_v28 = vmul.f32 %v2922_v36, %v4608_v5  ;;  %3886 = vperm.xlu2 %4254, %v3868_v24   ;;  %1169 = vperm.xlu0 %4252, %v1076_v15   ;;  %v1090_v43 = vmul.f32 %v1089_v1, %v4608_v5 }
 0x7c9   : > { %v5223_v49 = vsub.f32 %v5190_v6, %v2932_v28  ;;  %v5226_v48 = vsub.f32 %v5182_v39, %v2932_v28  ;;  %v5229_v20 = vsub.f32 %v5193_v4, %v2932_v28  ;;  %v5232_v12 = vsub.f32 %v5208_v10, %v2932_v28 }
 0x7ca   : > { %v2860_v25 = vpop.f32.mrf.mxu2  ;;  %v5267_v24 = vsub.f32 %v5184_v54, %v1090_v43  ;;  %v5283_v35 = vsub.f32 %v5204_v14, %v1090_v43 }
 0x7cb   : > { %v2942_v60 = vmul.f32 %v5223_v49, %v5223_v49  ;;  %v2944_v31 = vmul.f32 %v5226_v48, %v5226_v48  ;;  %v2946_v51 = vmul.f32 %v5229_v20, %v5229_v20  ;;  %v2871_v17 = vadd.f32 %v2860_v25, %v4594_v42  ;;  %v3189_v25 = vld [vmem:[#allocation2 + $0x570] sm:$0xff] }
 0x7cc   : > { %v2948_v56 = vmul.f32 %v5232_v12, %v5232_v12  ;;  %v2923_v42 = vadd.f32 %v5246_v3, %v5249_v57  ;;  %v1096_v7 = vmul.f32 %v5267_v24, %v5267_v24 }
 0x7cd   : > { %v2950_v13 = vadd.f32 %v2944_v31, %v2942_v60  ;;  %v5252_v52 = vadd.f32 %v5119_v27, %v2871_v17  ;;  %v5277_v31 = vsub.f32 %v5202_v45, %v1090_v43 }
 0x7cf   : > { %v2951_v18 = vadd.f32 %v2950_v13, %v2946_v51  ;;  %3871 = vperm.xlu2 %4254, %v3865_v33   ;;  %1130 = vperm.xlu0 %4252, %v1069_v41   ;;  %v2924_v16 = vadd.f32 %v2923_v42, %v5252_v52  ;;  %v1100_v33 = vsel %vm692_vm4, %v1096_v7, 0.0  ;;  %v1097_v51 = vmul.f32 %v5277_v31, %v5277_v31 }
 0x7d1   : > { %v2952_v0 = vadd.f32 %v2951_v18, %v2948_v56 }
 0x7d2   : > { %v2863_v21 = vpop.f32.mrf.mxu2 }
 0x7d3   : > { %v2953_v34 = vrot.slane %v2952_v0, 4  ;;  %v2873_v23 = vadd.f32 %v2863_v21, %v4604_v53  ;;  %v5264_v53 = vsub.f32 %v5179_v61, %v1090_v43  ;;  %v1102_v21 = vsel %vm692_vm4, %v1097_v51, 0.0 }
 0x7d5   : > { %v2954_v63 = vadd.f32 %v2953_v34, %v2952_v0  ;;  %v5259_v46 = vadd.f32 %v5144_v32, %v2873_v23  ;;  %v1095_v28 = vmul.f32 %v5264_v53, %v5264_v53  ;;  %v1098_v34 = vmul.f32 %v5283_v35, %v5283_v35 }
 0x7d7   : > { %v2955_v58 = vrot.slane %v2954_v63, 2  ;;  %3193 = vperm.xlu0 %4252, %v3187_v19   ;;  %v2925_v27 = vadd.f32 %v2924_v16, %v5259_v46  ;;  %v1099_v11 = vsel %vm692_vm4, %v1095_v28, 0.0  ;;  %v1104_v43 = vsel %vm692_vm4, %v1098_v34, 0.0  ;;  %v3898_v28 = vld [vmem:[#allocation2 + $0x5c8] sm:$0xf] }
 0x7d8   : > { %v1101_v13 = vadd.f32 %v1100_v33, %v1099_v11 }
 0x7d9   : > { %v2956_v30 = vadd.f32 %v2955_v58, %v2954_v63  ;;  %v2926_v55 = vrot.slane %v2925_v27, 4  ;;  %v3867_v63 = vld [vmem:[#allocation2 + $0x5b0] sm:$0xff] }
 0x7da   : > { %v1103_v42 = vadd.f32 %v1102_v21, %v1101_v13  ;;  %v3056_v21 = vld [vmem:[#allocation2 + $0x4d8] sm:$0xff] }
 0x7db   : > { %v2957_v62 = vrot.slane %v2956_v30, 1  ;;  %v2927_v59 = vadd.f32 %v2926_v55, %v2925_v27 }
 0x7dd   : > { %v2958_v15 = vadd.f32 %v2957_v62, %v2956_v30  ;;  %v2928_v22 = vrot.slane %v2927_v59, 2  ;;  %v1105_v30 = vadd.f32 %v1104_v43, %v1103_v42 }
 0x7df   : > { %v2968_v32 = vmul.f32 %v2958_v15, %v4608_v5  ;;  %3517 = vrot.lane.b32.xlu0 %v5215_v8, %s4441_s4  ;;  %v2929_v36 = vadd.f32 %v2928_v22, %v2927_v59  ;;  %v1106_v22 = vrot.slane %v1105_v30, 4 }
 0x7e1   : > { %v2970_v60 = vadd.f32 1e-05, %v2968_v32  ;;  %v2930_v61 = vrot.slane %v2929_v36, 1 }
 0x7e3   : > { %4354 = vrsqrt.f32 %v2970_v60  ;;  %v2931_v54 = vadd.f32 %v2930_v61, %v2929_v36  ;;  %vm2978_vm3 = vweird.f32 %v2970_v60 }
 0x7e5   : > { %v2933_v41 = vmul.f32 %v2931_v54, %v4608_v5 }
 0x7e7   : > { %3203 = vperm.xlu0 %4252, %v3189_v25   ;;  %v5288_v45 = vsub.f32 %v5249_v57, %v2933_v41  ;;  %v5291_v2 = vsub.f32 %v5246_v3, %v2933_v41  ;;  %v5294_v17 = vsub.f32 %v5252_v52, %v2933_v41  ;;  %v5297_v40 = vsub.f32 %v5259_v46, %v2933_v41 }
 0x7e8   : > { %v1107_v41 = vadd.f32 %v1106_v22, %v1105_v30 }
 0x7e9   : > { %v4355_v56 = vpop.eup %4354  ;;  %v2943_v14 = vmul.f32 %v5288_v45, %v5288_v45  ;;  %v2945_v0 = vmul.f32 %v5291_v2, %v5291_v2  ;;  %v2947_v19 = vmul.f32 %v5294_v17, %v5294_v17  ;;  %v2949_v58 = vmul.f32 %v5297_v40, %v5297_v40 }
 0x7ea   : > { %v2973_v18 = vmul.f32 %v4355_v56, %v2970_v60  ;;  %vm2979_vm2 = vweird.f32 %v4355_v56 }
 0x7eb   : > { %v2959_v1 = vadd.f32 %v2945_v0, %v2943_v14  ;;  %vm2980_vm5 = vmor %vm2978_vm3, %vm2979_vm2 }
 0x7ec   : > { %v2974_v23 = vmul.f32 %v4355_v56, %v2973_v18 }
 0x7ed   : > { %v2960_v27 = vadd.f32 %v2959_v1, %v2947_v19  ;;  %v3057_v1 = vld [vmem:[#allocation2 + $0x4e0] sm:$0xff] }
 0x7ee   : > { %v2975_v16 = vmul.f32 0.5, %v2974_v23 }
 0x7ef   : > { %3881 = vperm.xlu0 %4252, %v3867_v63   ;;  %v2961_v62 = vadd.f32 %v2960_v27, %v2949_v58 }
 0x7f0   : > { %v2976_v55 = vsub.f32 1.5, %v2975_v16 }
 0x7f1   : > { %v2962_v15 = vrot.slane %v2961_v62, 4 }
 0x7f2   : > { %v2977_v59 = vmul.f32 %v4355_v56, %v2976_v55 }
 0x7f3   : > { %v2963_v36 = vadd.f32 %v2962_v15, %v2961_v62  ;;  %v3058_v62 = vld [vmem:[#allocation2 + $0x4e8] sm:$0xff] }
 0x7f4   : > { %v2981_v32 = vsel %vm2980_vm5, %v4355_v56, %v2977_v59 }
 0x7f5   : > { %v2998_v7 = vmul.f32 %v2981_v32, %v5232_v12  ;;  %v2996_v61 = vmul.f32 %v2981_v32, %v5229_v20  ;;  %v2994_v54 = vmul.f32 %v2981_v32, %v5226_v48  ;;  %v2964_v25 = vrot.slane %v2963_v36, 2 }
 0x7f6   : > { %v2992_v60 = vmul.f32 %v2981_v32, %v5223_v49  ;;  %v1108_v12 = vrot.slane %v1107_v41, 2 }
 0x7f7   : > { %3901 = vperm.xlu0 %4252, %v3898_v28   ;;  %v3026_v11 = vmul.f32 %v5147_v26, %v2998_v7  ;;  %v3024_v33 = vmul.f32 %v5149_v47, %v2996_v61  ;;  %v2965_v51 = vadd.f32 %v2964_v25, %v2963_v36  ;;  %v3022_v56 = vmul.f32 %v5155_v37, %v2994_v54  ;;  %v3059_v54 = vld [vmem:[#allocation2 + $0x4f0] sm:$0xff] }
 0x7f8   : > { %v3020_v48 = vmul.f32 %v5157_v9, %v2992_v60  ;;  %v1109_v42 = vadd.f32 %v1108_v12, %v1107_v41 }
 0x7f9   : > { %v3054_v13 = vadd.f32 %v5151_v50, %v3026_v11  ;;  %v2966_v18 = vrot.slane %v2965_v51, 1  ;;  %v3052_v20 = vadd.f32 %v5153_v29, %v3024_v33  ;;  %v3050_v0 = vadd.f32 %v5161_v44, %v3022_v56 }
 0x7fa   : > { %v3048_v49 = vadd.f32 %v5159_v38, %v3020_v48  ;;  %v1110_v19 = vrot.slane %v1109_v42, 1 }
 0x7fb   : > { %3108 = vmatpush.msra.mxu3 %v3054_v13  ;;  %v2967_v14 = vadd.f32 %v2966_v18, %v2965_v51 }
 0x7fc   : > { %v1111_v16 = vadd.f32 %v1110_v19, %v1109_v42 }
 0x7fd   : > { %3109 = vmatpush.msra.mxu3 %v3052_v20  ;;  %v2969_v34 = vmul.f32 %v2967_v14, %v4608_v5 }
 0x7fe   : > { %v1112_v43 = vmul.f32 %v1111_v16, %v4608_v5  ;;  %v3184_v16 = vld [vmem:[#allocation2 + $0x548] sm:$0xff] }
 0x7ff   : > { %3110 = vmatpush.msra.mxu3 %v3050_v0  ;;  %v2971_v23 = vadd.f32 1e-05, %v2969_v34 }
 0x800   : > { %v1113_v59 = vadd.f32 1e-05, %v1112_v43 }
 0x801   : > { %3111 = vmatpush.msra.mxu3 %v3048_v49  ;;  %4356 = vrsqrt.f32 %v2971_v23  ;;  %vm2988_vm7 = vweird.f32 %v2971_v23 }
 0x802   : > { %4162 = vmatmul.msk.f32.vlgmr.msra.gmra.mxu3 %vm220_vm0, %v3056_v21  ;;  %4358 = vrsqrt.f32 %v1113_v59  ;;  %vm1120_vm8 = vweird.f32 %v1113_v59 }
 0x807   : > { %v4357_v63 = vpop.eup %4356 }
 0x808   : > { %v2983_v58 = vmul.f32 %v4357_v63, %v2971_v23  ;;  %vm2989_vm6 = vweird.f32 %v4357_v63  ;;  %v4359_v33 = vpop.eup %4358 }
 0x809   : > { %vm2990_vm10 = vmor %vm2988_vm7, %vm2989_vm6  ;;  %vm1121_vm11 = vweird.f32 %v4359_v33 }
 0x80a   : > { %4163 = vmatmul.msk.f32.gmra.mxu3 %vm220_vm0, %v3057_v1  ;;  %v2984_v27 = vmul.f32 %v4357_v63, %v2983_v58  ;;  %vm1122_vm9 = vmor %vm1120_vm8, %vm1121_vm11  ;;  %v3185_v58 = vld [vmem:[#allocation2 + $0x550] sm:$0xff] }
 0x80c   : > { %v2985_v30 = vmul.f32 0.5, %v2984_v27  ;;  %v3186_v27 = vld [vmem:[#allocation2 + $0x558] sm:$0xff] }
 0x80e   : > { %v2986_v55 = vsub.f32 1.5, %v2985_v30 }
 0x810   : > { %v2987_v15 = vmul.f32 %v4357_v63, %v2986_v55 }
 0x812   : > { %4164 = vmatmul.msk.f32.gmra.mxu3 %vm220_vm0, %v3058_v62  ;;  %v2991_v22 = vsel %vm2990_vm10, %v4357_v63, %v2987_v15  ;;  %v3183_v63 = vld [vmem:[#allocation2 + $0x540] sm:$0xff] }
 0x813   : > { %v2999_v32 = vmul.f32 %v2991_v22, %v5297_v40  ;;  %v2997_v36 = vmul.f32 %v2991_v22, %v5294_v17  ;;  %v2995_v28 = vmul.f32 %v2991_v22, %v5291_v2  ;;  %v2993_v61 = vmul.f32 %v2991_v22, %v5288_v45  ;;  %v3067_v45 = vpop.permute.xlu1 %3066 }
 0x814   : > { %v1115_v40 = vmul.f32 %v4359_v33, %v1113_v59 }
 0x815   : > { %v3027_v5 = vmul.f32 %v5147_v26, %v2999_v32  ;;  %v3025_v7 = vmul.f32 %v5149_v47, %v2997_v36  ;;  %v3023_v11 = vmul.f32 %v5155_v37, %v2995_v28  ;;  %v3021_v2 = vmul.f32 %v5157_v9, %v2993_v61  ;;  %v5342_v37 = vpop.permute.xlu2 %3071 }
 0x817   : > { %v3055_v25 = vadd.f32 %v5151_v50, %v3027_v5  ;;  %v3053_v17 = vadd.f32 %v5153_v29, %v3025_v7  ;;  %v3051_v26 = vadd.f32 %v5161_v44, %v3023_v11  ;;  %v3049_v47 = vadd.f32 %v5159_v38, %v3021_v2 }
 0x818   : > { %v1116_v50 = vmul.f32 %v4359_v33, %v1115_v40 }
 0x819   : > { %3137 = vmatpush.msra.mxu0 %v3055_v25 }
 0x81a   : > { %4165 = vmatmul.msk.f32.gmra.mxu3 %vm220_vm0, %v3059_v54  ;;  %v1117_v60 = vmul.f32 0.5, %v1116_v50 }
 0x81b   : > { %3138 = vmatpush.msra.mxu0 %v3053_v17  ;;  %v1146_v41 = vpop.permute.xlu1 %1145 }
 0x81c   : > { %v1118_v29 = vsub.f32 1.5, %v1117_v60 }
 0x81d   : > { %3139 = vmatpush.msra.mxu0 %v3051_v26  ;;  %v1141_v51 = vpop.permute.xlu2 %1140 }
 0x81e   : > { %v1119_v9 = vmul.f32 %v4359_v33, %v1118_v29 }
 0x81f   : > { %3140 = vmatpush.msra.mxu0 %v3049_v47 }
 0x820   : > { %4166 = vmatmul.msk.f32.vlgmr.msra.gmra.mxu0 %vm220_vm0, %v3056_v21  ;;  %v1123_v44 = vsel %vm1122_vm9, %v4359_v33, %v1119_v9 }
 0x821   : > { %v1127_v56 = vmul.f32 %v1123_v44, %v5283_v35  ;;  %v1126_v18 = vmul.f32 %v1123_v44, %v5277_v31  ;;  %v1125_v20 = vmul.f32 %v1123_v44, %v5267_v24  ;;  %v1124_v35 = vmul.f32 %v1123_v44, %v5264_v53 }
 0x823   : > { %v1136_v13 = vpop.permute.xlu1 %1135  ;;  %v1151_v48 = vmul.f32 %v1146_v41, %v1127_v56  ;;  %v1150_v12 = vmul.f32 %v1141_v51, %v1126_v18 }
 0x824   : > { %v1149_v49 = vmul.f32 %v1136_v13, %v1125_v20 }
 0x825   : > { %v1165_v14 = vpop.permute.xlu2 %1164 }
 0x826   : > { %v1174_v21 = vadd.f32 %v1165_v14, %v1150_v12 }
 0x828   : > { %4167 = vmatmul.msk.f32.gmra.mxu0 %vm220_vm0, %v3057_v1 }
 0x82b   : > { %v1160_v42 = vpop.permute.xlu1 %1159 }
 0x82c   : > { %v1173_v23 = vadd.f32 %v1160_v42, %v1149_v49 }
 0x82d   : > { %v1155_v1 = vpop.permute.xlu2 %1154 }
 0x830   : > { %4168 = vmatmul.msk.f32.gmra.mxu0 %vm220_vm0, %v3058_v62 }
 0x831   : > { %v5346_v38 = vpop.permute.xlu0 %3384 }
 0x833   : > { %v5359_v55 = vpop.permute.xlu1 %3198 }
 0x835   : > { %v5363_v59 = vpop.permute.xlu2 %3076 }
 0x838   : > { %4169 = vmatmul.msk.f32.gmra.mxu0 %vm220_vm0, %v3059_v54 }
 0x839   : > { %v1170_v0 = vpop.permute.xlu0 %1169 }
 0x83a   : > { %v1175_v34 = vadd.f32 %v1170_v0, %v1151_v48 }
 0x83b   : > { %v5365_v15 = vpop.permute.xlu1 %3081 }
 0x83c   : > { %3235 = vmatpush.msrb.mxu2 %v1175_v34 }
 0x83d   : > { %v5368_v5 = vpop.permute.xlu2 %3650 }
 0x83e   : > { %3236 = vmatpush.msrb.mxu2 %v1174_v21 }
 0x840   : > { %3237 = vmatpush.msrb.mxu2 %v1173_v23 }
 0x841   : > { %v1131_v19 = vpop.permute.xlu0 %1130 }
 0x842   : > { %v1148_v31 = vmul.f32 %v1131_v19, %v1124_v35 }
 0x844   : > { %v1172_v24 = vadd.f32 %v1155_v1, %v1148_v31 }
 0x846   : > { %3238 = vmatpush.msrb.mxu2 %v1172_v24 }
 0x847   : > { %4171 = vmatmul.msk.f32.vlgmr.msrb.gmra.mxu2 %vm220_vm0, %v3183_v63 }
 0x84f   : > { %4172 = vmatmul.msk.f32.gmra.mxu2 %vm220_vm0, %v3184_v16 }
 0x857   : > { %4173 = vmatmul.msk.f32.gmra.mxu2 %vm220_vm0, %v3185_v58 }
 0x85f   : > { %4174 = vmatmul.msk.f32.gmra.mxu2 %vm220_vm0, %v3186_v27 }
 0x885   : > { %v3113_v43 = vpop.f32.mrf.mxu3 }
 0x886   : > { %v3114_v30 = vadd.f32 %v3113_v43, %v3067_v45 }
 0x888   : > { %3270 = vmatpush.msrb.mxu3 %v3114_v30 }
 0x889   : > { %4175 = vmatmul.msk.f32.vlgmr.msrb.gmra.mxu3 %vm1663_vm12, %v5215_v8 }
 0x88d   : > { %v3116_v53 = vpop.f32.mrf.mxu3 }
 0x88e   : > { %v3117_v7 = vadd.f32 %v3116_v53, %v5342_v37 }
 0x895   : > { %v5361_v62 = vpop.f32.mrf.mxu3 }
 0x89d   : > { %v3122_v22 = vpop.f32.mrf.mxu3  ;;  %v3142_v36 = vpop.f32.mrf.mxu0 }
 0x89e   : > { %v3123_v32 = vadd.f32 %v3122_v22, %v5365_v15  ;;  %v3143_v28 = vadd.f32 %v3142_v36, %v3067_v45 }
 0x8a0   : > { %3669 = vmatpush.msra.mxu2 %v3123_v32  ;;  %3290 = vmatpush.msrb.mxu0 %v3143_v28 }
 0x8a1   : > { %4193 = vmatmul.msk.f32.vlgmr.msra.gmra.mxu2 %vm1663_vm12, %v5368_v5  ;;  %4176 = vmatmul.msk.f32.vlgmr.msrb.gmra.mxu0 %vm1663_vm12, %v5215_v8 }
 0x8a2   : > { %3403 = vmatpush.msra.mxu0 %v3117_v7  ;;  %v3194_v7 = vpop.permute.xlu0 %3193 }
 0x8a5   : > { %v3145_v61 = vpop.f32.mrf.mxu0 }
 0x8a9   : > { %4181 = vmatmul.msk.f32.vlgmr.msra.gmra.mxu0 %vm1663_vm12, %v5346_v38 }
 0x8ad   : > { %v5377_v25 = vpop.f32.mrf.mxu0 }
 0x8b5   : > { %v5380_v47 = vpop.f32.mrf.mxu0 }
 0x8ca   : > { %v3240_v22 = vpop.f32.mrf.mxu2 }
 0x90c   : > { %v3272_v54 = vpop.f32.mrf.mxu3 }
 0x90d   : > { %v3295_v11 = vmul.f32 0.35355338, %v3272_v54 }
 0x90f   : > { %v3297_v33 = vsel %vm1221_vm1, %v3295_v11, -inf }
 0x910   : > { %v3298_v17 = vrot.slane %v3297_v33, 4 }
 0x912   : > { %v3299_v2 = vmax.f32 %v3297_v33, %v3298_v17  ;;  %v3241_v33 = vadd.f32 %v3240_v22, %v3194_v7  ;;  %v3146_v17 = vadd.f32 %v3145_v61, %v5342_v37 }
 0x914   : > { %v3300_v26 = vrot.slane %v3299_v2, 2 }
 0x916   : > { %v3301_v40 = vmax.f32 %v3299_v2, %v3300_v26  ;;  %v3120_v26 = vadd.f32 %v5361_v62, %v5363_v59 }
 0x918   : > { %v3302_v45 = vrot.slane %v3301_v40, 1 }
 0x91a   : > { %v3303_v50 = vmax.f32 %v3301_v40, %v3302_v45 }
 0x91c   : > { %v3311_v8 = vsub.f32 %v3295_v11, %v3303_v50 }
 0x91e   : > { %v3313_v60 = vmul.f32 1.442695, %v3311_v8  ;;  %v3292_v41 = vpop.f32.mrf.mxu0 }
 0x91f   : > { %v3296_v29 = vmul.f32 0.35355338, %v3292_v41 }
 0x920   : > { %4360 = vpow2.f32 %v3313_v60 }
 0x921   : > { %v3304_v9 = vsel %vm1221_vm1, %v3296_v29, -inf }
 0x922   : > { %v3305_v51 = vrot.slane %v3304_v9, 4 }
 0x924   : > { %v3306_v44 = vmax.f32 %v3304_v9, %v3305_v51 }
 0x926   : > { %v4361_v13 = vpop.eup %4360  ;;  %v3307_v18 = vrot.slane %v3306_v44, 2  ;;  %v3405_v20 = vpop.f32.mrf.mxu0 }
 0x927   : > { %v3317_v56 = vsel %vm1221_vm1, %v4361_v13, 0.0  ;;  %v3428_v12 = vmul.f32 0.35355338, %v3405_v20 }
 0x928   : > { %v3318_v48 = vrot.slane %v3317_v56, 4  ;;  %v3308_v14 = vmax.f32 %v3306_v44, %v3307_v18  ;;  %v3518_v44 = vpop.permute.xlu0 %3517  ;;  %v3243_v18 = vpop.f32.mrf.mxu2 }
 0x929   : > { %v3430_v34 = vsel %vm1221_vm1, %v3428_v12, -inf }
 0x92a   : > { %v3319_v0 = vadd.f32 %v3318_v48, %v3317_v56  ;;  %v3309_v49 = vrot.slane %v3308_v14, 1  ;;  %v3431_v21 = vrot.slane %v3430_v34, 4 }
 0x92c   : > { %v3320_v42 = vrot.slane %v3319_v0, 2  ;;  %v3310_v23 = vmax.f32 %v3308_v14, %v3309_v49  ;;  %v3432_v35 = vmax.f32 %v3430_v34, %v3431_v21  ;;  %v3152_v14 = vadd.f32 %v5380_v47, %v5365_v15 }
 0x92e   : > { %v3321_v19 = vadd.f32 %v3320_v42, %v3319_v0  ;;  %v3312_v31 = vsub.f32 %v3296_v29, %v3310_v23  ;;  %v3433_v1 = vrot.slane %v3432_v35, 2 }
 0x930   : > { %v3322_v24 = vrot.slane %v3321_v19, 1  ;;  %v3315_v63 = vmul.f32 1.442695, %v3312_v31  ;;  %v3434_v16 = vmax.f32 %v3432_v35, %v3433_v1 }
 0x932   : > { %v3323_v58 = vadd.f32 %v3322_v24, %v3321_v19  ;;  %4362 = vpow2.f32 %v3315_v63  ;;  %v3435_v27 = vrot.slane %v3434_v16, 1 }
 0x934   : > { %4364 = vrcp.f32 %v3323_v58  ;;  %v3436_v43 = vmax.f32 %v3434_v16, %v3435_v27 }
 0x936   : > { %v3444_v30 = vsub.f32 %v3428_v12, %v3436_v43  ;;  %v3149_v12 = vadd.f32 %v5377_v25, %v5363_v59 }
 0x938   : > { %v4363_v53 = vpop.eup %4362  ;;  %v3446_v32 = vmul.f32 1.442695, %v3444_v30 }
 0x939   : > { %v3324_v28 = vsel %vm1221_vm1, %v4363_v53, 0.0 }
 0x93a   : > { %v4365_v36 = vpop.eup %4364  ;;  %v3325_v11 = vrot.slane %v3324_v28, 4  ;;  %4366 = vpow2.f32 %v3446_v32 }
 0x93b   : > { %v3333_v54 = vmul.f32 %v4365_v36, %v4361_v13 }
 0x93c   : > { %v3326_v2 = vadd.f32 %v3325_v11, %v3324_v28 }
 0x93d   : > { %4177 = vmatpush.msk.msrb.mxu1 %vm1221_vm1, %v3333_v54 }
 0x93e   : > { %4178 = vmatmul.msk.f32.vlgmr.msrb.gmra.mxu1 %vm692_vm4, %v3241_v33  ;;  %v3327_v40 = vrot.slane %v3326_v2, 2 }
 0x93f   : > { %3423 = vmatpush.msra.mxu1 %v3146_v17 }
 0x940   : > { %v4367_v45 = vpop.eup %4366  ;;  %v3328_v50 = vadd.f32 %v3327_v40, %v3326_v2 }
 0x941   : > { %3536 = vmatpush.msrb.mxu1 %v3120_v26  ;;  %v3450_v8 = vsel %vm1221_vm1, %v4367_v45, 0.0 }
 0x942   : > { %v3329_v60 = vrot.slane %v3328_v50, 1  ;;  %v3451_v41 = vrot.slane %v3450_v8, 4 }
 0x944   : > { %v3330_v29 = vadd.f32 %v3329_v60, %v3328_v50  ;;  %v3452_v9 = vadd.f32 %v3451_v41, %v3450_v8 }
 0x946   : > { %4182 = vmatmul.msk.f32.vlgmr.msra.gmra.mxu1 %vm1663_vm12, %v5346_v38  ;;  %4368 = vrcp.f32 %v3330_v29  ;;  %v3453_v37 = vrot.slane %v3452_v9, 2  ;;  %v5398_v38 = vadd.f32 %v3243_v18, %v5359_v55  ;;  %v5410_v55 = vpop.f32.mrf.mxu2 }
 0x948   : > { %v3454_v61 = vadd.f32 %v3453_v37, %v3452_v9 }
 0x94a   : > { %v3455_v62 = vrot.slane %v3454_v61, 1 }
 0x94c   : > { %v4369_v51 = vpop.eup %4368  ;;  %v3456_v13 = vadd.f32 %v3455_v62, %v3454_v61 }
 0x94d   : > { %v3334_v56 = vmul.f32 %v4369_v51, %v4363_v53 }
 0x94e   : > { %4187 = vmatmul.msk.f32.vlgmr.msrb.gmra.mxu1 %vm1663_vm12, %v3518_v44  ;;  %4370 = vrcp.f32 %v3456_v13  ;;  %v5412_v0 = vpop.f32.mrf.mxu2 }
 0x94f   : > { %4179 = vmatpush.msk.msra.mxu3 %vm1221_vm1, %v3334_v56 }
 0x950   : > { %4180 = vmatmul.msk.f32.vlgmr.msra.gmra.mxu3 %vm692_vm4, %v3241_v33 }
 0x954   : > { %v4371_v20 = vpop.eup %4370 }
 0x955   : > { %v3466_v48 = vmul.f32 %v4371_v20, %v4367_v45 }
 0x956   : > { %v3671_v59 = vpop.f32.mrf.mxu2 }
 0x957   : > { %4183 = vmatpush.msk.msrb.mxu3 %vm1221_vm1, %v3466_v48  ;;  %v3694_v25 = vmul.f32 0.35355338, %v3671_v59 }
 0x958   : > { %4184 = vmatmul.msk.f32.vlgmr.msrb.gmra.mxu3 %vm692_vm4, %v5398_v38 }
 0x959   : > { %3556 = vmatpush.msra.mxu3 %v3149_v12  ;;  %v3696_v34 = vsel %vm1221_vm1, %v3694_v25, -inf }
 0x95a   : > { %v3697_v49 = vrot.slane %v3696_v34, 4 }
 0x95b   : > { %3689 = vmatpush.msrb.mxu3 %v3152_v14 }
 0x95c   : > { %v3698_v15 = vmax.f32 %v3696_v34, %v3697_v49 }
 0x95e   : > { %v3699_v47 = vrot.slane %v3698_v15, 2 }
 0x960   : > { %4188 = vmatmul.msk.f32.vlgmr.msra.gmra.mxu3 %vm1663_vm12, %v3518_v44  ;;  %v3700_v21 = vmax.f32 %v3698_v15, %v3699_v47 }
 0x962   : > { %v3701_v23 = vrot.slane %v3700_v21, 1 }
 0x964   : > { %v3702_v35 = vmax.f32 %v3700_v21, %v3701_v23 }
 0x966   : > { %v3710_v1 = vsub.f32 %v3694_v25, %v3702_v35 }
 0x968   : > { %4194 = vmatmul.msk.f32.vlgmr.msrb.gmra.mxu3 %vm1663_vm12, %v5368_v5  ;;  %v3712_v16 = vmul.f32 1.442695, %v3710_v1 }
 0x96a   : > { %4372 = vpow2.f32 %v3712_v16 }
 0x970   : > { %v5419_v11 = vpop.eup %4372 }
 0x971   : > { %v3716_v26 = vsel %vm1221_vm1, %v5419_v11, 0.0 }
 0x972   : > { %v3717_v50 = vrot.slane %v3716_v26, 4 }
 0x974   : > { %v3718_v9 = vadd.f32 %v3717_v50, %v3716_v26 }
 0x976   : > { %v3719_v51 = vrot.slane %v3718_v9, 2 }
 0x978   : > { %v3720_v48 = vadd.f32 %v3719_v51, %v3718_v9 }
 0x97a   : > { %v3721_v47 = vrot.slane %v3720_v48, 1 }
 0x9bb   : > { %v5415_v42 = vpop.f32.mrf.mxu1 }
 0x9c3   : > { %v3425_v19 = vpop.f32.mrf.mxu1 }
 0x9c4   : > { %v3429_v31 = vmul.f32 0.35355338, %v3425_v19 }
 0x9c6   : > { %v3437_v5 = vsel %vm1221_vm1, %v3429_v31, -inf }
 0x9c7   : > { %v3438_v24 = vrot.slane %v3437_v5, 4 }
 0x9c9   : > { %v3439_v63 = vmax.f32 %v3437_v5, %v3438_v24  ;;  %v3722_v5 = vadd.f32 %v3721_v47, %v3720_v48 }
 0x9cb   : > { %v3440_v58 = vrot.slane %v3439_v63, 2  ;;  %v3538_v27 = vpop.f32.mrf.mxu1 }
 0x9cc   : > { %v3561_v43 = vmul.f32 0.35355338, %v3538_v27 }
 0x9cd   : > { %v3441_v30 = vmax.f32 %v3439_v63, %v3440_v58 }
 0x9ce   : > { %v3563_v53 = vsel %vm1221_vm1, %v3561_v43, -inf }
 0x9cf   : > { %v3442_v22 = vrot.slane %v3441_v30, 1  ;;  %v3564_v32 = vrot.slane %v3563_v53, 4 }
 0x9d1   : > { %v3443_v36 = vmax.f32 %v3441_v30, %v3442_v22  ;;  %v3565_v28 = vmax.f32 %v3563_v53, %v3564_v32 }
 0x9d3   : > { %v3445_v7 = vsub.f32 %v3429_v31, %v3443_v36  ;;  %v3566_v54 = vrot.slane %v3565_v28, 2  ;;  %v5421_v33 = vpop.f32.mrf.mxu3 }
 0x9d5   : > { %v3448_v17 = vmul.f32 1.442695, %v3445_v7  ;;  %v3567_v2 = vmax.f32 %v3565_v28, %v3566_v54 }
 0x9d7   : > { %4374 = vpow2.f32 %v3448_v17  ;;  %v3568_v40 = vrot.slane %v3567_v2, 1 }
 0x9d9   : > { %v3569_v45 = vmax.f32 %v3567_v2, %v3568_v40  ;;  %v3204_v40 = vpop.permute.xlu0 %3203 }
 0x9db   : > { %v3577_v8 = vsub.f32 %v3561_v43, %v3569_v45  ;;  %v5425_v60 = vpop.f32.mrf.mxu3 }
 0x9dd   : > { %v4375_v41 = vpop.eup %4374  ;;  %v3579_v29 = vmul.f32 1.442695, %v3577_v8  ;;  %v3247_v8 = vadd.f32 %v5410_v55, %v3204_v40  ;;  %v3897_v40 = vld [vmem:[#allocation2 + $0x5c0] sm:$0xf] }
 0x9de   : > { %v3457_v37 = vsel %vm1221_vm1, %v4375_v41, 0.0 }
 0x9df   : > { %v3458_v61 = vrot.slane %v3457_v37, 4  ;;  %4376 = vpow2.f32 %v3579_v29 }
 0x9e1   : > { %v3459_v62 = vadd.f32 %v3458_v61, %v3457_v37 }
 0x9e3   : > { %v3460_v44 = vrot.slane %v3459_v62, 2  ;;  %v3558_v13 = vpop.f32.mrf.mxu3 }
 0x9e4   : > { %v3562_v20 = vmul.f32 0.35355338, %v3558_v13 }
 0x9e5   : > { %v4377_v56 = vpop.eup %4376  ;;  %v3461_v18 = vadd.f32 %v3460_v44, %v3459_v62  ;;  %v3209_v62 = vpop.permute.xlu1 %3208 }
 0x9e6   : > { %v3583_v12 = vsel %vm1221_vm1, %v4377_v56, 0.0  ;;  %v3570_v25 = vsel %vm1221_vm1, %v3562_v20, -inf  ;;  %v3250_v44 = vadd.f32 %v5412_v0, %v3209_v62 }
 0x9e7   : > { %v3462_v14 = vrot.slane %v3461_v18, 1  ;;  %v3584_v59 = vrot.slane %v3583_v12, 4  ;;  %v3571_v34 = vrot.slane %v3570_v25, 4 }
 0x9e9   : > { %v3463_v49 = vadd.f32 %v3462_v14, %v3461_v18  ;;  %v3585_v15 = vadd.f32 %v3584_v59, %v3583_v12  ;;  %v3572_v21 = vmax.f32 %v3570_v25, %v3571_v34 }
 0x9eb   : > { %4378 = vrcp.f32 %v3463_v49  ;;  %v3586_v23 = vrot.slane %v3585_v15, 2  ;;  %v3573_v35 = vrot.slane %v3572_v21, 2  ;;  %v3691_v19 = vpop.f32.mrf.mxu3 }
 0x9ec   : > { %v3695_v1 = vmul.f32 0.35355338, %v3691_v19  ;;  %4380 = vrcp.f32 %v3722_v5  ;;  %v3783_v19 = vld [vmem:[#allocation2 + $0x580] sm:$0xff]  ;;  %v3785_v5 = vld [vmem:[#allocation2 + $0x590] sm:$0xff] }
 0x9ed   : > { %v3587_v31 = vadd.f32 %v3586_v23, %v3585_v15  ;;  %v3574_v24 = vmax.f32 %v3572_v21, %v3573_v35 }
 0x9ee   : > { %v3703_v16 = vsel %vm1221_vm1, %v3695_v1, -inf }
 0x9ef   : > { %v3588_v63 = vrot.slane %v3587_v31, 1  ;;  %v3575_v58 = vrot.slane %v3574_v24, 1  ;;  %v3704_v27 = vrot.slane %v3703_v16, 4 }
 0x9f1   : > { %v4379_v43 = vpop.eup %4378  ;;  %v3589_v30 = vadd.f32 %v3588_v63, %v3587_v31  ;;  %v3576_v22 = vmax.f32 %v3574_v24, %v3575_v58  ;;  %v3705_v32 = vmax.f32 %v3703_v16, %v3704_v27  ;;  %v3784_v31 = vld [vmem:[#allocation2 + $0x588] sm:$0xff]  ;;  %v3786_v63 = vld [vmem:[#allocation2 + $0x598] sm:$0xff]  ;;  %v3887_v58 = vpop.permute.xlu2 %3886 }
 0x9f2   : > { %v3467_v53 = vmul.f32 %v4379_v43, %v4375_v41  ;;  %v4381_v17 = vpop.eup %4380 }
 0x9f3   : > { %4382 = vrcp.f32 %v3589_v30  ;;  %v3578_v36 = vsub.f32 %v3562_v20, %v3576_v22  ;;  %v3706_v28 = vrot.slane %v3705_v32, 2  ;;  %v3732_v41 = vmul.f32 %v4381_v17, %v5419_v11 }
 0x9f4   : > { %4185 = vmatpush.msk.msrb.mxu0 %vm1221_vm1, %v3467_v53 }
 0x9f5   : > { %4186 = vmatmul.msk.f32.vlgmr.msrb.gmra.mxu0 %vm692_vm4, %v5398_v38  ;;  %v3581_v7 = vmul.f32 1.442695, %v3578_v36  ;;  %v3707_v54 = vmax.f32 %v3705_v32, %v3706_v28  ;;  %v3882_v32 = vpop.permute.xlu0 %3881 }
 0x9f7   : > { %4384 = vpow2.f32 %v3581_v7  ;;  %v3708_v2 = vrot.slane %v3707_v54, 1  ;;  %v3877_v7 = vpop.permute.xlu1 %3876 }
 0x9f9   : > { %v4383_v26 = vpop.eup %4382  ;;  %v3709_v50 = vmax.f32 %v3707_v54, %v3708_v2  ;;  %v3872_v17 = vpop.permute.xlu2 %3871 }
 0x9fa   : > { %v3599_v45 = vmul.f32 %v4383_v26, %v4377_v56 }
 0x9fb   : > { %v3711_v29 = vsub.f32 %v3695_v1, %v3709_v50 }
 0x9fc   : > { %4189 = vmatpush.msk.msra.mxu0 %vm1221_vm1, %v3599_v45 }
 0x9fd   : > { %4190 = vmatmul.msk.f32.vlgmr.msra.gmra.mxu0 %vm692_vm4, %v3247_v8  ;;  %v4385_v9 = vpop.eup %4384  ;;  %v3714_v38 = vmul.f32 1.442695, %v3711_v29 }
 0x9fe   : > { %4195 = vmatpush.msk.msrb.mxu0 %vm1221_vm1, %v3732_v41  ;;  %v3590_v37 = vsel %vm1221_vm1, %v4385_v9, 0.0 }
 0x9ff   : > { %v3591_v61 = vrot.slane %v3590_v37, 4  ;;  %4386 = vpow2.f32 %v3714_v38  ;;  %v3902_v38 = vpop.permute.xlu0 %3901 }
 0xa01   : > { %v3592_v51 = vadd.f32 %v3591_v61, %v3590_v37 }
 0xa03   : > { %v3593_v55 = vrot.slane %v3592_v51, 2 }
 0xa05   : > { %4196 = vmatmul.msk.f32.vlgmr.msrb.gmra.mxu0 %vm692_vm4, %v3250_v44  ;;  %v4387_v11 = vpop.eup %4386  ;;  %v3594_v13 = vadd.f32 %v3593_v55, %v3592_v51 }
 0xa06   : > { %v3723_v56 = vsel %vm1221_vm1, %v4387_v11, 0.0 }
 0xa07   : > { %v3595_v18 = vrot.slane %v3594_v13, 1  ;;  %v3724_v20 = vrot.slane %v3723_v56, 4 }
 0xa09   : > { %v3596_v48 = vadd.f32 %v3595_v18, %v3594_v13  ;;  %v3725_v12 = vadd.f32 %v3724_v20, %v3723_v56 }
 0xa0b   : > { %4388 = vrcp.f32 %v3596_v48  ;;  %v3726_v14 = vrot.slane %v3725_v12, 2 }
 0xa0d   : > { %v3727_v59 = vadd.f32 %v3726_v14, %v3725_v12 }
 0xa0f   : > { %v3728_v25 = vrot.slane %v3727_v59, 1 }
 0xa11   : > { %v4389_v34 = vpop.eup %4388  ;;  %v3729_v49 = vadd.f32 %v3728_v25, %v3727_v59 }
 0xa12   : > { %v3600_v15 = vmul.f32 %v4389_v34, %v4385_v9 }
 0xa13   : > { %4390 = vrcp.f32 %v3729_v49 }
 0xa14   : > { %4191 = vmatpush.msk.msra.mxu1 %vm1221_vm1, %v3600_v15 }
 0xa15   : > { %4192 = vmatmul.msk.f32.vlgmr.msra.gmra.mxu1 %vm692_vm4, %v3247_v8 }
 0xa19   : > { %v4391_v0 = vpop.eup %4390 }
 0xa1a   : > { %v3733_v47 = vmul.f32 %v4391_v0, %v4387_v11 }
 0xa1c   : > { %4197 = vmatpush.msk.msrb.mxu1 %vm1221_vm1, %v3733_v47 }
 0xa1d   : > { %4198 = vmatmul.msk.f32.vlgmr.msrb.gmra.mxu1 %vm692_vm4, %v3250_v44 }
 0xa72   : > { %v3514_v21 = vpop.f32.mrf.mxu0 }
 0xa7a   : > { %v3627_v23 = vpop.f32.mrf.mxu0 }
 0xa82   : > { %v3760_v35 = vpop.f32.mrf.mxu0 }
 0xa83   : > { %3811 = vmatpush.msrb.mxu2 %v3760_v35 }
 0xa85   : > { %3812 = vmatpush.msrb.mxu2 %v3627_v23 }
 0xa87   : > { %3813 = vmatpush.msrb.mxu2 %v5425_v60 }
 0xa89   : > { %3814 = vmatpush.msrb.mxu2 %v5415_v42 }
 0xa8a   : > { %4199 = vmatmul.msk.f32.vlgmr.msrb.gmra.mxu2 %vm220_vm0, %v3783_v19 }
 0xa92   : > { %4200 = vmatmul.msk.f32.gmra.mxu2 %vm220_vm0, %v3784_v31  ;;  %v3647_v1 = vpop.f32.mrf.mxu1 }
 0xa9a   : > { %4201 = vmatmul.msk.f32.gmra.mxu2 %vm220_vm0, %v3785_v5  ;;  %v3780_v24 = vpop.f32.mrf.mxu1 }
 0xa9b   : > { %3840 = vmatpush.msra.mxu3 %v3780_v24 }
 0xa9d   : > { %3841 = vmatpush.msra.mxu3 %v3647_v1 }
 0xa9f   : > { %3842 = vmatpush.msra.mxu3 %v3514_v21 }
 0xaa1   : > { %3843 = vmatpush.msra.mxu3 %v5421_v33 }
 0xaa2   : > { %4202 = vmatmul.msk.f32.gmra.mxu2 %vm220_vm0, %v3786_v63  ;;  %4203 = vmatmul.msk.f32.vlgmr.msra.gmra.mxu3 %vm220_vm0, %v3783_v19 }
 0xaaa   : > { %4204 = vmatmul.msk.f32.gmra.mxu3 %vm220_vm0, %v3784_v31 }
 0xab2   : > { %4205 = vmatmul.msk.f32.gmra.mxu3 %vm220_vm0, %v3785_v5 }
 0xaba   : > { %4206 = vmatmul.msk.f32.gmra.mxu3 %vm220_vm0, %v3786_v63 }
 0xb0d   : > { %v3816_v42 = vpop.f32.mrf.mxu2 }
 0xb0e   : > { %v3857_v36 = vadd.f32 %v3816_v42, %v5190_v6 }
 0xb10   : > { %v3889_v2 = vadd.f32 %v3872_v17, %v3857_v36 }
 0xb15   : > { %v3819_v60 = vpop.f32.mrf.mxu2 }
 0xb16   : > { %v3859_v53 = vadd.f32 %v3819_v60, %v5182_v39 }
 0xb18   : > { %v3891_v54 = vadd.f32 %v3877_v7, %v3859_v53 }
 0xb1d   : > { %v3822_v16 = vpop.f32.mrf.mxu2 }
 0xb1e   : > { %v3861_v43 = vadd.f32 %v3822_v16, %v5193_v4 }
 0xb20   : > { %v3893_v28 = vadd.f32 %v3882_v32, %v3861_v43 }
 0xb25   : > { %v3825_v27 = vpop.f32.mrf.mxu2  ;;  %v3845_v33 = vpop.f32.mrf.mxu3 }
 0xb26   : > { %v3863_v30 = vadd.f32 %v3825_v27, %v5208_v10  ;;  %v3858_v8 = vadd.f32 %v3845_v33, %v5249_v57 }
 0xb28   : > { %v3895_v22 = vadd.f32 %v3887_v58, %v3863_v30  ;;  %v3890_v9 = vadd.f32 %v3872_v17, %v3858_v8 }
 0xb2a   : > { %3919 = vmatpush.msra.mxu0 %v3895_v22 }
 0xb2c   : > { %3920 = vmatpush.msra.mxu0 %v3893_v28 }
 0xb2d   : > { %v3848_v26 = vpop.f32.mrf.mxu3 }
 0xb2e   : > { %3921 = vmatpush.msra.mxu0 %v3891_v54  ;;  %v3860_v6 = vadd.f32 %v3848_v26, %v5246_v3 }
 0xb30   : > { %3922 = vmatpush.msra.mxu0 %v3889_v2  ;;  %v3892_v29 = vadd.f32 %v3877_v7, %v3860_v6 }
 0xb31   : > { %4207 = vmatmul.msk.f32.vlgmr.msra.gmra.mxu0 %vm220_vm0, %v3897_v40 }
 0xb35   : > { %v3851_v4 = vpop.f32.mrf.mxu3 }
 0xb36   : > { %v3862_v39 = vadd.f32 %v3851_v4, %v5252_v52 }
 0xb38   : > { %v3894_v41 = vadd.f32 %v3882_v32, %v3862_v39 }
 0xb3d   : > { %v3854_v10 = vpop.f32.mrf.mxu3 }
 0xb3e   : > { %v3864_v45 = vadd.f32 %v3854_v10, %v5259_v46 }
 0xb40   : > { %v3896_v50 = vadd.f32 %v3887_v58, %v3864_v45 }
 0xb42   : > { %3939 = vmatpush.msra.mxu1 %v3896_v50 }
 0xb44   : > { %3940 = vmatpush.msra.mxu1 %v3894_v41 }
 0xb46   : > { %3941 = vmatpush.msra.mxu1 %v3892_v29 }
 0xb48   : > { %3942 = vmatpush.msra.mxu1 %v3890_v9 }
 0xb49   : > { %4208 = vmatmul.msk.f32.vlgmr.msra.gmra.mxu1 %vm220_vm0, %v3897_v40 }
 0xbae   : > { %v3924_v37 = vpop.f32.mrf.mxu0 }
 0xbaf   : > { %v3925_v46 = vadd.f32 %v3924_v37, %v3902_v38 }
 0xbc6   : > { %v3944_v52 = vpop.f32.mrf.mxu1 }
 0xbc7   : > { %v3945_v61 = vadd.f32 %v3944_v52, %v3902_v38 }
 0xbc9   : > { %v3949_v3 = vrot.slane %v3945_v61, 4 }
 0xbcb   : > { %v3950_v57 = vsel %vm1221_vm1, %v3925_v46, %v3949_v3 }
 0xbcc   : > { %3952 = vst [vmem:[%s207_s14] sm:$0xff] %v3950_v57 }
 0xbcd PF: > { %s14_s12 = sadd.s32 1, %s4432_s12  }
 0xbce   : > { %p11_p7 = scmp.ge.s32.totalorder %s14_s12, 4  }
 0xbd0   :  { %13 = sbr.rel (!%p11_p7) target bundleno = 1 (0x1), region = 70 }
 0xbd5   :  { %3974 = vsyncpa [#allocation3], 1 }
 0xbd6   :  { %3976 = vsyncpa [#allocation3 + $0x1], 1 }

</bundles_post_ra>
